<compile_context>
chip_gen: v6e
topology: v6e:2x2x1
jax: 0.10.0
libtpu: 0.0.40
codegen_flags: <defaults>
</compile_context>

<pallas_src>
import math

import jax
import jax.numpy as jnp
from jax.experimental import pallas as pl
from jax.experimental.pallas import tpu as pltpu

# ---------------------------------------------------------------------------
# Problem sizes (small, consistent with the module's constructor arguments)
# ---------------------------------------------------------------------------
B = 2            # batch
T = 8            # target sequence length
S = 8            # source (encoder) sequence length  (== T so masks can stack)
HIDDEN = 32      # hidden_dim
OUT = 32         # output_dim (== hidden_dim, required by the residual add)
HEADS = 4        # num_heads
HEAD_DIM = HIDDEN // HEADS
NUM_LAYERS = 2   # num_layers
EPS = 1e-5       # nn.LayerNorm default eps


# ---------------------------------------------------------------------------
# In-kernel math helpers (all elementwise math kept in f32)
# ---------------------------------------------------------------------------
def _layer_norm(x, gamma, beta):
    # x: (N, E); gamma/beta: (1, E)
    mu = jnp.mean(x, axis=-1, keepdims=True)
    var = jnp.mean((x - mu) ** 2, axis=-1, keepdims=True)
    return (x - mu) * jax.lax.rsqrt(var + EPS) * gamma + beta


def _attend(q, k, v, mask, w_out_t, b_out):
    """Batch-merged multi-head attention core + single output projection.

    q: (B*tq, E) f32, k/v: (B*tk, E) f32.
    mask: (B*tq, B*tk) additive f32, block-diagonal (-1e9 cross-batch).
    w_out_t: (E, E) bf16 pre-transposed out-projection, b_out: (1, E) f32.
    The 1/sqrt(head_dim) scale is already folded into Wq/bq by the wrapper.
    """
    qb = q.astype(jnp.bfloat16)
    kb = k.astype(jnp.bfloat16)
    vb = v.astype(jnp.bfloat16)
    pvs = []
    for h in range(HEADS):                       # static unroll over heads
        lo, hi = h * HEAD_DIM, (h + 1) * HEAD_DIM
        # scores = q_h @ k_h^T (contraction over the head dim, no transpose)
        s = jax.lax.dot_general(
            qb[:, lo:hi], kb[:, lo:hi],
            (((1,), (1,)), ((), ())),
            preferred_element_type=jnp.float32) + mask
        # No row-max subtraction: the additive mask is finite (-1e9 -> exp
        # underflows exactly to 0) and logits stay O(1) here (LayerNorm-ed
        # residual stream, small projection weights).  Every row has at least
        # one unmasked entry (causal diag / same-batch block), so the
        # denominator is never 0.  Restore the max-subtraction if inputs may
        # have arbitrary magnitude.
        p = jnp.exp(s)
        inv = pl.reciprocal(jnp.sum(p, axis=-1, keepdims=True), approx=True)
        pv = jnp.dot(p.astype(jnp.bfloat16), vb[:, lo:hi],
                     preferred_element_type=jnp.float32) * inv    # (B*tq, hd)
        pvs.append(pv)
    # Lane-concatenate the per-head contexts (E=32 <= one vreg lane width),
    # then a single out-projection matmul.
    ctx = jnp.concatenate(pvs, axis=-1).astype(jnp.bfloat16)       # (B*tq, E)
    return jnp.dot(ctx, w_out_t, preferred_element_type=jnp.float32) + b_out


# ---------------------------------------------------------------------------
# Fused decoder kernel: all layers + final norm, one invocation, no grid
# ---------------------------------------------------------------------------
def decoder_kernel(x_ref, mem_ref, masks_ref,
                   wqkv_ref, wmats_ref, small_ref, out_ref):
    E = HIDDEN
    x = x_ref[...]            # (B*T, E) f32 (residual stream stays f32)
    mem_bf = mem_ref[...]     # (B*S, E) bf16 (only ever a matmul operand)
    tmask = masks_ref[0]      # (B*T, B*T) block-diag causal mask
    smask = masks_ref[1]      # (B*T, B*S) block-diag source mask

    for l in range(NUM_LAYERS):   # static unroll over layers
        w_qkv_sa = wqkv_ref[l, 0]     # (E, 3E) bf16  [Wq*s | Wk | Wv]^T
        w_qkv_ca = wqkv_ref[l, 1]     # (E, 3E) bf16
        wo_sa = wmats_ref[l, 0]       # (E, E)  bf16  out-proj^T self-attn
        wo_ca = wmats_ref[l, 1]       # (E, E)  bf16  out-proj^T cross-attn
        w1 = wmats_ref[l, 2]          # (E, E)  bf16  linear1^T
        w2 = wmats_ref[l, 3]          # (E, E)  bf16  linear2^T
        sv = small_ref[l]             # (16, E) f32  packed small params
        bq_sa, bk_sa, bv_sa = sv[0:1], sv[1:2], sv[2:3]
        bq_ca, bk_ca, bv_ca = sv[3:4], sv[4:5], sv[5:6]
        bo_sa, bo_ca = sv[6:7], sv[7:8]
        b1, b2 = sv[8:9], sv[9:10]
        g1, be1 = sv[10:11], sv[11:12]
        g2, be2 = sv[12:13], sv[13:14]
        g3, be3 = sv[14:15], sv[15:16]

        # --- self attention (fused QKV) + residual + norm1 ----------------
        qkv = jnp.dot(x.astype(jnp.bfloat16), w_qkv_sa,
                      preferred_element_type=jnp.float32)          # (B*T, 3E)
        q = qkv[:, :E] + bq_sa
        k = qkv[:, E:2 * E] + bk_sa
        v = qkv[:, 2 * E:] + bv_sa
        a = _attend(q, k, v, tmask, wo_sa, bo_sa)
        x = _layer_norm(x + a, g1, be1)

        # --- cross attention (Q separate, fused KV) + residual + norm2 ----
        q = jnp.dot(x.astype(jnp.bfloat16), w_qkv_ca[:, :E],
                    preferred_element_type=jnp.float32) + bq_ca
        kv = jnp.dot(mem_bf, w_qkv_ca[:, E:],
                     preferred_element_type=jnp.float32)           # (B*S, 2E)
        k = kv[:, :E] + bk_ca
        v = kv[:, E:] + bv_ca
        a = _attend(q, k, v, smask, wo_ca, bo_ca)
        x = _layer_norm(x + a, g2, be2)

        # --- feed forward + residual + norm3 -------------------------------
        h = jnp.maximum(
            jnp.dot(x.astype(jnp.bfloat16), w1,
                    preferred_element_type=jnp.float32) + b1, 0.0)
        ff = jnp.dot(h.astype(jnp.bfloat16), w2,
                     preferred_element_type=jnp.float32) + b2
        x = _layer_norm(x + ff, g3, be3)

    # --- final Decoder LayerNorm -------------------------------------------
    fv = small_ref[NUM_LAYERS]
    out_ref[...] = _layer_norm(x, fv[0:1], fv[1:2])


@jax.jit
def decoder_forward(tgt, enc, masks, packed):
    """tgt: (B, T, E), enc: (B, S, E); masks: (2, B*T, B*T) merged additive."""
    Bn, Tn, E = tgt.shape
    Sn = enc.shape[1]
    x_flat = tgt.reshape(Bn * Tn, E)                       # f32 residual stream
    m_flat = enc.reshape(Bn * Sn, E).astype(jnp.bfloat16)  # matmul operand only
    vmem = pl.BlockSpec(memory_space=pltpu.MemorySpace.VMEM)
    out = pl.pallas_call(
        decoder_kernel,
        out_shape=jax.ShapeDtypeStruct((Bn * Tn, E), jnp.float32),
        in_specs=[vmem] * 6,
        out_specs=vmem,
    )(x_flat, m_flat, masks,
      packed["wqkv"], packed["wmats"], packed["small"])
    return out.reshape(Bn, Tn, E)


# ---------------------------------------------------------------------------
# Parameter init (PyTorch layout) and wrapper-side packing / pre-transpose
# ---------------------------------------------------------------------------
def init_params(key):
    E = HIDDEN
    layers = []
    for _ in range(NUM_LAYERS):
        key, *ks = jax.random.split(key, 13)
        n = lambda k, shape: (0.02 * jax.random.normal(k, shape)).astype(jnp.float32)
        layers.append(dict(
            sa_in_w=n(ks[0], (3 * E, E)), sa_in_b=n(ks[1], (3 * E,)),
            sa_out_w=n(ks[2], (E, E)), sa_out_b=n(ks[3], (E,)),
            ca_in_w=n(ks[4], (3 * E, E)), ca_in_b=n(ks[5], (3 * E,)),
            ca_out_w=n(ks[6], (E, E)), ca_out_b=n(ks[7], (E,)),
            w1=n(ks[8], (E, E)), b1=n(ks[9], (E,)),
            w2=n(ks[10], (OUT, E)), b2=n(ks[11], (OUT,)),
            g1=jnp.ones((E,), jnp.float32), be1=jnp.zeros((E,), jnp.float32),
            g2=jnp.ones((E,), jnp.float32), be2=jnp.zeros((E,), jnp.float32),
            g3=jnp.ones((E,), jnp.float32), be3=jnp.zeros((E,), jnp.float32),
        ))
    fnorm = (jnp.ones((E,), jnp.float32), jnp.zeros((E,), jnp.float32))
    return layers, fnorm


def pack_params(layers, fnorm):
    """Pre-transpose weights, fold the 1/sqrt(hd) scale into Wq/bq, cast the
    matmul weights to bf16, and pack everything into 3 arrays."""
    E = HIDDEN
    scale = 1.0 / math.sqrt(HEAD_DIM)

    def fold_w(w):   # scale the Q rows of an in_proj weight (3E, E)
        return jnp.concatenate([w[:E] * scale, w[E:]], axis=0)

    def fold_b(b):   # scale the Q part of an in_proj bias (3E,)
        return jnp.concatenate([b[:E] * scale, b[E:]], axis=0)

    wqkv, wmats, small = [], [], []
    for p in layers:
        sa_w, ca_w = fold_w(p["sa_in_w"]), fold_w(p["ca_in_w"])
        sa_b, ca_b = fold_b(p["sa_in_b"]), fold_b(p["ca_in_b"])
        wqkv.append(jnp.stack([sa_w.T, ca_w.T]).astype(jnp.bfloat16))   # (2,E,3E)
        wmats.append(jnp.stack([p["sa_out_w"].T, p["ca_out_w"].T,
                                p["w1"].T, p["w2"].T]).astype(jnp.bfloat16))  # (4,E,E)
        small.append(jnp.stack([
            sa_b[:E], sa_b[E:2 * E], sa_b[2 * E:],
            ca_b[:E], ca_b[E:2 * E], ca_b[2 * E:],
            p["sa_out_b"], p["ca_out_b"],
            p["b1"], p["b2"],
            p["g1"], p["be1"], p["g2"], p["be2"], p["g3"], p["be3"],
        ]).astype(jnp.float32))                                          # (16,E)
    # final-norm params go into an extra (16, E) slot (rows 0/1 used)
    small.append(jnp.concatenate(
        [jnp.stack([fnorm[0], fnorm[1]]), jnp.zeros((14, E), jnp.float32)],
        axis=0))
    return dict(
        wqkv=jnp.stack(wqkv),                                            # (L,2,E,3E) bf16
        wmats=jnp.stack(wmats),                                          # (L,4,E,E)  bf16
        small=jnp.stack(small),                                          # (L+1,16,E) f32
    )


def merge_mask_block_diag(m, n_batch):
    """(tq, tk) additive mask -> (n_batch*tq, n_batch*tk) block-diagonal mask
    with -1e9 on cross-batch blocks (exp underflows exactly to 0)."""
    tq, tk = m.shape
    rows = []
    for b in range(n_batch):
        blocks = [m if i == b else jnp.full((tq, tk), jnp.float32(-1e9))
                  for i in range(n_batch)]
        rows.append(jnp.concatenate(blocks, axis=1))
    return jnp.concatenate(rows, axis=0)


# ---------------------------------------------------------------------------
# Independent pure-JAX reference in PyTorch layout (no Pallas, no packing)
# ---------------------------------------------------------------------------
def reference(tgt, enc, tgt_mask, src_mask, layers, fnorm):
    E = HIDDEN

    def mha(xq, xkv, mask, in_w, in_b, out_w, out_b):
        q = xq @ in_w[:E].T + in_b[:E]
        k = xkv @ in_w[E:2 * E].T + in_b[E:2 * E]
        v = xkv @ in_w[2 * E:].T + in_b[2 * E:]
        tq, tk = q.shape[0], k.shape[0]
        qh = q.reshape(tq, HEADS, HEAD_DIM).transpose(1, 0, 2)
        kh = k.reshape(tk, HEADS, HEAD_DIM).transpose(1, 0, 2)
        vh = v.reshape(tk, HEADS, HEAD_DIM).transpose(1, 0, 2)
        s = jnp.einsum("hqd,hkd->hqk", qh, kh) / math.sqrt(HEAD_DIM) + mask
        p = jax.nn.softmax(s, axis=-1)
        ctx = jnp.einsum("hqk,hkd->hqd", p, vh).transpose(1, 0, 2).reshape(tq, E)
        return ctx @ out_w.T + out_b

    def ln(x, g, b):
        mu = x.mean(-1, keepdims=True)
        var = ((x - mu) ** 2).mean(-1, keepdims=True)
        return (x - mu) / jnp.sqrt(var + EPS) * g + b

    def one(x, mem):
        for p in layers:
            a = mha(x, x, tgt_mask,
                    p["sa_in_w"], p["sa_in_b"], p["sa_out_w"], p["sa_out_b"])
            x = ln(x + a, p["g1"], p["be1"])
            a = mha(x, mem, src_mask,
                    p["ca_in_w"], p["ca_in_b"], p["ca_out_w"], p["ca_out_b"])
            x = ln(x + a, p["g2"], p["be2"])
            h = jax.nn.relu(x @ p["w1"].T + p["b1"])
            ff = h @ p["w2"].T + p["b2"]
            x = ln(x + ff, p["g3"], p["be3"])
        return ln(x, fnorm[0], fnorm[1])

    return jax.vmap(one)(tgt, enc)


if __name__ == "__main__":
    key = jax.random.PRNGKey(0)
    k_tgt, k_enc, k_par = jax.random.split(key, 3)

    tgt = jax.random.normal(k_tgt, (B, T, HIDDEN), jnp.float32)
    enc = jax.random.normal(k_enc, (B, S, HIDDEN), jnp.float32)

    # causal additive mask for self-attn, no masking for src-attn
    row = jnp.arange(T)[:, None]
    col = jnp.arange(T)[None, :]
    tgt_mask = jnp.where(col > row, jnp.float32(-1e9), jnp.float32(0.0))
    src_mask = jnp.zeros((T, S), jnp.float32)

    # merged block-diagonal masks for the batch-stacked attention
    # (stacking into one buffer requires T == S; otherwise pass separately)
    masks = jnp.stack([merge_mask_block_diag(tgt_mask, B),
                       merge_mask_block_diag(src_mask, B)])

    layers, fnorm = init_params(k_par)
    packed = pack_params(layers, fnorm)

    out = decoder_forward(tgt, enc, masks, packed)
    out = jax.block_until_ready(out)

    ref = jax.block_until_ready(
        reference(tgt, enc, tgt_mask, src_mask, layers, fnorm))

    assert out.shape == (B, T, OUT)
    # bf16 matmul operands + approx reciprocal leave plenty of margin at 2e-3
    assert jnp.max(jnp.abs(out - ref)) < 2e-3, "mismatch vs pure-JAX reference"

    print("KERNEL_OK")
</pallas_src>

<mosaic_0001>
module attributes {stable_mosaic.version = 11 : i64} {
  func.func @decoder_kernel(%arg0: memref<16x32xf32, #tpu.memory_space<vmem>>, %arg1: memref<16x32xbf16, #tpu.memory_space<vmem>>, %arg2: memref<2x16x16xf32, #tpu.memory_space<vmem>>, %arg3: memref<2x2x32x96xbf16, #tpu.memory_space<vmem>>, %arg4: memref<2x4x32x32xbf16, #tpu.memory_space<vmem>>, %arg5: memref<3x16x32xf32, #tpu.memory_space<vmem>>, %arg6: memref<16x32xf32, #tpu.memory_space<vmem>>) attributes {dimension_semantics = [], scalar_prefetch = 0 : i64, scratch_operands = 0 : i64, tpu.core_type = #tpu.core_type<tc>} {
    %c0 = arith.constant 0 : index
    %c0_0 = arith.constant 0 : index
    %0 = vector.load %arg0[%c0, %c0_0] : memref<16x32xf32, #tpu.memory_space<vmem>>, vector<16x32xf32>
    %c0_1 = arith.constant 0 : index
    %c0_2 = arith.constant 0 : index
    %1 = vector.load %arg1[%c0_1, %c0_2] : memref<16x32xbf16, #tpu.memory_space<vmem>>, vector<16x32xbf16>
    %c0_3 = arith.constant 0 : index
    %c0_4 = arith.constant 0 : index
    %c0_5 = arith.constant 0 : index
    %2 = vector.load %arg2[%c0_3, %c0_4, %c0_5] : memref<2x16x16xf32, #tpu.memory_space<vmem>>, vector<1x16x16xf32>
    %3 = vector.shape_cast %2 : vector<1x16x16xf32> to vector<16x16xf32>
    %c1 = arith.constant 1 : index
    %c0_6 = arith.constant 0 : index
    %c0_7 = arith.constant 0 : index
    %4 = vector.load %arg2[%c1, %c0_6, %c0_7] : memref<2x16x16xf32, #tpu.memory_space<vmem>>, vector<1x16x16xf32>
    %5 = vector.shape_cast %4 : vector<1x16x16xf32> to vector<16x16xf32>
    %c0_8 = arith.constant 0 : index
    %c0_9 = arith.constant 0 : index
    %c0_10 = arith.constant 0 : index
    %c0_11 = arith.constant 0 : index
    %6 = vector.load %arg3[%c0_8, %c0_9, %c0_10, %c0_11] : memref<2x2x32x96xbf16, #tpu.memory_space<vmem>>, vector<1x1x32x96xbf16>
    %7 = vector.shape_cast %6 : vector<1x1x32x96xbf16> to vector<32x96xbf16>
    %c0_12 = arith.constant 0 : index
    %c1_13 = arith.constant 1 : index
    %c0_14 = arith.constant 0 : index
    %c0_15 = arith.constant 0 : index
    %8 = vector.load %arg3[%c0_12, %c1_13, %c0_14, %c0_15] : memref<2x2x32x96xbf16, #tpu.memory_space<vmem>>, vector<1x1x32x96xbf16>
    %9 = vector.shape_cast %8 : vector<1x1x32x96xbf16> to vector<32x96xbf16>
    %c0_16 = arith.constant 0 : index
    %c0_17 = arith.constant 0 : index
    %c0_18 = arith.constant 0 : index
    %c0_19 = arith.constant 0 : index
    %10 = vector.load %arg4[%c0_16, %c0_17, %c0_18, %c0_19] : memref<2x4x32x32xbf16, #tpu.memory_space<vmem>>, vector<1x1x32x32xbf16>
    %11 = vector.shape_cast %10 : vector<1x1x32x32xbf16> to vector<32x32xbf16>
    %c0_20 = arith.constant 0 : index
    %c1_21 = arith.constant 1 : index
    %c0_22 = arith.constant 0 : index
    %c0_23 = arith.constant 0 : index
    %12 = vector.load %arg4[%c0_20, %c1_21, %c0_22, %c0_23] : memref<2x4x32x32xbf16, #tpu.memory_space<vmem>>, vector<1x1x32x32xbf16>
    %13 = vector.shape_cast %12 : vector<1x1x32x32xbf16> to vector<32x32xbf16>
    %c0_24 = arith.constant 0 : index
    %c2 = arith.constant 2 : index
    %c0_25 = arith.constant 0 : index
    %c0_26 = arith.constant 0 : index
    %14 = vector.load %arg4[%c0_24, %c2, %c0_25, %c0_26] : memref<2x4x32x32xbf16, #tpu.memory_space<vmem>>, vector<1x1x32x32xbf16>
    %15 = vector.shape_cast %14 : vector<1x1x32x32xbf16> to vector<32x32xbf16>
    %c0_27 = arith.constant 0 : index
    %c3 = arith.constant 3 : index
    %c0_28 = arith.constant 0 : index
    %c0_29 = arith.constant 0 : index
    %16 = vector.load %arg4[%c0_27, %c3, %c0_28, %c0_29] : memref<2x4x32x32xbf16, #tpu.memory_space<vmem>>, vector<1x1x32x32xbf16>
    %17 = vector.shape_cast %16 : vector<1x1x32x32xbf16> to vector<32x32xbf16>
    %c0_30 = arith.constant 0 : index
    %c0_31 = arith.constant 0 : index
    %c0_32 = arith.constant 0 : index
    %18 = vector.load %arg5[%c0_30, %c0_31, %c0_32] : memref<3x16x32xf32, #tpu.memory_space<vmem>>, vector<1x16x32xf32>
    %19 = vector.shape_cast %18 : vector<1x16x32xf32> to vector<16x32xf32>
    %20 = vector.extract_strided_slice %19 {offsets = [0, 0], sizes = [1, 32], strides = [1, 1]} : vector<16x32xf32> to vector<1x32xf32>
    %21 = vector.extract_strided_slice %19 {offsets = [1, 0], sizes = [1, 32], strides = [1, 1]} : vector<16x32xf32> to vector<1x32xf32>
    %22 = vector.extract_strided_slice %19 {offsets = [2, 0], sizes = [1, 32], strides = [1, 1]} : vector<16x32xf32> to vector<1x32xf32>
    %23 = vector.extract_strided_slice %19 {offsets = [3, 0], sizes = [1, 32], strides = [1, 1]} : vector<16x32xf32> to vector<1x32xf32>
    %24 = vector.extract_strided_slice %19 {offsets = [4, 0], sizes = [1, 32], strides = [1, 1]} : vector<16x32xf32> to vector<1x32xf32>
    %25 = vector.extract_strided_slice %19 {offsets = [5, 0], sizes = [1, 32], strides = [1, 1]} : vector<16x32xf32> to vector<1x32xf32>
    %26 = vector.extract_strided_slice %19 {offsets = [6, 0], sizes = [1, 32], strides = [1, 1]} : vector<16x32xf32> to vector<1x32xf32>
    %27 = vector.extract_strided_slice %19 {offsets = [7, 0], sizes = [1, 32], strides = [1, 1]} : vector<16x32xf32> to vector<1x32xf32>
    %28 = vector.extract_strided_slice %19 {offsets = [8, 0], sizes = [1, 32], strides = [1, 1]} : vector<16x32xf32> to vector<1x32xf32>
    %29 = vector.extract_strided_slice %19 {offsets = [9, 0], sizes = [1, 32], strides = [1, 1]} : vector<16x32xf32> to vector<1x32xf32>
    %30 = vector.extract_strided_slice %19 {offsets = [10, 0], sizes = [1, 32], strides = [1, 1]} : vector<16x32xf32> to vector<1x32xf32>
    %31 = vector.extract_strided_slice %19 {offsets = [11, 0], sizes = [1, 32], strides = [1, 1]} : vector<16x32xf32> to vector<1x32xf32>
    %32 = vector.extract_strided_slice %19 {offsets = [12, 0], sizes = [1, 32], strides = [1, 1]} : vector<16x32xf32> to vector<1x32xf32>
    %33 = vector.extract_strided_slice %19 {offsets = [13, 0], sizes = [1, 32], strides = [1, 1]} : vector<16x32xf32> to vector<1x32xf32>
    %34 = vector.extract_strided_slice %19 {offsets = [14, 0], sizes = [1, 32], strides = [1, 1]} : vector<16x32xf32> to vector<1x32xf32>
    %35 = vector.extract_strided_slice %19 {offsets = [15, 0], sizes = [1, 32], strides = [1, 1]} : vector<16x32xf32> to vector<1x32xf32>
    %36 = arith.truncf %0 : vector<16x32xf32> to vector<16x32xbf16>
    %cst = arith.constant dense<0.000000e+00> : vector<16x96xf32>
    %37 = tpu.matmul %36, %7, %cst {dimension_numbers = #tpu.dot_dimension_numbers<[1], [0], [0], [1], [0, 0, 1, 1], [], []>} : vector<16x32xbf16>, vector<32x96xbf16>, vector<16x96xf32> -> vector<16x96xf32>
    %38 = vector.extract_strided_slice %37 {offsets = [0, 0], sizes = [16, 32], strides = [1, 1]} : vector<16x96xf32> to vector<16x32xf32>
    %39 = vector.broadcast %20 : vector<1x32xf32> to vector<16x32xf32>
    %40 = arith.addf %38, %39 : vector<16x32xf32>
    %41 = vector.extract_strided_slice %37 {offsets = [0, 32], sizes = [16, 32], strides = [1, 1]} : vector<16x96xf32> to vector<16x32xf32>
    %42 = vector.broadcast %21 : vector<1x32xf32> to vector<16x32xf32>
    %43 = arith.addf %41, %42 : vector<16x32xf32>
    %44 = vector.extract_strided_slice %37 {offsets = [0, 64], sizes = [16, 32], strides = [1, 1]} : vector<16x96xf32> to vector<16x32xf32>
    %45 = vector.broadcast %22 : vector<1x32xf32> to vector<16x32xf32>
    %46 = arith.addf %44, %45 : vector<16x32xf32>
    %47 = arith.truncf %40 : vector<16x32xf32> to vector<16x32xbf16>
    %48 = arith.truncf %43 : vector<16x32xf32> to vector<16x32xbf16>
    %49 = arith.truncf %46 : vector<16x32xf32> to vector<16x32xbf16>
    %50 = vector.extract_strided_slice %47 {offsets = [0, 0], sizes = [16, 8], strides = [1, 1]} : vector<16x32xbf16> to vector<16x8xbf16>
    %51 = vector.extract_strided_slice %48 {offsets = [0, 0], sizes = [16, 8], strides = [1, 1]} : vector<16x32xbf16> to vector<16x8xbf16>
    %cst_33 = arith.constant dense<0.000000e+00> : vector<16x16xf32>
    %52 = tpu.matmul %50, %51, %cst_33 {dimension_numbers = #tpu.dot_dimension_numbers<[1], [1], [0], [0], [0, 0, 1, 0], [], []>} : vector<16x8xbf16>, vector<16x8xbf16>, vector<16x16xf32> -> vector<16x16xf32>
    %53 = arith.addf %52, %3 : vector<16x16xf32>
    %54 = math.exp %53 : vector<16x16xf32>
    %cst_34 = arith.constant dense<0.000000e+00> : vector<16xf32>
    %55 = vector.multi_reduction <add>, %54, %cst_34 [1] : vector<16x16xf32> to vector<16xf32>
    %56 = vector.shape_cast %55 : vector<16xf32> to vector<16x1xf32>
    %57 = tpu.reciprocal %56 {approx = true} : vector<16x1xf32> -> vector<16x1xf32>
    %58 = arith.truncf %54 : vector<16x16xf32> to vector<16x16xbf16>
    %59 = vector.extract_strided_slice %49 {offsets = [0, 0], sizes = [16, 8], strides = [1, 1]} : vector<16x32xbf16> to vector<16x8xbf16>
    %cst_35 = arith.constant dense<0.000000e+00> : vector<16x8xf32>
    %60 = tpu.matmul %58, %59, %cst_35 {dimension_numbers = #tpu.dot_dimension_numbers<[1], [0], [0], [1], [0, 0, 1, 1], [], []>} : vector<16x16xbf16>, vector<16x8xbf16>, vector<16x8xf32> -> vector<16x8xf32>
    %61 = vector.broadcast %57 : vector<16x1xf32> to vector<16x8xf32>
    %62 = arith.mulf %60, %61 : vector<16x8xf32>
    %63 = vector.extract_strided_slice %47 {offsets = [0, 8], sizes = [16, 8], strides = [1, 1]} : vector<16x32xbf16> to vector<16x8xbf16>
    %64 = vector.extract_strided_slice %48 {offsets = [0, 8], sizes = [16, 8], strides = [1, 1]} : vector<16x32xbf16> to vector<16x8xbf16>
    %cst_36 = arith.constant dense<0.000000e+00> : vector<16x16xf32>
    %65 = tpu.matmul %63, %64, %cst_36 {dimension_numbers = #tpu.dot_dimension_numbers<[1], [1], [0], [0], [0, 0, 1, 0], [], []>} : vector<16x8xbf16>, vector<16x8xbf16>, vector<16x16xf32> -> vector<16x16xf32>
    %66 = arith.addf %65, %3 : vector<16x16xf32>
    %67 = math.exp %66 : vector<16x16xf32>
    %cst_37 = arith.constant dense<0.000000e+00> : vector<16xf32>
    %68 = vector.multi_reduction <add>, %67, %cst_37 [1] : vector<16x16xf32> to vector<16xf32>
    %69 = vector.shape_cast %68 : vector<16xf32> to vector<16x1xf32>
    %70 = tpu.reciprocal %69 {approx = true} : vector<16x1xf32> -> vector<16x1xf32>
    %71 = arith.truncf %67 : vector<16x16xf32> to vector<16x16xbf16>
    %72 = vector.extract_strided_slice %49 {offsets = [0, 8], sizes = [16, 8], strides = [1, 1]} : vector<16x32xbf16> to vector<16x8xbf16>
    %cst_38 = arith.constant dense<0.000000e+00> : vector<16x8xf32>
    %73 = tpu.matmul %71, %72, %cst_38 {dimension_numbers = #tpu.dot_dimension_numbers<[1], [0], [0], [1], [0, 0, 1, 1], [], []>} : vector<16x16xbf16>, vector<16x8xbf16>, vector<16x8xf32> -> vector<16x8xf32>
    %74 = vector.broadcast %70 : vector<16x1xf32> to vector<16x8xf32>
    %75 = arith.mulf %73, %74 : vector<16x8xf32>
    %76 = vector.extract_strided_slice %47 {offsets = [0, 16], sizes = [16, 8], strides = [1, 1]} : vector<16x32xbf16> to vector<16x8xbf16>
    %77 = vector.extract_strided_slice %48 {offsets = [0, 16], sizes = [16, 8], strides = [1, 1]} : vector<16x32xbf16> to vector<16x8xbf16>
    %cst_39 = arith.constant dense<0.000000e+00> : vector<16x16xf32>
    %78 = tpu.matmul %76, %77, %cst_39 {dimension_numbers = #tpu.dot_dimension_numbers<[1], [1], [0], [0], [0, 0, 1, 0], [], []>} : vector<16x8xbf16>, vector<16x8xbf16>, vector<16x16xf32> -> vector<16x16xf32>
    %79 = arith.addf %78, %3 : vector<16x16xf32>
    %80 = math.exp %79 : vector<16x16xf32>
    %cst_40 = arith.constant dense<0.000000e+00> : vector<16xf32>
    %81 = vector.multi_reduction <add>, %80, %cst_40 [1] : vector<16x16xf32> to vector<16xf32>
    %82 = vector.shape_cast %81 : vector<16xf32> to vector<16x1xf32>
    %83 = tpu.reciprocal %82 {approx = true} : vector<16x1xf32> -> vector<16x1xf32>
    %84 = arith.truncf %80 : vector<16x16xf32> to vector<16x16xbf16>
    %85 = vector.extract_strided_slice %49 {offsets = [0, 16], sizes = [16, 8], strides = [1, 1]} : vector<16x32xbf16> to vector<16x8xbf16>
    %cst_41 = arith.constant dense<0.000000e+00> : vector<16x8xf32>
    %86 = tpu.matmul %84, %85, %cst_41 {dimension_numbers = #tpu.dot_dimension_numbers<[1], [0], [0], [1], [0, 0, 1, 1], [], []>} : vector<16x16xbf16>, vector<16x8xbf16>, vector<16x8xf32> -> vector<16x8xf32>
    %87 = vector.broadcast %83 : vector<16x1xf32> to vector<16x8xf32>
    %88 = arith.mulf %86, %87 : vector<16x8xf32>
    %89 = vector.extract_strided_slice %47 {offsets = [0, 24], sizes = [16, 8], strides = [1, 1]} : vector<16x32xbf16> to vector<16x8xbf16>
    %90 = vector.extract_strided_slice %48 {offsets = [0, 24], sizes = [16, 8], strides = [1, 1]} : vector<16x32xbf16> to vector<16x8xbf16>
    %cst_42 = arith.constant dense<0.000000e+00> : vector<16x16xf32>
    %91 = tpu.matmul %89, %90, %cst_42 {dimension_numbers = #tpu.dot_dimension_numbers<[1], [1], [0], [0], [0, 0, 1, 0], [], []>} : vector<16x8xbf16>, vector<16x8xbf16>, vector<16x16xf32> -> vector<16x16xf32>
    %92 = arith.addf %91, %3 : vector<16x16xf32>
    %93 = math.exp %92 : vector<16x16xf32>
    %cst_43 = arith.constant dense<0.000000e+00> : vector<16xf32>
    %94 = vector.multi_reduction <add>, %93, %cst_43 [1] : vector<16x16xf32> to vector<16xf32>
    %95 = vector.shape_cast %94 : vector<16xf32> to vector<16x1xf32>
    %96 = tpu.reciprocal %95 {approx = true} : vector<16x1xf32> -> vector<16x1xf32>
    %97 = arith.truncf %93 : vector<16x16xf32> to vector<16x16xbf16>
    %98 = vector.extract_strided_slice %49 {offsets = [0, 24], sizes = [16, 8], strides = [1, 1]} : vector<16x32xbf16> to vector<16x8xbf16>
    %cst_44 = arith.constant dense<0.000000e+00> : vector<16x8xf32>
    %99 = tpu.matmul %97, %98, %cst_44 {dimension_numbers = #tpu.dot_dimension_numbers<[1], [0], [0], [1], [0, 0, 1, 1], [], []>} : vector<16x16xbf16>, vector<16x8xbf16>, vector<16x8xf32> -> vector<16x8xf32>
    %100 = vector.broadcast %96 : vector<16x1xf32> to vector<16x8xf32>
    %101 = arith.mulf %99, %100 : vector<16x8xf32>
    %102 = tpu.concatenate %62, %75, %88, %101 in 1 : vector<16x8xf32>, vector<16x8xf32>, vector<16x8xf32>, vector<16x8xf32> -> vector<16x32xf32>
    %103 = arith.truncf %102 : vector<16x32xf32> to vector<16x32xbf16>
    %cst_45 = arith.constant dense<0.000000e+00> : vector<16x32xf32>
    %104 = tpu.matmul %103, %11, %cst_45 {dimension_numbers = #tpu.dot_dimension_numbers<[1], [0], [0], [1], [0, 0, 1, 1], [], []>} : vector<16x32xbf16>, vector<32x32xbf16>, vector<16x32xf32> -> vector<16x32xf32>
    %105 = vector.broadcast %26 : vector<1x32xf32> to vector<16x32xf32>
    %106 = arith.addf %104, %105 : vector<16x32xf32>
    %107 = arith.addf %0, %106 : vector<16x32xf32>
    %cst_46 = arith.constant dense<0.000000e+00> : vector<16xf32>
    %108 = vector.multi_reduction <add>, %107, %cst_46 [1] : vector<16x32xf32> to vector<16xf32>
    %109 = vector.shape_cast %108 : vector<16xf32> to vector<16x1xf32>
    %cst_47 = arith.constant 3.200000e+01 : f32
    %110 = vector.broadcast %cst_47 : f32 to vector<16x1xf32>
    %111 = arith.divf %109, %110 : vector<16x1xf32>
    %112 = vector.broadcast %111 : vector<16x1xf32> to vector<16x32xf32>
    %113 = arith.subf %107, %112 : vector<16x32xf32>
    %114 = arith.mulf %113, %113 : vector<16x32xf32>
    %cst_48 = arith.constant dense<0.000000e+00> : vector<16xf32>
    %115 = vector.multi_reduction <add>, %114, %cst_48 [1] : vector<16x32xf32> to vector<16xf32>
    %116 = vector.shape_cast %115 : vector<16xf32> to vector<16x1xf32>
    %cst_49 = arith.constant 3.200000e+01 : f32
    %117 = vector.broadcast %cst_49 : f32 to vector<16x1xf32>
    %118 = arith.divf %116, %117 : vector<16x1xf32>
    %119 = vector.broadcast %111 : vector<16x1xf32> to vector<16x32xf32>
    %120 = arith.subf %107, %119 : vector<16x32xf32>
    %cst_50 = arith.constant 9.99999974E-6 : f32
    %121 = vector.broadcast %cst_50 : f32 to vector<16x1xf32>
    %122 = arith.addf %118, %121 : vector<16x1xf32>
    %123 = math.rsqrt %122 : vector<16x1xf32>
    %124 = vector.broadcast %123 : vector<16x1xf32> to vector<16x32xf32>
    %125 = arith.mulf %120, %124 : vector<16x32xf32>
    %126 = vector.broadcast %30 : vector<1x32xf32> to vector<16x32xf32>
    %127 = arith.mulf %125, %126 : vector<16x32xf32>
    %128 = vector.broadcast %31 : vector<1x32xf32> to vector<16x32xf32>
    %129 = arith.addf %127, %128 : vector<16x32xf32>
    %130 = arith.truncf %129 : vector<16x32xf32> to vector<16x32xbf16>
    %131 = vector.extract_strided_slice %9 {offsets = [0, 0], sizes = [32, 32], strides = [1, 1]} : vector<32x96xbf16> to vector<32x32xbf16>
    %cst_51 = arith.constant dense<0.000000e+00> : vector<16x32xf32>
    %132 = tpu.matmul %130, %131, %cst_51 {dimension_numbers = #tpu.dot_dimension_numbers<[1], [0], [0], [1], [0, 0, 1, 1], [], []>} : vector<16x32xbf16>, vector<32x32xbf16>, vector<16x32xf32> -> vector<16x32xf32>
    %133 = vector.broadcast %23 : vector<1x32xf32> to vector<16x32xf32>
    %134 = arith.addf %132, %133 : vector<16x32xf32>
    %135 = vector.extract_strided_slice %9 {offsets = [0, 32], sizes = [32, 64], strides = [1, 1]} : vector<32x96xbf16> to vector<32x64xbf16>
    %cst_52 = arith.constant dense<0.000000e+00> : vector<16x64xf32>
    %136 = tpu.matmul %1, %135, %cst_52 {dimension_numbers = #tpu.dot_dimension_numbers<[1], [0], [0], [1], [0, 0, 1, 1], [], []>} : vector<16x32xbf16>, vector<32x64xbf16>, vector<16x64xf32> -> vector<16x64xf32>
    %137 = vector.extract_strided_slice %136 {offsets = [0, 0], sizes = [16, 32], strides = [1, 1]} : vector<16x64xf32> to vector<16x32xf32>
    %138 = vector.broadcast %24 : vector<1x32xf32> to vector<16x32xf32>
    %139 = arith.addf %137, %138 : vector<16x32xf32>
    %140 = vector.extract_strided_slice %136 {offsets = [0, 32], sizes = [16, 32], strides = [1, 1]} : vector<16x64xf32> to vector<16x32xf32>
    %141 = vector.broadcast %25 : vector<1x32xf32> to vector<16x32xf32>
    %142 = arith.addf %140, %141 : vector<16x32xf32>
    %143 = arith.truncf %134 : vector<16x32xf32> to vector<16x32xbf16>
    %144 = arith.truncf %139 : vector<16x32xf32> to vector<16x32xbf16>
    %145 = arith.truncf %142 : vector<16x32xf32> to vector<16x32xbf16>
    %146 = vector.extract_strided_slice %143 {offsets = [0, 0], sizes = [16, 8], strides = [1, 1]} : vector<16x32xbf16> to vector<16x8xbf16>
    %147 = vector.extract_strided_slice %144 {offsets = [0, 0], sizes = [16, 8], strides = [1, 1]} : vector<16x32xbf16> to vector<16x8xbf16>
    %cst_53 = arith.constant dense<0.000000e+00> : vector<16x16xf32>
    %148 = tpu.matmul %146, %147, %cst_53 {dimension_numbers = #tpu.dot_dimension_numbers<[1], [1], [0], [0], [0, 0, 1, 0], [], []>} : vector<16x8xbf16>, vector<16x8xbf16>, vector<16x16xf32> -> vector<16x16xf32>
    %149 = arith.addf %148, %5 : vector<16x16xf32>
    %150 = math.exp %149 : vector<16x16xf32>
    %cst_54 = arith.constant dense<0.000000e+00> : vector<16xf32>
    %151 = vector.multi_reduction <add>, %150, %cst_54 [1] : vector<16x16xf32> to vector<16xf32>
    %152 = vector.shape_cast %151 : vector<16xf32> to vector<16x1xf32>
    %153 = tpu.reciprocal %152 {approx = true} : vector<16x1xf32> -> vector<16x1xf32>
    %154 = arith.truncf %150 : vector<16x16xf32> to vector<16x16xbf16>
    %155 = vector.extract_strided_slice %145 {offsets = [0, 0], sizes = [16, 8], strides = [1, 1]} : vector<16x32xbf16> to vector<16x8xbf16>
    %cst_55 = arith.constant dense<0.000000e+00> : vector<16x8xf32>
    %156 = tpu.matmul %154, %155, %cst_55 {dimension_numbers = #tpu.dot_dimension_numbers<[1], [0], [0], [1], [0, 0, 1, 1], [], []>} : vector<16x16xbf16>, vector<16x8xbf16>, vector<16x8xf32> -> vector<16x8xf32>
    %157 = vector.broadcast %153 : vector<16x1xf32> to vector<16x8xf32>
    %158 = arith.mulf %156, %157 : vector<16x8xf32>
    %159 = vector.extract_strided_slice %143 {offsets = [0, 8], sizes = [16, 8], strides = [1, 1]} : vector<16x32xbf16> to vector<16x8xbf16>
    %160 = vector.extract_strided_slice %144 {offsets = [0, 8], sizes = [16, 8], strides = [1, 1]} : vector<16x32xbf16> to vector<16x8xbf16>
    %cst_56 = arith.constant dense<0.000000e+00> : vector<16x16xf32>
    %161 = tpu.matmul %159, %160, %cst_56 {dimension_numbers = #tpu.dot_dimension_numbers<[1], [1], [0], [0], [0, 0, 1, 0], [], []>} : vector<16x8xbf16>, vector<16x8xbf16>, vector<16x16xf32> -> vector<16x16xf32>
    %162 = arith.addf %161, %5 : vector<16x16xf32>
    %163 = math.exp %162 : vector<16x16xf32>
    %cst_57 = arith.constant dense<0.000000e+00> : vector<16xf32>
    %164 = vector.multi_reduction <add>, %163, %cst_57 [1] : vector<16x16xf32> to vector<16xf32>
    %165 = vector.shape_cast %164 : vector<16xf32> to vector<16x1xf32>
    %166 = tpu.reciprocal %165 {approx = true} : vector<16x1xf32> -> vector<16x1xf32>
    %167 = arith.truncf %163 : vector<16x16xf32> to vector<16x16xbf16>
    %168 = vector.extract_strided_slice %145 {offsets = [0, 8], sizes = [16, 8], strides = [1, 1]} : vector<16x32xbf16> to vector<16x8xbf16>
    %cst_58 = arith.constant dense<0.000000e+00> : vector<16x8xf32>
    %169 = tpu.matmul %167, %168, %cst_58 {dimension_numbers = #tpu.dot_dimension_numbers<[1], [0], [0], [1], [0, 0, 1, 1], [], []>} : vector<16x16xbf16>, vector<16x8xbf16>, vector<16x8xf32> -> vector<16x8xf32>
    %170 = vector.broadcast %166 : vector<16x1xf32> to vector<16x8xf32>
    %171 = arith.mulf %169, %170 : vector<16x8xf32>
    %172 = vector.extract_strided_slice %143 {offsets = [0, 16], sizes = [16, 8], strides = [1, 1]} : vector<16x32xbf16> to vector<16x8xbf16>
    %173 = vector.extract_strided_slice %144 {offsets = [0, 16], sizes = [16, 8], strides = [1, 1]} : vector<16x32xbf16> to vector<16x8xbf16>
    %cst_59 = arith.constant dense<0.000000e+00> : vector<16x16xf32>
    %174 = tpu.matmul %172, %173, %cst_59 {dimension_numbers = #tpu.dot_dimension_numbers<[1], [1], [0], [0], [0, 0, 1, 0], [], []>} : vector<16x8xbf16>, vector<16x8xbf16>, vector<16x16xf32> -> vector<16x16xf32>
    %175 = arith.addf %174, %5 : vector<16x16xf32>
    %176 = math.exp %175 : vector<16x16xf32>
    %cst_60 = arith.constant dense<0.000000e+00> : vector<16xf32>
    %177 = vector.multi_reduction <add>, %176, %cst_60 [1] : vector<16x16xf32> to vector<16xf32>
    %178 = vector.shape_cast %177 : vector<16xf32> to vector<16x1xf32>
    %179 = tpu.reciprocal %178 {approx = true} : vector<16x1xf32> -> vector<16x1xf32>
    %180 = arith.truncf %176 : vector<16x16xf32> to vector<16x16xbf16>
    %181 = vector.extract_strided_slice %145 {offsets = [0, 16], sizes = [16, 8], strides = [1, 1]} : vector<16x32xbf16> to vector<16x8xbf16>
    %cst_61 = arith.constant dense<0.000000e+00> : vector<16x8xf32>
    %182 = tpu.matmul %180, %181, %cst_61 {dimension_numbers = #tpu.dot_dimension_numbers<[1], [0], [0], [1], [0, 0, 1, 1], [], []>} : vector<16x16xbf16>, vector<16x8xbf16>, vector<16x8xf32> -> vector<16x8xf32>
    %183 = vector.broadcast %179 : vector<16x1xf32> to vector<16x8xf32>
    %184 = arith.mulf %182, %183 : vector<16x8xf32>
    %185 = vector.extract_strided_slice %143 {offsets = [0, 24], sizes = [16, 8], strides = [1, 1]} : vector<16x32xbf16> to vector<16x8xbf16>
    %186 = vector.extract_strided_slice %144 {offsets = [0, 24], sizes = [16, 8], strides = [1, 1]} : vector<16x32xbf16> to vector<16x8xbf16>
    %cst_62 = arith.constant dense<0.000000e+00> : vector<16x16xf32>
    %187 = tpu.matmul %185, %186, %cst_62 {dimension_numbers = #tpu.dot_dimension_numbers<[1], [1], [0], [0], [0, 0, 1, 0], [], []>} : vector<16x8xbf16>, vector<16x8xbf16>, vector<16x16xf32> -> vector<16x16xf32>
    %188 = arith.addf %187, %5 : vector<16x16xf32>
    %189 = math.exp %188 : vector<16x16xf32>
    %cst_63 = arith.constant dense<0.000000e+00> : vector<16xf32>
    %190 = vector.multi_reduction <add>, %189, %cst_63 [1] : vector<16x16xf32> to vector<16xf32>
    %191 = vector.shape_cast %190 : vector<16xf32> to vector<16x1xf32>
    %192 = tpu.reciprocal %191 {approx = true} : vector<16x1xf32> -> vector<16x1xf32>
    %193 = arith.truncf %189 : vector<16x16xf32> to vector<16x16xbf16>
    %194 = vector.extract_strided_slice %145 {offsets = [0, 24], sizes = [16, 8], strides = [1, 1]} : vector<16x32xbf16> to vector<16x8xbf16>
    %cst_64 = arith.constant dense<0.000000e+00> : vector<16x8xf32>
    %195 = tpu.matmul %193, %194, %cst_64 {dimension_numbers = #tpu.dot_dimension_numbers<[1], [0], [0], [1], [0, 0, 1, 1], [], []>} : vector<16x16xbf16>, vector<16x8xbf16>, vector<16x8xf32> -> vector<16x8xf32>
    %196 = vector.broadcast %192 : vector<16x1xf32> to vector<16x8xf32>
    %197 = arith.mulf %195, %196 : vector<16x8xf32>
    %198 = tpu.concatenate %158, %171, %184, %197 in 1 : vector<16x8xf32>, vector<16x8xf32>, vector<16x8xf32>, vector<16x8xf32> -> vector<16x32xf32>
    %199 = arith.truncf %198 : vector<16x32xf32> to vector<16x32xbf16>
    %cst_65 = arith.constant dense<0.000000e+00> : vector<16x32xf32>
    %200 = tpu.matmul %199, %13, %cst_65 {dimension_numbers = #tpu.dot_dimension_numbers<[1], [0], [0], [1], [0, 0, 1, 1], [], []>} : vector<16x32xbf16>, vector<32x32xbf16>, vector<16x32xf32> -> vector<16x32xf32>
    %201 = vector.broadcast %27 : vector<1x32xf32> to vector<16x32xf32>
    %202 = arith.addf %200, %201 : vector<16x32xf32>
    %203 = arith.addf %129, %202 : vector<16x32xf32>
    %cst_66 = arith.constant dense<0.000000e+00> : vector<16xf32>
    %204 = vector.multi_reduction <add>, %203, %cst_66 [1] : vector<16x32xf32> to vector<16xf32>
    %205 = vector.shape_cast %204 : vector<16xf32> to vector<16x1xf32>
    %cst_67 = arith.constant 3.200000e+01 : f32
    %206 = vector.broadcast %cst_67 : f32 to vector<16x1xf32>
    %207 = arith.divf %205, %206 : vector<16x1xf32>
    %208 = vector.broadcast %207 : vector<16x1xf32> to vector<16x32xf32>
    %209 = arith.subf %203, %208 : vector<16x32xf32>
    %210 = arith.mulf %209, %209 : vector<16x32xf32>
    %cst_68 = arith.constant dense<0.000000e+00> : vector<16xf32>
    %211 = vector.multi_reduction <add>, %210, %cst_68 [1] : vector<16x32xf32> to vector<16xf32>
    %212 = vector.shape_cast %211 : vector<16xf32> to vector<16x1xf32>
    %cst_69 = arith.constant 3.200000e+01 : f32
    %213 = vector.broadcast %cst_69 : f32 to vector<16x1xf32>
    %214 = arith.divf %212, %213 : vector<16x1xf32>
    %215 = vector.broadcast %207 : vector<16x1xf32> to vector<16x32xf32>
    %216 = arith.subf %203, %215 : vector<16x32xf32>
    %cst_70 = arith.constant 9.99999974E-6 : f32
    %217 = vector.broadcast %cst_70 : f32 to vector<16x1xf32>
    %218 = arith.addf %214, %217 : vector<16x1xf32>
    %219 = math.rsqrt %218 : vector<16x1xf32>
    %220 = vector.broadcast %219 : vector<16x1xf32> to vector<16x32xf32>
    %221 = arith.mulf %216, %220 : vector<16x32xf32>
    %222 = vector.broadcast %32 : vector<1x32xf32> to vector<16x32xf32>
    %223 = arith.mulf %221, %222 : vector<16x32xf32>
    %224 = vector.broadcast %33 : vector<1x32xf32> to vector<16x32xf32>
    %225 = arith.addf %223, %224 : vector<16x32xf32>
    %226 = arith.truncf %225 : vector<16x32xf32> to vector<16x32xbf16>
    %cst_71 = arith.constant dense<0.000000e+00> : vector<16x32xf32>
    %227 = tpu.matmul %226, %15, %cst_71 {dimension_numbers = #tpu.dot_dimension_numbers<[1], [0], [0], [1], [0, 0, 1, 1], [], []>} : vector<16x32xbf16>, vector<32x32xbf16>, vector<16x32xf32> -> vector<16x32xf32>
    %228 = vector.broadcast %28 : vector<1x32xf32> to vector<16x32xf32>
    %229 = arith.addf %227, %228 : vector<16x32xf32>
    %cst_72 = arith.constant 0.000000e+00 : f32
    %230 = vector.broadcast %cst_72 : f32 to vector<16x32xf32>
    %231 = arith.maximumf %229, %230 : vector<16x32xf32>
    %232 = arith.truncf %231 : vector<16x32xf32> to vector<16x32xbf16>
    %cst_73 = arith.constant dense<0.000000e+00> : vector<16x32xf32>
    %233 = tpu.matmul %232, %17, %cst_73 {dimension_numbers = #tpu.dot_dimension_numbers<[1], [0], [0], [1], [0, 0, 1, 1], [], []>} : vector<16x32xbf16>, vector<32x32xbf16>, vector<16x32xf32> -> vector<16x32xf32>
    %234 = vector.broadcast %29 : vector<1x32xf32> to vector<16x32xf32>
    %235 = arith.addf %233, %234 : vector<16x32xf32>
    %236 = arith.addf %225, %235 : vector<16x32xf32>
    %cst_74 = arith.constant dense<0.000000e+00> : vector<16xf32>
    %237 = vector.multi_reduction <add>, %236, %cst_74 [1] : vector<16x32xf32> to vector<16xf32>
    %238 = vector.shape_cast %237 : vector<16xf32> to vector<16x1xf32>
    %cst_75 = arith.constant 3.200000e+01 : f32
    %239 = vector.broadcast %cst_75 : f32 to vector<16x1xf32>
    %240 = arith.divf %238, %239 : vector<16x1xf32>
    %241 = vector.broadcast %240 : vector<16x1xf32> to vector<16x32xf32>
    %242 = arith.subf %236, %241 : vector<16x32xf32>
    %243 = arith.mulf %242, %242 : vector<16x32xf32>
    %cst_76 = arith.constant dense<0.000000e+00> : vector<16xf32>
    %244 = vector.multi_reduction <add>, %243, %cst_76 [1] : vector<16x32xf32> to vector<16xf32>
    %245 = vector.shape_cast %244 : vector<16xf32> to vector<16x1xf32>
    %cst_77 = arith.constant 3.200000e+01 : f32
    %246 = vector.broadcast %cst_77 : f32 to vector<16x1xf32>
    %247 = arith.divf %245, %246 : vector<16x1xf32>
    %248 = vector.broadcast %240 : vector<16x1xf32> to vector<16x32xf32>
    %249 = arith.subf %236, %248 : vector<16x32xf32>
    %cst_78 = arith.constant 9.99999974E-6 : f32
    %250 = vector.broadcast %cst_78 : f32 to vector<16x1xf32>
    %251 = arith.addf %247, %250 : vector<16x1xf32>
    %252 = math.rsqrt %251 : vector<16x1xf32>
    %253 = vector.broadcast %252 : vector<16x1xf32> to vector<16x32xf32>
    %254 = arith.mulf %249, %253 : vector<16x32xf32>
    %255 = vector.broadcast %34 : vector<1x32xf32> to vector<16x32xf32>
    %256 = arith.mulf %254, %255 : vector<16x32xf32>
    %257 = vector.broadcast %35 : vector<1x32xf32> to vector<16x32xf32>
    %258 = arith.addf %256, %257 : vector<16x32xf32>
    %c1_79 = arith.constant 1 : index
    %c0_80 = arith.constant 0 : index
    %c0_81 = arith.constant 0 : index
    %c0_82 = arith.constant 0 : index
    %259 = vector.load %arg3[%c1_79, %c0_80, %c0_81, %c0_82] : memref<2x2x32x96xbf16, #tpu.memory_space<vmem>>, vector<1x1x32x96xbf16>
    %260 = vector.shape_cast %259 : vector<1x1x32x96xbf16> to vector<32x96xbf16>
    %c1_83 = arith.constant 1 : index
    %c1_84 = arith.constant 1 : index
    %c0_85 = arith.constant 0 : index
    %c0_86 = arith.constant 0 : index
    %261 = vector.load %arg3[%c1_83, %c1_84, %c0_85, %c0_86] : memref<2x2x32x96xbf16, #tpu.memory_space<vmem>>, vector<1x1x32x96xbf16>
    %262 = vector.shape_cast %261 : vector<1x1x32x96xbf16> to vector<32x96xbf16>
    %c1_87 = arith.constant 1 : index
    %c0_88 = arith.constant 0 : index
    %c0_89 = arith.constant 0 : index
    %c0_90 = arith.constant 0 : index
    %263 = vector.load %arg4[%c1_87, %c0_88, %c0_89, %c0_90] : memref<2x4x32x32xbf16, #tpu.memory_space<vmem>>, vector<1x1x32x32xbf16>
    %264 = vector.shape_cast %263 : vector<1x1x32x32xbf16> to vector<32x32xbf16>
    %c1_91 = arith.constant 1 : index
    %c1_92 = arith.constant 1 : index
    %c0_93 = arith.constant 0 : index
    %c0_94 = arith.constant 0 : index
    %265 = vector.load %arg4[%c1_91, %c1_92, %c0_93, %c0_94] : memref<2x4x32x32xbf16, #tpu.memory_space<vmem>>, vector<1x1x32x32xbf16>
    %266 = vector.shape_cast %265 : vector<1x1x32x32xbf16> to vector<32x32xbf16>
    %c1_95 = arith.constant 1 : index
    %c2_96 = arith.constant 2 : index
    %c0_97 = arith.constant 0 : index
    %c0_98 = arith.constant 0 : index
    %267 = vector.load %arg4[%c1_95, %c2_96, %c0_97, %c0_98] : memref<2x4x32x32xbf16, #tpu.memory_space<vmem>>, vector<1x1x32x32xbf16>
    %268 = vector.shape_cast %267 : vector<1x1x32x32xbf16> to vector<32x32xbf16>
    %c1_99 = arith.constant 1 : index
    %c3_100 = arith.constant 3 : index
    %c0_101 = arith.constant 0 : index
    %c0_102 = arith.constant 0 : index
    %269 = vector.load %arg4[%c1_99, %c3_100, %c0_101, %c0_102] : memref<2x4x32x32xbf16, #tpu.memory_space<vmem>>, vector<1x1x32x32xbf16>
    %270 = vector.shape_cast %269 : vector<1x1x32x32xbf16> to vector<32x32xbf16>
    %c1_103 = arith.constant 1 : index
    %c0_104 = arith.constant 0 : index
    %c0_105 = arith.constant 0 : index
    %271 = vector.load %arg5[%c1_103, %c0_104, %c0_105] : memref<3x16x32xf32, #tpu.memory_space<vmem>>, vector<1x16x32xf32>
    %272 = vector.shape_cast %271 : vector<1x16x32xf32> to vector<16x32xf32>
    %273 = vector.extract_strided_slice %272 {offsets = [0, 0], sizes = [1, 32], strides = [1, 1]} : vector<16x32xf32> to vector<1x32xf32>
    %274 = vector.extract_strided_slice %272 {offsets = [1, 0], sizes = [1, 32], strides = [1, 1]} : vector<16x32xf32> to vector<1x32xf32>
    %275 = vector.extract_strided_slice %272 {offsets = [2, 0], sizes = [1, 32], strides = [1, 1]} : vector<16x32xf32> to vector<1x32xf32>
    %276 = vector.extract_strided_slice %272 {offsets = [3, 0], sizes = [1, 32], strides = [1, 1]} : vector<16x32xf32> to vector<1x32xf32>
    %277 = vector.extract_strided_slice %272 {offsets = [4, 0], sizes = [1, 32], strides = [1, 1]} : vector<16x32xf32> to vector<1x32xf32>
    %278 = vector.extract_strided_slice %272 {offsets = [5, 0], sizes = [1, 32], strides = [1, 1]} : vector<16x32xf32> to vector<1x32xf32>
    %279 = vector.extract_strided_slice %272 {offsets = [6, 0], sizes = [1, 32], strides = [1, 1]} : vector<16x32xf32> to vector<1x32xf32>
    %280 = vector.extract_strided_slice %272 {offsets = [7, 0], sizes = [1, 32], strides = [1, 1]} : vector<16x32xf32> to vector<1x32xf32>
    %281 = vector.extract_strided_slice %272 {offsets = [8, 0], sizes = [1, 32], strides = [1, 1]} : vector<16x32xf32> to vector<1x32xf32>
    %282 = vector.extract_strided_slice %272 {offsets = [9, 0], sizes = [1, 32], strides = [1, 1]} : vector<16x32xf32> to vector<1x32xf32>
    %283 = vector.extract_strided_slice %272 {offsets = [10, 0], sizes = [1, 32], strides = [1, 1]} : vector<16x32xf32> to vector<1x32xf32>
    %284 = vector.extract_strided_slice %272 {offsets = [11, 0], sizes = [1, 32], strides = [1, 1]} : vector<16x32xf32> to vector<1x32xf32>
    %285 = vector.extract_strided_slice %272 {offsets = [12, 0], sizes = [1, 32], strides = [1, 1]} : vector<16x32xf32> to vector<1x32xf32>
    %286 = vector.extract_strided_slice %272 {offsets = [13, 0], sizes = [1, 32], strides = [1, 1]} : vector<16x32xf32> to vector<1x32xf32>
    %287 = vector.extract_strided_slice %272 {offsets = [14, 0], sizes = [1, 32], strides = [1, 1]} : vector<16x32xf32> to vector<1x32xf32>
    %288 = vector.extract_strided_slice %272 {offsets = [15, 0], sizes = [1, 32], strides = [1, 1]} : vector<16x32xf32> to vector<1x32xf32>
    %289 = arith.truncf %258 : vector<16x32xf32> to vector<16x32xbf16>
    %cst_106 = arith.constant dense<0.000000e+00> : vector<16x96xf32>
    %290 = tpu.matmul %289, %260, %cst_106 {dimension_numbers = #tpu.dot_dimension_numbers<[1], [0], [0], [1], [0, 0, 1, 1], [], []>} : vector<16x32xbf16>, vector<32x96xbf16>, vector<16x96xf32> -> vector<16x96xf32>
    %291 = vector.extract_strided_slice %290 {offsets = [0, 0], sizes = [16, 32], strides = [1, 1]} : vector<16x96xf32> to vector<16x32xf32>
    %292 = vector.broadcast %273 : vector<1x32xf32> to vector<16x32xf32>
    %293 = arith.addf %291, %292 : vector<16x32xf32>
    %294 = vector.extract_strided_slice %290 {offsets = [0, 32], sizes = [16, 32], strides = [1, 1]} : vector<16x96xf32> to vector<16x32xf32>
    %295 = vector.broadcast %274 : vector<1x32xf32> to vector<16x32xf32>
    %296 = arith.addf %294, %295 : vector<16x32xf32>
    %297 = vector.extract_strided_slice %290 {offsets = [0, 64], sizes = [16, 32], strides = [1, 1]} : vector<16x96xf32> to vector<16x32xf32>
    %298 = vector.broadcast %275 : vector<1x32xf32> to vector<16x32xf32>
    %299 = arith.addf %297, %298 : vector<16x32xf32>
    %300 = arith.truncf %293 : vector<16x32xf32> to vector<16x32xbf16>
    %301 = arith.truncf %296 : vector<16x32xf32> to vector<16x32xbf16>
    %302 = arith.truncf %299 : vector<16x32xf32> to vector<16x32xbf16>
    %303 = vector.extract_strided_slice %300 {offsets = [0, 0], sizes = [16, 8], strides = [1, 1]} : vector<16x32xbf16> to vector<16x8xbf16>
    %304 = vector.extract_strided_slice %301 {offsets = [0, 0], sizes = [16, 8], strides = [1, 1]} : vector<16x32xbf16> to vector<16x8xbf16>
    %cst_107 = arith.constant dense<0.000000e+00> : vector<16x16xf32>
    %305 = tpu.matmul %303, %304, %cst_107 {dimension_numbers = #tpu.dot_dimension_numbers<[1], [1], [0], [0], [0, 0, 1, 0], [], []>} : vector<16x8xbf16>, vector<16x8xbf16>, vector<16x16xf32> -> vector<16x16xf32>
    %306 = arith.addf %305, %3 : vector<16x16xf32>
    %307 = math.exp %306 : vector<16x16xf32>
    %cst_108 = arith.constant dense<0.000000e+00> : vector<16xf32>
    %308 = vector.multi_reduction <add>, %307, %cst_108 [1] : vector<16x16xf32> to vector<16xf32>
    %309 = vector.shape_cast %308 : vector<16xf32> to vector<16x1xf32>
    %310 = tpu.reciprocal %309 {approx = true} : vector<16x1xf32> -> vector<16x1xf32>
    %311 = arith.truncf %307 : vector<16x16xf32> to vector<16x16xbf16>
    %312 = vector.extract_strided_slice %302 {offsets = [0, 0], sizes = [16, 8], strides = [1, 1]} : vector<16x32xbf16> to vector<16x8xbf16>
    %cst_109 = arith.constant dense<0.000000e+00> : vector<16x8xf32>
    %313 = tpu.matmul %311, %312, %cst_109 {dimension_numbers = #tpu.dot_dimension_numbers<[1], [0], [0], [1], [0, 0, 1, 1], [], []>} : vector<16x16xbf16>, vector<16x8xbf16>, vector<16x8xf32> -> vector<16x8xf32>
    %314 = vector.broadcast %310 : vector<16x1xf32> to vector<16x8xf32>
    %315 = arith.mulf %313, %314 : vector<16x8xf32>
    %316 = vector.extract_strided_slice %300 {offsets = [0, 8], sizes = [16, 8], strides = [1, 1]} : vector<16x32xbf16> to vector<16x8xbf16>
    %317 = vector.extract_strided_slice %301 {offsets = [0, 8], sizes = [16, 8], strides = [1, 1]} : vector<16x32xbf16> to vector<16x8xbf16>
    %cst_110 = arith.constant dense<0.000000e+00> : vector<16x16xf32>
    %318 = tpu.matmul %316, %317, %cst_110 {dimension_numbers = #tpu.dot_dimension_numbers<[1], [1], [0], [0], [0, 0, 1, 0], [], []>} : vector<16x8xbf16>, vector<16x8xbf16>, vector<16x16xf32> -> vector<16x16xf32>
    %319 = arith.addf %318, %3 : vector<16x16xf32>
    %320 = math.exp %319 : vector<16x16xf32>
    %cst_111 = arith.constant dense<0.000000e+00> : vector<16xf32>
    %321 = vector.multi_reduction <add>, %320, %cst_111 [1] : vector<16x16xf32> to vector<16xf32>
    %322 = vector.shape_cast %321 : vector<16xf32> to vector<16x1xf32>
    %323 = tpu.reciprocal %322 {approx = true} : vector<16x1xf32> -> vector<16x1xf32>
    %324 = arith.truncf %320 : vector<16x16xf32> to vector<16x16xbf16>
    %325 = vector.extract_strided_slice %302 {offsets = [0, 8], sizes = [16, 8], strides = [1, 1]} : vector<16x32xbf16> to vector<16x8xbf16>
    %cst_112 = arith.constant dense<0.000000e+00> : vector<16x8xf32>
    %326 = tpu.matmul %324, %325, %cst_112 {dimension_numbers = #tpu.dot_dimension_numbers<[1], [0], [0], [1], [0, 0, 1, 1], [], []>} : vector<16x16xbf16>, vector<16x8xbf16>, vector<16x8xf32> -> vector<16x8xf32>
    %327 = vector.broadcast %323 : vector<16x1xf32> to vector<16x8xf32>
    %328 = arith.mulf %326, %327 : vector<16x8xf32>
    %329 = vector.extract_strided_slice %300 {offsets = [0, 16], sizes = [16, 8], strides = [1, 1]} : vector<16x32xbf16> to vector<16x8xbf16>
    %330 = vector.extract_strided_slice %301 {offsets = [0, 16], sizes = [16, 8], strides = [1, 1]} : vector<16x32xbf16> to vector<16x8xbf16>
    %cst_113 = arith.constant dense<0.000000e+00> : vector<16x16xf32>
    %331 = tpu.matmul %329, %330, %cst_113 {dimension_numbers = #tpu.dot_dimension_numbers<[1], [1], [0], [0], [0, 0, 1, 0], [], []>} : vector<16x8xbf16>, vector<16x8xbf16>, vector<16x16xf32> -> vector<16x16xf32>
    %332 = arith.addf %331, %3 : vector<16x16xf32>
    %333 = math.exp %332 : vector<16x16xf32>
    %cst_114 = arith.constant dense<0.000000e+00> : vector<16xf32>
    %334 = vector.multi_reduction <add>, %333, %cst_114 [1] : vector<16x16xf32> to vector<16xf32>
    %335 = vector.shape_cast %334 : vector<16xf32> to vector<16x1xf32>
    %336 = tpu.reciprocal %335 {approx = true} : vector<16x1xf32> -> vector<16x1xf32>
    %337 = arith.truncf %333 : vector<16x16xf32> to vector<16x16xbf16>
    %338 = vector.extract_strided_slice %302 {offsets = [0, 16], sizes = [16, 8], strides = [1, 1]} : vector<16x32xbf16> to vector<16x8xbf16>
    %cst_115 = arith.constant dense<0.000000e+00> : vector<16x8xf32>
    %339 = tpu.matmul %337, %338, %cst_115 {dimension_numbers = #tpu.dot_dimension_numbers<[1], [0], [0], [1], [0, 0, 1, 1], [], []>} : vector<16x16xbf16>, vector<16x8xbf16>, vector<16x8xf32> -> vector<16x8xf32>
    %340 = vector.broadcast %336 : vector<16x1xf32> to vector<16x8xf32>
    %341 = arith.mulf %339, %340 : vector<16x8xf32>
    %342 = vector.extract_strided_slice %300 {offsets = [0, 24], sizes = [16, 8], strides = [1, 1]} : vector<16x32xbf16> to vector<16x8xbf16>
    %343 = vector.extract_strided_slice %301 {offsets = [0, 24], sizes = [16, 8], strides = [1, 1]} : vector<16x32xbf16> to vector<16x8xbf16>
    %cst_116 = arith.constant dense<0.000000e+00> : vector<16x16xf32>
    %344 = tpu.matmul %342, %343, %cst_116 {dimension_numbers = #tpu.dot_dimension_numbers<[1], [1], [0], [0], [0, 0, 1, 0], [], []>} : vector<16x8xbf16>, vector<16x8xbf16>, vector<16x16xf32> -> vector<16x16xf32>
    %345 = arith.addf %344, %3 : vector<16x16xf32>
    %346 = math.exp %345 : vector<16x16xf32>
    %cst_117 = arith.constant dense<0.000000e+00> : vector<16xf32>
    %347 = vector.multi_reduction <add>, %346, %cst_117 [1] : vector<16x16xf32> to vector<16xf32>
    %348 = vector.shape_cast %347 : vector<16xf32> to vector<16x1xf32>
    %349 = tpu.reciprocal %348 {approx = true} : vector<16x1xf32> -> vector<16x1xf32>
    %350 = arith.truncf %346 : vector<16x16xf32> to vector<16x16xbf16>
    %351 = vector.extract_strided_slice %302 {offsets = [0, 24], sizes = [16, 8], strides = [1, 1]} : vector<16x32xbf16> to vector<16x8xbf16>
    %cst_118 = arith.constant dense<0.000000e+00> : vector<16x8xf32>
    %352 = tpu.matmul %350, %351, %cst_118 {dimension_numbers = #tpu.dot_dimension_numbers<[1], [0], [0], [1], [0, 0, 1, 1], [], []>} : vector<16x16xbf16>, vector<16x8xbf16>, vector<16x8xf32> -> vector<16x8xf32>
    %353 = vector.broadcast %349 : vector<16x1xf32> to vector<16x8xf32>
    %354 = arith.mulf %352, %353 : vector<16x8xf32>
    %355 = tpu.concatenate %315, %328, %341, %354 in 1 : vector<16x8xf32>, vector<16x8xf32>, vector<16x8xf32>, vector<16x8xf32> -> vector<16x32xf32>
    %356 = arith.truncf %355 : vector<16x32xf32> to vector<16x32xbf16>
    %cst_119 = arith.constant dense<0.000000e+00> : vector<16x32xf32>
    %357 = tpu.matmul %356, %264, %cst_119 {dimension_numbers = #tpu.dot_dimension_numbers<[1], [0], [0], [1], [0, 0, 1, 1], [], []>} : vector<16x32xbf16>, vector<32x32xbf16>, vector<16x32xf32> -> vector<16x32xf32>
    %358 = vector.broadcast %279 : vector<1x32xf32> to vector<16x32xf32>
    %359 = arith.addf %357, %358 : vector<16x32xf32>
    %360 = arith.addf %258, %359 : vector<16x32xf32>
    %cst_120 = arith.constant dense<0.000000e+00> : vector<16xf32>
    %361 = vector.multi_reduction <add>, %360, %cst_120 [1] : vector<16x32xf32> to vector<16xf32>
    %362 = vector.shape_cast %361 : vector<16xf32> to vector<16x1xf32>
    %cst_121 = arith.constant 3.200000e+01 : f32
    %363 = vector.broadcast %cst_121 : f32 to vector<16x1xf32>
    %364 = arith.divf %362, %363 : vector<16x1xf32>
    %365 = vector.broadcast %364 : vector<16x1xf32> to vector<16x32xf32>
    %366 = arith.subf %360, %365 : vector<16x32xf32>
    %367 = arith.mulf %366, %366 : vector<16x32xf32>
    %cst_122 = arith.constant dense<0.000000e+00> : vector<16xf32>
    %368 = vector.multi_reduction <add>, %367, %cst_122 [1] : vector<16x32xf32> to vector<16xf32>
    %369 = vector.shape_cast %368 : vector<16xf32> to vector<16x1xf32>
    %cst_123 = arith.constant 3.200000e+01 : f32
    %370 = vector.broadcast %cst_123 : f32 to vector<16x1xf32>
    %371 = arith.divf %369, %370 : vector<16x1xf32>
    %372 = vector.broadcast %364 : vector<16x1xf32> to vector<16x32xf32>
    %373 = arith.subf %360, %372 : vector<16x32xf32>
    %cst_124 = arith.constant 9.99999974E-6 : f32
    %374 = vector.broadcast %cst_124 : f32 to vector<16x1xf32>
    %375 = arith.addf %371, %374 : vector<16x1xf32>
    %376 = math.rsqrt %375 : vector<16x1xf32>
    %377 = vector.broadcast %376 : vector<16x1xf32> to vector<16x32xf32>
    %378 = arith.mulf %373, %377 : vector<16x32xf32>
    %379 = vector.broadcast %283 : vector<1x32xf32> to vector<16x32xf32>
    %380 = arith.mulf %378, %379 : vector<16x32xf32>
    %381 = vector.broadcast %284 : vector<1x32xf32> to vector<16x32xf32>
    %382 = arith.addf %380, %381 : vector<16x32xf32>
    %383 = arith.truncf %382 : vector<16x32xf32> to vector<16x32xbf16>
    %384 = vector.extract_strided_slice %262 {offsets = [0, 0], sizes = [32, 32], strides = [1, 1]} : vector<32x96xbf16> to vector<32x32xbf16>
    %cst_125 = arith.constant dense<0.000000e+00> : vector<16x32xf32>
    %385 = tpu.matmul %383, %384, %cst_125 {dimension_numbers = #tpu.dot_dimension_numbers<[1], [0], [0], [1], [0, 0, 1, 1], [], []>} : vector<16x32xbf16>, vector<32x32xbf16>, vector<16x32xf32> -> vector<16x32xf32>
    %386 = vector.broadcast %276 : vector<1x32xf32> to vector<16x32xf32>
    %387 = arith.addf %385, %386 : vector<16x32xf32>
    %388 = vector.extract_strided_slice %262 {offsets = [0, 32], sizes = [32, 64], strides = [1, 1]} : vector<32x96xbf16> to vector<32x64xbf16>
    %cst_126 = arith.constant dense<0.000000e+00> : vector<16x64xf32>
    %389 = tpu.matmul %1, %388, %cst_126 {dimension_numbers = #tpu.dot_dimension_numbers<[1], [0], [0], [1], [0, 0, 1, 1], [], []>} : vector<16x32xbf16>, vector<32x64xbf16>, vector<16x64xf32> -> vector<16x64xf32>
    %390 = vector.extract_strided_slice %389 {offsets = [0, 0], sizes = [16, 32], strides = [1, 1]} : vector<16x64xf32> to vector<16x32xf32>
    %391 = vector.broadcast %277 : vector<1x32xf32> to vector<16x32xf32>
    %392 = arith.addf %390, %391 : vector<16x32xf32>
    %393 = vector.extract_strided_slice %389 {offsets = [0, 32], sizes = [16, 32], strides = [1, 1]} : vector<16x64xf32> to vector<16x32xf32>
    %394 = vector.broadcast %278 : vector<1x32xf32> to vector<16x32xf32>
    %395 = arith.addf %393, %394 : vector<16x32xf32>
    %396 = arith.truncf %387 : vector<16x32xf32> to vector<16x32xbf16>
    %397 = arith.truncf %392 : vector<16x32xf32> to vector<16x32xbf16>
    %398 = arith.truncf %395 : vector<16x32xf32> to vector<16x32xbf16>
    %399 = vector.extract_strided_slice %396 {offsets = [0, 0], sizes = [16, 8], strides = [1, 1]} : vector<16x32xbf16> to vector<16x8xbf16>
    %400 = vector.extract_strided_slice %397 {offsets = [0, 0], sizes = [16, 8], strides = [1, 1]} : vector<16x32xbf16> to vector<16x8xbf16>
    %cst_127 = arith.constant dense<0.000000e+00> : vector<16x16xf32>
    %401 = tpu.matmul %399, %400, %cst_127 {dimension_numbers = #tpu.dot_dimension_numbers<[1], [1], [0], [0], [0, 0, 1, 0], [], []>} : vector<16x8xbf16>, vector<16x8xbf16>, vector<16x16xf32> -> vector<16x16xf32>
    %402 = arith.addf %401, %5 : vector<16x16xf32>
    %403 = math.exp %402 : vector<16x16xf32>
    %cst_128 = arith.constant dense<0.000000e+00> : vector<16xf32>
    %404 = vector.multi_reduction <add>, %403, %cst_128 [1] : vector<16x16xf32> to vector<16xf32>
    %405 = vector.shape_cast %404 : vector<16xf32> to vector<16x1xf32>
    %406 = tpu.reciprocal %405 {approx = true} : vector<16x1xf32> -> vector<16x1xf32>
    %407 = arith.truncf %403 : vector<16x16xf32> to vector<16x16xbf16>
    %408 = vector.extract_strided_slice %398 {offsets = [0, 0], sizes = [16, 8], strides = [1, 1]} : vector<16x32xbf16> to vector<16x8xbf16>
    %cst_129 = arith.constant dense<0.000000e+00> : vector<16x8xf32>
    %409 = tpu.matmul %407, %408, %cst_129 {dimension_numbers = #tpu.dot_dimension_numbers<[1], [0], [0], [1], [0, 0, 1, 1], [], []>} : vector<16x16xbf16>, vector<16x8xbf16>, vector<16x8xf32> -> vector<16x8xf32>
    %410 = vector.broadcast %406 : vector<16x1xf32> to vector<16x8xf32>
    %411 = arith.mulf %409, %410 : vector<16x8xf32>
    %412 = vector.extract_strided_slice %396 {offsets = [0, 8], sizes = [16, 8], strides = [1, 1]} : vector<16x32xbf16> to vector<16x8xbf16>
    %413 = vector.extract_strided_slice %397 {offsets = [0, 8], sizes = [16, 8], strides = [1, 1]} : vector<16x32xbf16> to vector<16x8xbf16>
    %cst_130 = arith.constant dense<0.000000e+00> : vector<16x16xf32>
    %414 = tpu.matmul %412, %413, %cst_130 {dimension_numbers = #tpu.dot_dimension_numbers<[1], [1], [0], [0], [0, 0, 1, 0], [], []>} : vector<16x8xbf16>, vector<16x8xbf16>, vector<16x16xf32> -> vector<16x16xf32>
    %415 = arith.addf %414, %5 : vector<16x16xf32>
    %416 = math.exp %415 : vector<16x16xf32>
    %cst_131 = arith.constant dense<0.000000e+00> : vector<16xf32>
    %417 = vector.multi_reduction <add>, %416, %cst_131 [1] : vector<16x16xf32> to vector<16xf32>
    %418 = vector.shape_cast %417 : vector<16xf32> to vector<16x1xf32>
    %419 = tpu.reciprocal %418 {approx = true} : vector<16x1xf32> -> vector<16x1xf32>
    %420 = arith.truncf %416 : vector<16x16xf32> to vector<16x16xbf16>
    %421 = vector.extract_strided_slice %398 {offsets = [0, 8], sizes = [16, 8], strides = [1, 1]} : vector<16x32xbf16> to vector<16x8xbf16>
    %cst_132 = arith.constant dense<0.000000e+00> : vector<16x8xf32>
    %422 = tpu.matmul %420, %421, %cst_132 {dimension_numbers = #tpu.dot_dimension_numbers<[1], [0], [0], [1], [0, 0, 1, 1], [], []>} : vector<16x16xbf16>, vector<16x8xbf16>, vector<16x8xf32> -> vector<16x8xf32>
    %423 = vector.broadcast %419 : vector<16x1xf32> to vector<16x8xf32>
    %424 = arith.mulf %422, %423 : vector<16x8xf32>
    %425 = vector.extract_strided_slice %396 {offsets = [0, 16], sizes = [16, 8], strides = [1, 1]} : vector<16x32xbf16> to vector<16x8xbf16>
    %426 = vector.extract_strided_slice %397 {offsets = [0, 16], sizes = [16, 8], strides = [1, 1]} : vector<16x32xbf16> to vector<16x8xbf16>
    %cst_133 = arith.constant dense<0.000000e+00> : vector<16x16xf32>
    %427 = tpu.matmul %425, %426, %cst_133 {dimension_numbers = #tpu.dot_dimension_numbers<[1], [1], [0], [0], [0, 0, 1, 0], [], []>} : vector<16x8xbf16>, vector<16x8xbf16>, vector<16x16xf32> -> vector<16x16xf32>
    %428 = arith.addf %427, %5 : vector<16x16xf32>
    %429 = math.exp %428 : vector<16x16xf32>
    %cst_134 = arith.constant dense<0.000000e+00> : vector<16xf32>
    %430 = vector.multi_reduction <add>, %429, %cst_134 [1] : vector<16x16xf32> to vector<16xf32>
    %431 = vector.shape_cast %430 : vector<16xf32> to vector<16x1xf32>
    %432 = tpu.reciprocal %431 {approx = true} : vector<16x1xf32> -> vector<16x1xf32>
    %433 = arith.truncf %429 : vector<16x16xf32> to vector<16x16xbf16>
    %434 = vector.extract_strided_slice %398 {offsets = [0, 16], sizes = [16, 8], strides = [1, 1]} : vector<16x32xbf16> to vector<16x8xbf16>
    %cst_135 = arith.constant dense<0.000000e+00> : vector<16x8xf32>
    %435 = tpu.matmul %433, %434, %cst_135 {dimension_numbers = #tpu.dot_dimension_numbers<[1], [0], [0], [1], [0, 0, 1, 1], [], []>} : vector<16x16xbf16>, vector<16x8xbf16>, vector<16x8xf32> -> vector<16x8xf32>
    %436 = vector.broadcast %432 : vector<16x1xf32> to vector<16x8xf32>
    %437 = arith.mulf %435, %436 : vector<16x8xf32>
    %438 = vector.extract_strided_slice %396 {offsets = [0, 24], sizes = [16, 8], strides = [1, 1]} : vector<16x32xbf16> to vector<16x8xbf16>
    %439 = vector.extract_strided_slice %397 {offsets = [0, 24], sizes = [16, 8], strides = [1, 1]} : vector<16x32xbf16> to vector<16x8xbf16>
    %cst_136 = arith.constant dense<0.000000e+00> : vector<16x16xf32>
    %440 = tpu.matmul %438, %439, %cst_136 {dimension_numbers = #tpu.dot_dimension_numbers<[1], [1], [0], [0], [0, 0, 1, 0], [], []>} : vector<16x8xbf16>, vector<16x8xbf16>, vector<16x16xf32> -> vector<16x16xf32>
    %441 = arith.addf %440, %5 : vector<16x16xf32>
    %442 = math.exp %441 : vector<16x16xf32>
    %cst_137 = arith.constant dense<0.000000e+00> : vector<16xf32>
    %443 = vector.multi_reduction <add>, %442, %cst_137 [1] : vector<16x16xf32> to vector<16xf32>
    %444 = vector.shape_cast %443 : vector<16xf32> to vector<16x1xf32>
    %445 = tpu.reciprocal %444 {approx = true} : vector<16x1xf32> -> vector<16x1xf32>
    %446 = arith.truncf %442 : vector<16x16xf32> to vector<16x16xbf16>
    %447 = vector.extract_strided_slice %398 {offsets = [0, 24], sizes = [16, 8], strides = [1, 1]} : vector<16x32xbf16> to vector<16x8xbf16>
    %cst_138 = arith.constant dense<0.000000e+00> : vector<16x8xf32>
    %448 = tpu.matmul %446, %447, %cst_138 {dimension_numbers = #tpu.dot_dimension_numbers<[1], [0], [0], [1], [0, 0, 1, 1], [], []>} : vector<16x16xbf16>, vector<16x8xbf16>, vector<16x8xf32> -> vector<16x8xf32>
    %449 = vector.broadcast %445 : vector<16x1xf32> to vector<16x8xf32>
    %450 = arith.mulf %448, %449 : vector<16x8xf32>
    %451 = tpu.concatenate %411, %424, %437, %450 in 1 : vector<16x8xf32>, vector<16x8xf32>, vector<16x8xf32>, vector<16x8xf32> -> vector<16x32xf32>
    %452 = arith.truncf %451 : vector<16x32xf32> to vector<16x32xbf16>
    %cst_139 = arith.constant dense<0.000000e+00> : vector<16x32xf32>
    %453 = tpu.matmul %452, %266, %cst_139 {dimension_numbers = #tpu.dot_dimension_numbers<[1], [0], [0], [1], [0, 0, 1, 1], [], []>} : vector<16x32xbf16>, vector<32x32xbf16>, vector<16x32xf32> -> vector<16x32xf32>
    %454 = vector.broadcast %280 : vector<1x32xf32> to vector<16x32xf32>
    %455 = arith.addf %453, %454 : vector<16x32xf32>
    %456 = arith.addf %382, %455 : vector<16x32xf32>
    %cst_140 = arith.constant dense<0.000000e+00> : vector<16xf32>
    %457 = vector.multi_reduction <add>, %456, %cst_140 [1] : vector<16x32xf32> to vector<16xf32>
    %458 = vector.shape_cast %457 : vector<16xf32> to vector<16x1xf32>
    %cst_141 = arith.constant 3.200000e+01 : f32
    %459 = vector.broadcast %cst_141 : f32 to vector<16x1xf32>
    %460 = arith.divf %458, %459 : vector<16x1xf32>
    %461 = vector.broadcast %460 : vector<16x1xf32> to vector<16x32xf32>
    %462 = arith.subf %456, %461 : vector<16x32xf32>
    %463 = arith.mulf %462, %462 : vector<16x32xf32>
    %cst_142 = arith.constant dense<0.000000e+00> : vector<16xf32>
    %464 = vector.multi_reduction <add>, %463, %cst_142 [1] : vector<16x32xf32> to vector<16xf32>
    %465 = vector.shape_cast %464 : vector<16xf32> to vector<16x1xf32>
    %cst_143 = arith.constant 3.200000e+01 : f32
    %466 = vector.broadcast %cst_143 : f32 to vector<16x1xf32>
    %467 = arith.divf %465, %466 : vector<16x1xf32>
    %468 = vector.broadcast %460 : vector<16x1xf32> to vector<16x32xf32>
    %469 = arith.subf %456, %468 : vector<16x32xf32>
    %cst_144 = arith.constant 9.99999974E-6 : f32
    %470 = vector.broadcast %cst_144 : f32 to vector<16x1xf32>
    %471 = arith.addf %467, %470 : vector<16x1xf32>
    %472 = math.rsqrt %471 : vector<16x1xf32>
    %473 = vector.broadcast %472 : vector<16x1xf32> to vector<16x32xf32>
    %474 = arith.mulf %469, %473 : vector<16x32xf32>
    %475 = vector.broadcast %285 : vector<1x32xf32> to vector<16x32xf32>
    %476 = arith.mulf %474, %475 : vector<16x32xf32>
    %477 = vector.broadcast %286 : vector<1x32xf32> to vector<16x32xf32>
    %478 = arith.addf %476, %477 : vector<16x32xf32>
    %479 = arith.truncf %478 : vector<16x32xf32> to vector<16x32xbf16>
    %cst_145 = arith.constant dense<0.000000e+00> : vector<16x32xf32>
    %480 = tpu.matmul %479, %268, %cst_145 {dimension_numbers = #tpu.dot_dimension_numbers<[1], [0], [0], [1], [0, 0, 1, 1], [], []>} : vector<16x32xbf16>, vector<32x32xbf16>, vector<16x32xf32> -> vector<16x32xf32>
    %481 = vector.broadcast %281 : vector<1x32xf32> to vector<16x32xf32>
    %482 = arith.addf %480, %481 : vector<16x32xf32>
    %cst_146 = arith.constant 0.000000e+00 : f32
    %483 = vector.broadcast %cst_146 : f32 to vector<16x32xf32>
    %484 = arith.maximumf %482, %483 : vector<16x32xf32>
    %485 = arith.truncf %484 : vector<16x32xf32> to vector<16x32xbf16>
    %cst_147 = arith.constant dense<0.000000e+00> : vector<16x32xf32>
    %486 = tpu.matmul %485, %270, %cst_147 {dimension_numbers = #tpu.dot_dimension_numbers<[1], [0], [0], [1], [0, 0, 1, 1], [], []>} : vector<16x32xbf16>, vector<32x32xbf16>, vector<16x32xf32> -> vector<16x32xf32>
    %487 = vector.broadcast %282 : vector<1x32xf32> to vector<16x32xf32>
    %488 = arith.addf %486, %487 : vector<16x32xf32>
    %489 = arith.addf %478, %488 : vector<16x32xf32>
    %cst_148 = arith.constant dense<0.000000e+00> : vector<16xf32>
    %490 = vector.multi_reduction <add>, %489, %cst_148 [1] : vector<16x32xf32> to vector<16xf32>
    %491 = vector.shape_cast %490 : vector<16xf32> to vector<16x1xf32>
    %cst_149 = arith.constant 3.200000e+01 : f32
    %492 = vector.broadcast %cst_149 : f32 to vector<16x1xf32>
    %493 = arith.divf %491, %492 : vector<16x1xf32>
    %494 = vector.broadcast %493 : vector<16x1xf32> to vector<16x32xf32>
    %495 = arith.subf %489, %494 : vector<16x32xf32>
    %496 = arith.mulf %495, %495 : vector<16x32xf32>
    %cst_150 = arith.constant dense<0.000000e+00> : vector<16xf32>
    %497 = vector.multi_reduction <add>, %496, %cst_150 [1] : vector<16x32xf32> to vector<16xf32>
    %498 = vector.shape_cast %497 : vector<16xf32> to vector<16x1xf32>
    %cst_151 = arith.constant 3.200000e+01 : f32
    %499 = vector.broadcast %cst_151 : f32 to vector<16x1xf32>
    %500 = arith.divf %498, %499 : vector<16x1xf32>
    %501 = vector.broadcast %493 : vector<16x1xf32> to vector<16x32xf32>
    %502 = arith.subf %489, %501 : vector<16x32xf32>
    %cst_152 = arith.constant 9.99999974E-6 : f32
    %503 = vector.broadcast %cst_152 : f32 to vector<16x1xf32>
    %504 = arith.addf %500, %503 : vector<16x1xf32>
    %505 = math.rsqrt %504 : vector<16x1xf32>
    %506 = vector.broadcast %505 : vector<16x1xf32> to vector<16x32xf32>
    %507 = arith.mulf %502, %506 : vector<16x32xf32>
    %508 = vector.broadcast %287 : vector<1x32xf32> to vector<16x32xf32>
    %509 = arith.mulf %507, %508 : vector<16x32xf32>
    %510 = vector.broadcast %288 : vector<1x32xf32> to vector<16x32xf32>
    %511 = arith.addf %509, %510 : vector<16x32xf32>
    %c2_153 = arith.constant 2 : index
    %c0_154 = arith.constant 0 : index
    %c0_155 = arith.constant 0 : index
    %512 = vector.load %arg5[%c2_153, %c0_154, %c0_155] : memref<3x16x32xf32, #tpu.memory_space<vmem>>, vector<1x16x32xf32>
    %513 = vector.shape_cast %512 : vector<1x16x32xf32> to vector<16x32xf32>
    %514 = vector.extract_strided_slice %513 {offsets = [0, 0], sizes = [1, 32], strides = [1, 1]} : vector<16x32xf32> to vector<1x32xf32>
    %515 = vector.extract_strided_slice %513 {offsets = [1, 0], sizes = [1, 32], strides = [1, 1]} : vector<16x32xf32> to vector<1x32xf32>
    %cst_156 = arith.constant dense<0.000000e+00> : vector<16xf32>
    %516 = vector.multi_reduction <add>, %511, %cst_156 [1] : vector<16x32xf32> to vector<16xf32>
    %517 = vector.shape_cast %516 : vector<16xf32> to vector<16x1xf32>
    %cst_157 = arith.constant 3.200000e+01 : f32
    %518 = vector.broadcast %cst_157 : f32 to vector<16x1xf32>
    %519 = arith.divf %517, %518 : vector<16x1xf32>
    %520 = vector.broadcast %519 : vector<16x1xf32> to vector<16x32xf32>
    %521 = arith.subf %511, %520 : vector<16x32xf32>
    %522 = arith.mulf %521, %521 : vector<16x32xf32>
    %cst_158 = arith.constant dense<0.000000e+00> : vector<16xf32>
    %523 = vector.multi_reduction <add>, %522, %cst_158 [1] : vector<16x32xf32> to vector<16xf32>
    %524 = vector.shape_cast %523 : vector<16xf32> to vector<16x1xf32>
    %cst_159 = arith.constant 3.200000e+01 : f32
    %525 = vector.broadcast %cst_159 : f32 to vector<16x1xf32>
    %526 = arith.divf %524, %525 : vector<16x1xf32>
    %527 = vector.broadcast %519 : vector<16x1xf32> to vector<16x32xf32>
    %528 = arith.subf %511, %527 : vector<16x32xf32>
    %cst_160 = arith.constant 9.99999974E-6 : f32
    %529 = vector.broadcast %cst_160 : f32 to vector<16x1xf32>
    %530 = arith.addf %526, %529 : vector<16x1xf32>
    %531 = math.rsqrt %530 : vector<16x1xf32>
    %532 = vector.broadcast %531 : vector<16x1xf32> to vector<16x32xf32>
    %533 = arith.mulf %528, %532 : vector<16x32xf32>
    %534 = vector.broadcast %514 : vector<1x32xf32> to vector<16x32xf32>
    %535 = arith.mulf %533, %534 : vector<16x32xf32>
    %536 = vector.broadcast %515 : vector<1x32xf32> to vector<16x32xf32>
    %537 = arith.addf %535, %536 : vector<16x32xf32>
    %c0_161 = arith.constant 0 : index
    %c0_162 = arith.constant 0 : index
    %538 = vector.load %arg6[%c0_161, %c0_162] : memref<16x32xf32, #tpu.memory_space<vmem>>, vector<16x32xf32>
    tpu.vector_store %arg6[%c0_161, %c0_162], %537 {strides = array<i32>} : memref<16x32xf32, #tpu.memory_space<vmem>>, vector<16x32xf32>,
    return
  }
}

</mosaic_0001>

<bundles_post_ra>
// kernel: decoder_forward.1
= control target key start
LH: loop header
LB: loop body
LE: loop exit
PB: predicated region body
PF: predicated region fallthrough
CT: control target
= control target key end

     0   :  { %11 = vsyncpa [#allocation3], 0  ;;  %s4796_s0 = inlined_call_operand.vmem [shape: f32[16,32], index: 0, kind: input, shape index: {}]   ;;  %s4797_s1 = inlined_call_operand.vmem [shape: bf16[16,32], index: 1, kind: input, shape index: {}]   ;;  %s4798_s2 = inlined_call_operand.hbm [shape: f32[2,16,16], index: 2, kind: input, shape index: {}]   ;;  %s4799_s3 = inlined_call_operand.hbm [shape: bf16[2,2,32,96], index: 3, kind: input, shape index: {}]   ;;  %s4800_s4 = inlined_call_operand.hbm [shape: bf16[2,4,32,32], index: 4, kind: input, shape index: {}]   ;;  %s4801_s5 = inlined_call_operand.hbm [shape: f32[3,16,32], index: 5, kind: input, shape index: {}]   ;;  %s4802_s6 = inlined_call_operand.hbm [shape: f32[16,32], index: 6, kind: output, shape index: {}]  }
   0x1   :  { %12 = vsyncpa [#allocation6], 0 }
   0x2   :  { %13 = vsyncpa [#allocation9], 0 }
   0x3   :  { %14 = vsyncpa [#allocation4], 0  ;;  %s4173_s21 = smov [#allocation5]  }
   0x4   :  { %s36_s22 = sshll.u32 %s4173_s21, 4  ;;  %s37_s22 = int_to_ptr.vmem [resolvable:$true] %s36_s22 }
   0x5   :  { %s4073_s23 = scalar_lea.vmem %s37_s22, 1024  ;;  %p4078_p1 = scmp.lt.s32.totalorder %s37_s22, %s37_s22 }
   0x6   :  { %p4074_p0 = scmp.ne.s32.totalorder %s37_s22, %s4073_s23  ;;  %p4079_p2 = scmp.lt.s32.totalorder %s4073_s23, %s4073_s23 }
   0x8   :  { %p4080_p3 = por %p4079_p2, %p4078_p1 }
   0xa   :  { %p4081_p4 = pnand %p4080_p3, %p4074_p0 }
   0xc   :  { %4084 = shalt.err (!%p4081_p4)
}
   0xd   :  { %s4174_s24 = smov 64   ;;  %s4175_s25 = smov 4  }
   0xe   :  { %42 = dma.hbm_to_vmem [thread:$0]  %s4799_s3, 1024, %s37_s22, [#allocation6], %s4174_s24, %s4174_s24, %s4175_s25  }
   0xf   :  { %s4176_s28 = smov [#allocation2]  }
  0x10   :  { %s24_s29 = sshll.u32 %s4176_s28, 4  ;;  %s25_s29 = int_to_ptr.vmem [resolvable:$true] %s24_s29 }
  0x11   :  { %s4093_s30 = scalar_lea.vmem %s25_s29, 512  ;;  %p4098_p6 = scmp.lt.s32.totalorder %s25_s29, %s25_s29 }
  0x12   :  { %p4094_p5 = scmp.ne.s32.totalorder %s25_s29, %s4093_s30  ;;  %p4099_p7 = scmp.lt.s32.totalorder %s4093_s30, %s4093_s30 }
  0x14   :  { %p4100_p8 = por %p4099_p7, %p4098_p6 }
  0x16   :  { %p4101_p9 = pnand %p4100_p8, %p4094_p5 }
  0x18   :  { %4104 = shalt.err (!%p4101_p9)
}
  0x19   :  { %s4177_s7 = smov 128   ;;  %s4178_s8 = smov 8  }
  0x1a   :  { %30 = dma.hbm_to_vmem [thread:$0]  %s4798_s2, 512, %s25_s29, [#allocation3], %s4177_s7, %s4177_s7, %s4178_s8  }
  0x1b   :  { %s4179_s3 = smov [#allocation7]   ;;  %s4180_s12 = smov [#allocation8]  }
  0x1c   :  { %s48_s11 = sshll.u32 %s4179_s3, 4  ;;  %s60_s13 = sshll.u32 %s4180_s12, 4  ;;  %s49_s11 = int_to_ptr.vmem [resolvable:$true] %s48_s11  ;;  %s61_s13 = int_to_ptr.vmem [resolvable:$true] %s60_s13 }
  0x1d   :  { %s4113_s14 = scalar_lea.vmem %s49_s11, 2048  ;;  %p4118_p11 = scmp.lt.s32.totalorder %s49_s11, %s49_s11 }
  0x1e   :  { %p4114_p10 = scmp.ne.s32.totalorder %s49_s11, %s4113_s14  ;;  %p4119_p12 = scmp.lt.s32.totalorder %s4113_s14, %s4113_s14 }
  0x20   :  { %p4120_p13 = por %p4119_p12, %p4118_p11 }
  0x22   :  { %p4121_p0 = pnand %p4120_p13, %p4114_p10 }
  0x24   :  { %4124 = shalt.err (!%p4121_p0)
}
  0x25   :  { %54 = dma.hbm_to_vmem [thread:$0]  %s4800_s4, 2048, %s49_s11, [#allocation6], %s4174_s24, %s4174_s24, %s4175_s25  }
  0x26   :  { %s4133_s2 = scalar_lea.vmem %s61_s13, 768  ;;  %p4138_p2 = scmp.lt.s32.totalorder %s61_s13, %s61_s13 }
  0x27   :  { %p4134_p1 = scmp.ne.s32.totalorder %s61_s13, %s4133_s2  ;;  %p4139_p3 = scmp.lt.s32.totalorder %s4133_s2, %s4133_s2 }
  0x29   :  { %p4140_p4 = por %p4139_p3, %p4138_p2 }
  0x2b   :  { %p4141_p5 = pnand %p4140_p4, %p4134_p1 }
  0x2d   :  { %4144 = shalt.err (!%p4141_p5)
}
  0x2e   :  { %66 = dma.hbm_to_vmem [thread:$0]  %s4801_s5, 768, %s61_s13, [#allocation9], %s4177_s7, %s4177_s7, %s4178_s8  }
  0x2f   :  { %4165 = dma.done.wait [#allocation3], 512  }
  0x30   :  { %4166 = vsyncadd [#allocation3], 4294966784 }
  0x31   :  { %4167 = dma.done.wait [#allocation6], 3072  }
  0x32   :  { %4168 = vsyncadd [#allocation6], 4294964224 }
  0x33   :  { %4169 = dma.done.wait [#allocation9], 768  }
  0x34   :  { %4170 = vsyncadd [#allocation9], 4294966528  ;;  %v177_v0 = vlaneseq  ;;  %v4181_v1 = vmov 0.0   ;;  %vm4182_vm0 = vmmov 0   ;;  %v3877_v4 = vld [vmem:[#allocation5 + $0x8] sm:$0xff]   ;;  %v3878_v5 = vld [vmem:[#allocation5] sm:$0xff]  }
  0x35   :  { %3489 = vmatprep.subr.bf16.mxu0 %v4181_v1  ;;  %3493 = vmatprep.mubr.msk.bf16.mxu0 %vm4182_vm0, %v4181_v1  ;;  %v4270_v6 = vld [vmem:[%s4796_s0] sm:$0xff]  ;;  %v4275_v7 = vld [vmem:[%s4796_s0 + $0x8] sm:$0xff]  ;;  %vm132_vm1 = vcmask 261120   ;;  %s4183_s21 = smov 32   ;;  %s4184_s0 = smov 88   ;;  %vm209_vm2 = vcmask 64512  }
  0x36   :  { %v4259_v2 = vshrl.u32 %v177_v0, 7  ;;  %3497 = vmatprep.subr.bf16.mxu1 %v4181_v1  ;;  %3499 = vmatprep.mubr.msk.bf16.mxu1 %vm4182_vm0, %v4181_v1  ;;  %v4277_v8 = vld [vmem:[#allocation8] sm:$0xff]  ;;  %v119_v10 = vpack.c.bf16 %v4275_v7, %v4270_v6  ;;  %s4185_s22 = smov 96   ;;  %s4186_s23 = smov 80   ;;  %v85_v46 = vld [vmem:[#allocation2 + $0x8] sm:$0xff]  ;;  %vm261_vm3 = vcmask 130048  }
  0x37   :  { %3490 = vmatpush3.bf16.msra.mxu0 %v3877_v4  ;;  %s4187_s25 = smov 120   ;;  %s4188_s26 = smov 72   ;;  %v84_v42 = vld [vmem:[#allocation2] sm:$0xff]  ;;  %vm689_vm4 = vcmask 195584  }
  0x38   :  { %v4265_v3 = vsub.s32 1, %v4259_v2  ;;  %3491 = vmatprep.subr.bf16.mxu0 %v4181_v1  ;;  %v4290_v12 = vsub.s32 0, %v4259_v2  ;;  %v4299_v24 = vsub.s32 2, %v4259_v2  ;;  %s4189_s27 = smov 112   ;;  %s4190_s28 = smov 104  }
  0x39   :  { %s4191_s29 = smov 56   ;;  %s4192_s30 = smov 40  }
  0x3a   :  { %v186_v9 = vrot.slane %v4277_v8, %v4265_v3  ;;  %v180_v16 = vrot.slane %v4277_v8, %v4290_v12  ;;  %v196_v25 = vrot.slane %v4277_v8, %v4299_v24  ;;  %s4193_s9 = smov 48   ;;  %s4194_s10 = smov 16  }
  0x3b   :  { %3492 = vmatpush3.bf16.msra.mxu0 %v3878_v5  ;;  %s4195_s3 = smov 24  }
  0x3c   :  { %188 = vrot.lane.b32.xlu0 %v186_v9, %s4183_s21  ;;  %3503 = vmatprep.subr.bf16.mxu0 %v4181_v1 }
  0x3e   :  { %3494 = vmatmul.mubr.msk.bf16.vlgmr.msra.gmra.mxu0 %vm132_vm1, %v119_v10 }
  0x3f   :  { %3505 = vmatprep.mubr.msk.bf16.mxu0 %vm4182_vm0, %v4181_v1 }
  0xae   :  { %v189_v13 = vpop.permute.xlu0 %188 }
  0xfe   :  { %v170_v11 = vpop.f32.mrf.mxu0 }
  0xff   :  { %v191_v17 = vadd.f32 %v189_v13, %v170_v11  ;;  %v181_v22 = vadd.f32 %v180_v16, %v170_v11 }
 0x100   :  { %v3495_v14 = vpop.f32.mrf.mxu0 }
 0x102   :  { %v173_v15 = vpop.f32.mrf.mxu0 }
 0x103   :  { %v192_v18 = vadd.f32 %v189_v13, %v173_v15  ;;  %v182_v20 = vadd.f32 %v180_v16, %v173_v15 }
 0x104   :  { %v3496_v19 = vpop.f32.mrf.mxu0 }
 0x105   :  { %v204_v21 = vpack.c.bf16 %v192_v18, %v191_v17  ;;  %v203_v23 = vpack.c.bf16 %v182_v20, %v181_v22 }
 0x107   :  { %324 = vrot.lane.b32.xlu1 %v204_v21, %s4184_s0  ;;  %207 = vrot.lane.b32.xlu0 %v204_v21, %s4185_s22 }
 0x10b   :  { %437 = vrot.lane.b32.xlu0 %v204_v21, %s4186_s23  ;;  %322 = vrot.lane.b32.xlu1 %v203_v23, %s4187_s25 }
 0x10f   :  { %550 = vrot.lane.b32.xlu0 %v204_v21, %s4188_s26  ;;  %435 = vrot.lane.b32.xlu1 %v203_v23, %s4189_s27 }
 0x113   :  { %198 = vrot.lane.b32.xlu0 %v196_v25, %s4174_s24  ;;  %548 = vrot.lane.b32.xlu1 %v203_v23, %s4190_s28 }
 0x179   :  { %v208_v26 = vpop.permute.xlu0 %207  ;;  %v325_v29 = vpop.permute.xlu1 %324 }
 0x17a   :  { %v214_v27 = vsel %vm209_vm2, %v208_v26, 0  ;;  %v330_v31 = vsel %vm209_vm2, %v325_v29, 0 }
 0x17b   :  { %3498 = vmatpush3.bf16.xpose.msra.mxu1 %v214_v27 }
 0x17c   :  { %3509 = vmatprep.subr.bf16.mxu1 %v4181_v1 }
 0x17d   :  { %v438_v28 = vpop.permute.xlu0 %437  ;;  %v323_v36 = vpop.permute.xlu1 %322 }
 0x17e   :  { %v443_v37 = vsel %vm209_vm2, %v438_v28, 0 }
 0x181   :  { %v551_v30 = vpop.permute.xlu0 %550  ;;  %v436_v38 = vpop.permute.xlu1 %435 }
 0x182   :  { %3500 = vmatmul.mubr.msk.bf16.vlgmr.msra.gmra.mxu1 %vm209_vm2, %v203_v23  ;;  %v556_v39 = vsel %vm209_vm2, %v551_v30, 0 }
 0x183   :  { %3510 = vmatpush3.bf16.xpose.msra.mxu1 %v330_v31  ;;  %3511 = vmatprep.mubr.msk.bf16.mxu1 %vm4182_vm0, %v4181_v1 }
 0x184   :  { %3521 = vmatprep.subr.bf16.mxu1 %v4181_v1 }
 0x185   :  { %v199_v32 = vpop.permute.xlu0 %198  ;;  %v549_v40 = vpop.permute.xlu1 %548 }
 0x186   :  { %v201_v33 = vadd.f32 %v199_v32, %v170_v11  ;;  %v202_v34 = vadd.f32 %v199_v32, %v173_v15 }
 0x188   :  { %v205_v35 = vpack.c.bf16 %v202_v34, %v201_v33 }
 0x18a   :  { %386 = vrot.lane.b32.xlu0 %v205_v35, %s4191_s29  ;;  %272 = vrot.lane.b32.xlu1 %v205_v35, %s4174_s24 }
 0x18b   :  { %3512 = vmatmul.mubr.msk.bf16.vlgmr.msra.gmra.mxu1 %vm209_vm2, %v323_v36 }
 0x18c   :  { %3522 = vmatpush3.bf16.xpose.msra.mxu1 %v443_v37  ;;  %3523 = vmatprep.mubr.msk.bf16.mxu1 %vm4182_vm0, %v4181_v1 }
 0x18d   :  { %3533 = vmatprep.subr.bf16.mxu1 %v4181_v1 }
 0x18e   :  { %612 = vrot.lane.b32.xlu0 %v205_v35, %s4192_s30  ;;  %499 = vrot.lane.b32.xlu1 %v205_v35, %s4193_s9 }
 0x193   :  { %3524 = vmatmul.mubr.msk.bf16.vlgmr.msra.gmra.mxu1 %vm209_vm2, %v436_v38 }
 0x194   :  { %3534 = vmatpush3.bf16.xpose.msra.mxu1 %v556_v39  ;;  %3535 = vmatprep.mubr.msk.bf16.mxu1 %vm4182_vm0, %v4181_v1 }
 0x195   :  { %3545 = vmatprep.subr.bf16.mxu1 %v4181_v1 }
 0x19b   :  { %3536 = vmatmul.mubr.msk.bf16.vlgmr.msra.gmra.mxu1 %vm209_vm2, %v549_v40 }
 0x19c   :  { %3549 = vmatprep.mubr.msk.bf16.mxu1 %vm4182_vm0, %v4181_v1 }
 0x1fc   :  { %v273_v41 = vpop.permute.xlu1 %272  ;;  %v387_v14 = vpop.permute.xlu0 %386 }
 0x1fd   :  { %3504 = vmatpush3.bf16.msra.mxu0 %v273_v41 }
 0x1fe   :  { %3515 = vmatprep.subr.bf16.mxu0 %v4181_v1 }
 0x200   :  { %v500_v29 = vpop.permute.xlu1 %499  ;;  %v613_v35 = vpop.permute.xlu0 %612 }
 0x242   :  { %v250_v43 = vpop.f32.mrf.mxu1 }
 0x243   :  { %v251_v44 = vadd.f32 %v250_v43, %v84_v42 }
 0x244   :  { %v3501_v45 = vpop.f32.mrf.mxu1 }
 0x245   :  { %v257_v47 = vmul.f32 1.442695, %v251_v44 }
 0x246   :  { %v253_v48 = vpop.f32.mrf.mxu1 }
 0x247   :  { %v254_v49 = vadd.f32 %v253_v48, %v85_v46  ;;  %3902 = vpow2.f32 %v257_v47 }
 0x248   :  { %v3502_v50 = vpop.f32.mrf.mxu1 }
 0x249   :  { %v259_v51 = vmul.f32 1.442695, %v254_v49 }
 0x24b   :  { %3904 = vpow2.f32 %v259_v51  ;;  %v366_v52 = vpop.f32.mrf.mxu1 }
 0x24c   :  { %v367_v53 = vadd.f32 %v366_v52, %v84_v42 }
 0x24d   :  { %v3513_v54 = vpop.f32.mrf.mxu1 }
 0x24e   :  { %v373_v55 = vmul.f32 1.442695, %v367_v53 }
 0x24f   :  { %v369_v56 = vpop.f32.mrf.mxu1 }
 0x250   :  { %3906 = vpow2.f32 %v373_v55  ;;  %v370_v57 = vadd.f32 %v369_v56, %v85_v46 }
 0x251   :  { %v3514_v58 = vpop.f32.mrf.mxu1 }
 0x252   :  { %v375_v59 = vmul.f32 1.442695, %v370_v57 }
 0x253   :  { %v479_v60 = vpop.f32.mrf.mxu1 }
 0x254   :  { %3908 = vpow2.f32 %v375_v59  ;;  %v480_v61 = vadd.f32 %v479_v60, %v84_v42  ;;  %v3903_v0 = vpop.eup %3902 }
 0x255   :  { %v3525_v62 = vpop.f32.mrf.mxu1  ;;  %v262_v39 = vsel %vm261_vm3, %v3903_v0, 0.0 }
 0x256   :  { %v486_v63 = vmul.f32 1.442695, %v480_v61  ;;  %v3879_v61 = vld [vmem:[#allocation7 + $0x8] sm:$0xff]  }
 0x257   :  { %v482_v4 = vpop.f32.mrf.mxu1  ;;  %3546 = vmatpush3.bf16.msra.mxu1 %v3879_v61  ;;  %v3882_v61 = vld [vmem:[#allocation5 + $0x10] sm:$0xff]  }
 0x258   :  { %v3905_v5 = vpop.eup %3904  ;;  %3910 = vpow2.f32 %v486_v63  ;;  %v483_v9 = vadd.f32 %v482_v4, %v85_v46  ;;  %3547 = vmatprep.subr.bf16.mxu1 %v4181_v1 }
 0x259   :  { %v3526_v10 = vpop.f32.mrf.mxu1  ;;  %v270_v11 = vpack.c.bf16 %v3905_v5, %v3903_v0 }
 0x25a   :  { %v488_v13 = vmul.f32 1.442695, %v483_v9 }
 0x25b   :  { %v592_v15 = vpop.f32.mrf.mxu1  ;;  %3506 = vmatmul.mubr.msk.bf16.vlgmr.msra.gmra.mxu0 %vm261_vm3, %v270_v11 }
 0x25c   :  { %3912 = vpow2.f32 %v488_v13  ;;  %v593_v16 = vadd.f32 %v592_v15, %v84_v42  ;;  %3516 = vmatpush3.bf16.msra.mxu0 %v387_v14  ;;  %3517 = vmatprep.mubr.msk.bf16.mxu0 %vm4182_vm0, %v4181_v1  ;;  %v265_v42 = vsel %vm261_vm3, %v3905_v5, 0.0  ;;  %v3880_v13 = vld [vmem:[#allocation7] sm:$0xff]  }
 0x25d   :  { %v3907_v17 = vpop.eup %3906  ;;  %v3537_v18 = vpop.f32.mrf.mxu1  ;;  %3527 = vmatprep.subr.bf16.mxu0 %v4181_v1  ;;  %3548 = vmatpush3.bf16.msra.mxu1 %v3880_v13 }
 0x25e   :  { %v599_v19 = vmul.f32 1.442695, %v593_v16  ;;  %v377_v20 = vsel %vm261_vm3, %v3907_v17, 0.0  ;;  %3561 = vmatprep.subr.bf16.mxu1 %v4181_v1 }
 0x25f   :  { %378 = vadd.xlane.f32.xlu1 %v377_v20  ;;  %v595_v21 = vpop.f32.mrf.mxu1 }
 0x260   :  { %3914 = vpow2.f32 %v599_v19  ;;  %v596_v22 = vadd.f32 %v595_v21, %v85_v46 }
 0x261   :  { %v3909_v23 = vpop.eup %3908  ;;  %v3538_v25 = vpop.f32.mrf.mxu1 }
 0x262   :  { %v601_v26 = vmul.f32 1.442695, %v596_v22  ;;  %v380_v27 = vsel %vm261_vm3, %v3909_v23, 0.0  ;;  %v385_v28 = vpack.c.bf16 %v3909_v23, %v3907_v17 }
 0x263   :  { %381 = vadd.xlane.f32.xlu0 %v380_v27 }
 0x264   :  { %3916 = vpow2.f32 %v601_v26  ;;  %3518 = vmatmul.mubr.msk.bf16.vlgmr.msra.gmra.mxu0 %vm261_vm3, %v385_v28 }
 0x265   :  { %v3911_v30 = vpop.eup %3910  ;;  %3528 = vmatpush3.bf16.msra.mxu0 %v500_v29  ;;  %3529 = vmatprep.mubr.msk.bf16.mxu0 %vm4182_vm0, %v4181_v1 }
 0x266   :  { %v490_v31 = vsel %vm261_vm3, %v3911_v30, 0.0  ;;  %3539 = vmatprep.subr.bf16.mxu0 %v4181_v1 }
 0x267   :  { %491 = vadd.xlane.f32.xlu0 %v490_v31 }
 0x269   :  { %v3913_v32 = vpop.eup %3912 }
 0x26a   :  { %v493_v33 = vsel %vm261_vm3, %v3913_v32, 0.0  ;;  %v498_v34 = vpack.c.bf16 %v3913_v32, %v3911_v30 }
 0x26b   :  { %494 = vadd.xlane.f32.xlu1 %v493_v33 }
 0x26c   :  { %3530 = vmatmul.mubr.msk.bf16.vlgmr.msra.gmra.mxu0 %vm261_vm3, %v498_v34 }
 0x26d   :  { %v3915_v36 = vpop.eup %3914  ;;  %3540 = vmatpush3.bf16.msra.mxu0 %v613_v35  ;;  %3541 = vmatprep.mubr.msk.bf16.mxu0 %vm4182_vm0, %v4181_v1 }
 0x26e   :  { %v603_v37 = vsel %vm261_vm3, %v3915_v36, 0.0  ;;  %3553 = vmatprep.subr.bf16.mxu0 %v4181_v1 }
 0x26f   :  { %604 = vadd.xlane.f32.xlu0 %v603_v37 }
 0x271   :  { %v3917_v38 = vpop.eup %3916 }
 0x272   :  { %v606_v40 = vsel %vm261_vm3, %v3917_v38, 0.0  ;;  %v611_v41 = vpack.c.bf16 %v3917_v38, %v3915_v36 }
 0x273   :  { %263 = vadd.xlane.f32.xlu0 %v262_v39  ;;  %607 = vadd.xlane.f32.xlu1 %v606_v40 }
 0x274   :  { %3542 = vmatmul.mubr.msk.bf16.vlgmr.msra.gmra.mxu0 %vm261_vm3, %v611_v41 }
 0x275   :  { %3557 = vmatprep.mubr.msk.bf16.mxu0 %vm4182_vm0, %v4181_v1 }
 0x277   :  { %266 = vadd.xlane.f32.xlu1 %v265_v42 }
 0x2e8   :  { %v379_v43 = vpop.xlane.xlu1 %378 }
 0x2e9   :  { %3918 = vrcp.f32 %v379_v43 }
 0x2ec   :  { %v382_v44 = vpop.xlane.xlu0 %381 }
 0x2ed   :  { %3920 = vrcp.f32 %v382_v44 }
 0x2f0   :  { %v492_v47 = vpop.xlane.xlu0 %491 }
 0x2f1   :  { %3922 = vrcp.f32 %v492_v47 }
 0x2f4   :  { %v495_v49 = vpop.xlane.xlu1 %494 }
 0x2f5   :  { %3924 = vrcp.f32 %v495_v49 }
 0x2f6   :  { %v3919_v53 = vpop.eup %3918 }
 0x2f8   :  { %v605_v54 = vpop.xlane.xlu0 %604 }
 0x2f9   :  { %3926 = vrcp.f32 %v605_v54 }
 0x2fa   :  { %v3921_v55 = vpop.eup %3920 }
 0x2fc   :  { %v608_v56 = vpop.xlane.xlu1 %607  ;;  %v264_v26 = vpop.xlane.xlu0 %263 }
 0x2fd   :  { %3928 = vrcp.f32 %v608_v56 }
 0x2fe   :  { %v3923_v4 = vpop.eup %3922  ;;  %3930 = vrcp.f32 %v264_v26 }
 0x300   :  { %v267_v27 = vpop.xlane.xlu1 %266 }
 0x301   :  { %3932 = vrcp.f32 %v267_v27  ;;  %v4397_v27 = vsub.s32 3, %v4259_v2 }
 0x302   :  { %v3925_v5 = vpop.eup %3924 }
 0x306   :  { %v3927_v18 = vpop.eup %3926 }
 0x30a   :  { %v3929_v19 = vpop.eup %3928 }
 0x30b   :  { %v3931_v30 = vpop.eup %3930 }
 0x30e   :  { %v3933_v33 = vpop.eup %3932 }
 0x31b   :  { %v312_v45 = vpop.f32.mrf.mxu0 }
 0x31c   :  { %v319_v36 = vmul.f32 %v3931_v30, %v312_v45  ;;  %v4370_v45 = vsub.s32 6, %v4259_v2 }
 0x31d   :  { %v3507_v46 = vpop.f32.mrf.mxu0 }
 0x31f   :  { %v315_v48 = vpop.f32.mrf.mxu0 }
 0x320   :  { %v320_v37 = vmul.f32 %v3933_v33, %v315_v48  ;;  %v696_v48 = vrot.slane %v4277_v8, %v4370_v45 }
 0x321   :  { %v3508_v50 = vpop.f32.mrf.mxu0 }
 0x324   :  { %v426_v51 = vpop.f32.mrf.mxu0 }
 0x325   :  { %v433_v58 = vmul.f32 %v3919_v53, %v426_v51 }
 0x326   :  { %v3519_v52 = vpop.f32.mrf.mxu0 }
 0x328   :  { %v429_v57 = vpop.f32.mrf.mxu0 }
 0x329   :  { %v434_v59 = vmul.f32 %v3921_v55, %v429_v57 }
 0x32a   :  { %v3520_v60 = vpop.f32.mrf.mxu0 }
 0x32b   :  { %v3817_v62 = vpack.i.bf16 %v434_v59, %v433_v58  ;;  %v3881_v60 = vld [vmem:[#allocation5 + $0x18] sm:$0xff]  }
 0x32c   :  { %v539_v63 = vpop.f32.mrf.mxu0  ;;  %3554 = vmatpush3.bf16.msra.mxu0 %v3881_v60 }
 0x32d   :  { %3818 = vrot.lane.b32.xlu0 %v3817_v62, %s4178_s8  ;;  %v546_v10 = vmul.f32 %v3923_v4, %v539_v63  ;;  %3555 = vmatprep.subr.bf16.mxu0 %v4181_v1 }
 0x32e   :  { %v3531_v0 = vpop.f32.mrf.mxu0 }
 0x330   :  { %v542_v9 = vpop.f32.mrf.mxu0  ;;  %3556 = vmatpush3.bf16.msra.mxu0 %v3882_v61 }
 0x331   :  { %v547_v11 = vmul.f32 %v3925_v5, %v542_v9  ;;  %3569 = vmatprep.subr.bf16.mxu0 %v4181_v1 }
 0x332   :  { %v3532_v14 = vpop.f32.mrf.mxu0 }
 0x333   :  { %v3822_v15 = vpack.i.bf16 %v547_v11, %v546_v10 }
 0x334   :  { %v652_v16 = vpop.f32.mrf.mxu0 }
 0x335   :  { %3823 = vrot.lane.b32.xlu1 %v3822_v15, %s4194_s10  ;;  %v659_v21 = vmul.f32 %v3927_v18, %v652_v16 }
 0x336   :  { %v3543_v17 = vpop.f32.mrf.mxu0 }
 0x338   :  { %v655_v20 = vpop.f32.mrf.mxu0 }
 0x339   :  { %v660_v22 = vmul.f32 %v3929_v19, %v655_v20 }
 0x33a   :  { %v3544_v23 = vpop.f32.mrf.mxu0 }
 0x33b   :  { %v3827_v25 = vpack.i.bf16 %v660_v22, %v659_v21  ;;  %v3883_v21 = vld [vmem:[%s4797_s1] sm:$0xff]   ;;  %v4392_v22 = vld [vmem:[#allocation8 + $0x8] sm:$0xff] }
 0x33d   :  { %3828 = vrot.lane.b32.xlu1 %v3827_v25, %s4195_s3  ;;  %v785_v25 = vrot.slane %v4392_v22, %v4299_v24 }
 0x39f   :  { %v3819_v28 = vpop.permute.xlu0 %3818 }
 0x3a0   :  { %v3821_v31 = vunpack.i.h.bf16 %v3819_v28  ;;  %v3820_v32 = vunpack.i.l.bf16 %v3819_v28 }
 0x3a2   :  { %v686_v39 = vsel %vm209_vm2, %v320_v37, %v3821_v31  ;;  %v685_v40 = vsel %vm209_vm2, %v319_v36, %v3820_v32  ;;  %v791_v31 = vrot.slane %v4392_v22, %v4397_v27  ;;  %v4411_v36 = vsub.s32 4, %v4259_v2 }
 0x3a4   :  { %v913_v37 = vrot.slane %v4277_v8, %v4411_v36 }
 0x3a7   :  { %v3824_v29 = vpop.permute.xlu1 %3823 }
 0x3a8   :  { %v3826_v34 = vunpack.i.h.bf16 %v3824_v29  ;;  %v3825_v35 = vunpack.i.l.bf16 %v3824_v29 }
 0x3aa   :  { %v688_v43 = vsel %vm261_vm3, %v686_v39, %v3826_v34  ;;  %v687_v44 = vsel %vm261_vm3, %v685_v40, %v3825_v35 }
 0x3af   :  { %v3829_v38 = vpop.permute.xlu1 %3828 }
 0x3b0   :  { %v3831_v41 = vunpack.i.h.bf16 %v3829_v38  ;;  %v3830_v42 = vunpack.i.l.bf16 %v3829_v38 }
 0x3b2   :  { %v691_v46 = vsel %vm689_vm4, %v688_v43, %v3831_v41  ;;  %v690_v47 = vsel %vm689_vm4, %v687_v44, %v3830_v42 }
 0x3b3   :  { %v692_v49 = vpack.c.bf16 %v691_v46, %v690_v47  ;;  %v4418_v46 = vsub.s32 5, %v4259_v2 }
 0x3b5   :  { %3550 = vmatmul.mubr.msk.bf16.vlgmr.msra.gmra.mxu1 %vm132_vm1, %v692_v49  ;;  %v919_v49 = vrot.slane %v4277_v8, %v4418_v46 }
 0x3b6   :  { %3565 = vmatprep.mubr.msk.bf16.mxu1 %vm4182_vm0, %v4181_v1 }
 0x475   :  { %v746_v50 = vpop.f32.mrf.mxu1 }
 0x476   :  { %v747_v51 = vadd.f32 %v746_v50, %v696_v48  ;;  %v798_v50 = vrot.slane %v4277_v8, %v4397_v27 }
 0x477   :  { %v3551_v52 = vpop.f32.mrf.mxu1 }
 0x478   :  { %v753_v53 = vadd.f32 %v747_v51, %v4270_v6 }
 0x479   :  { %v749_v54 = vpop.f32.mrf.mxu1 }
 0x47a   :  { %v750_v55 = vadd.f32 %v749_v54, %v696_v48  ;;  %v755_v56 = vsel %vm132_vm1, %v753_v53, 0.0 }
 0x47b   :  { %756 = vadd.xlane.f32.xlu0 %v755_v56  ;;  %v3552_v57 = vpop.f32.mrf.mxu1 }
 0x47c   :  { %v754_v58 = vadd.f32 %v750_v55, %v4275_v7 }
 0x47e   :  { %v758_v59 = vsel %vm132_vm1, %v754_v58, 0.0 }
 0x47f   :  { %759 = vadd.xlane.f32.xlu1 %v758_v59 }
 0x490   :  { %862 = vrot.lane.b32.xlu1 %v3881_v60, %s4185_s22 }
 0x504   :  { %v757_v6 = vpop.xlane.xlu0 %756 }
 0x505   :  { %v762_v62 = vmul.f32 0.03125, %v757_v6 }
 0x507   :  { %v764_v63 = vsub.f32 %v753_v53, %v762_v62 }
 0x508   :  { %v760_v0 = vpop.xlane.xlu1 %759 }
 0x509   :  { %v763_v4 = vmul.f32 0.03125, %v760_v0  ;;  %v766_v5 = vmul.f32 %v764_v63, %v764_v63 }
 0x50b   :  { %v765_v7 = vsub.f32 %v754_v58, %v763_v4  ;;  %v768_v9 = vsel %vm132_vm1, %v766_v5, 0.0 }
 0x50c   :  { %769 = vadd.xlane.f32.xlu0 %v768_v9  ;;  %v863_v13 = vpop.permute.xlu1 %862 }
 0x50d   :  { %v767_v10 = vmul.f32 %v765_v7, %v765_v7  ;;  %3562 = vmatpush3.bf16.msra.mxu1 %v863_v13  ;;  %v88_v13 = vld [vmem:[#allocation2 + $0x18] sm:$0xff] }
 0x50e   :  { %3563 = vmatprep.subr.bf16.mxu1 %v4181_v1 }
 0x50f   :  { %v771_v11 = vsel %vm132_vm1, %v767_v10, 0.0 }
 0x510   :  { %772 = vadd.xlane.f32.xlu0 %v771_v11 }
 0x526   :  { %860 = vrot.lane.b32.xlu0 %v3882_v61, %s4185_s22 }
 0x595   :  { %v770_v14 = vpop.xlane.xlu0 %769 }
 0x596   :  { %v774_v15 = vmul.f32 0.03125, %v770_v14 }
 0x598   :  { %v776_v16 = vadd.f32 1e-05, %v774_v15  ;;  %v87_v15 = vld [vmem:[#allocation2 + $0x10] sm:$0xff] }
 0x599   :  { %v773_v17 = vpop.xlane.xlu0 %772 }
 0x59a   :  { %3934 = vrsqrt.f32 %v776_v16  ;;  %v775_v18 = vmul.f32 0.03125, %v773_v17 }
 0x59c   :  { %v777_v19 = vadd.f32 1e-05, %v775_v18 }
 0x59d   :  { %v861_v20 = vpop.permute.xlu0 %860 }
 0x59e   :  { %3936 = vrsqrt.f32 %v777_v19  ;;  %3564 = vmatpush3.bf16.msra.mxu1 %v861_v20 }
 0x59f   :  { %3575 = vmatprep.subr.bf16.mxu1 %v4181_v1 }
 0x5a1   :  { %3566 = vmatmul.mubr.msk.bf16.vlgmr.msra.gmra.mxu1 %vm132_vm1, %v3883_v21 }
 0x5a2   :  { %3577 = vmatprep.mubr.msk.bf16.mxu1 %vm4182_vm0, %v4181_v1 }
 0x5a7   :  { %v3935_v23 = vpop.eup %3934 }
 0x5a8   :  { %v780_v26 = vmul.f32 %v3935_v23, %v764_v63 }
 0x5aa   :  { %v786_v30 = vmul.f32 %v785_v25, %v780_v26 }
 0x5ab   :  { %v3937_v28 = vpop.eup %3936 }
 0x5ac   :  { %v781_v29 = vmul.f32 %v3937_v28, %v765_v7  ;;  %v4401_v33 = vadd.f32 %v791_v31, %v786_v30 }
 0x5ae   :  { %v787_v32 = vmul.f32 %v785_v25, %v781_v29 }
 0x5b0   :  { %v4403_v34 = vadd.f32 %v791_v31, %v787_v32 }
 0x5b2   :  { %v794_v35 = vpack.c.bf16 %v4403_v34, %v4401_v33 }
 0x5b4   :  { %3558 = vmatmul.mubr.msk.bf16.vlgmr.msra.gmra.mxu0 %vm132_vm1, %v794_v35 }
 0x5b5   :  { %3571 = vmatprep.mubr.msk.bf16.mxu0 %vm4182_vm0, %v4181_v1 }
 0x661   :  { %v903_v38 = vpop.f32.mrf.mxu1 }
 0x662   :  { %v914_v40 = vadd.f32 %v913_v37, %v903_v38 }
 0x663   :  { %v3567_v39 = vpop.f32.mrf.mxu1 }
 0x665   :  { %v906_v41 = vpop.f32.mrf.mxu1 }
 0x666   :  { %v915_v42 = vadd.f32 %v913_v37, %v906_v41 }
 0x667   :  { %v3568_v43 = vpop.f32.mrf.mxu1 }
 0x668   :  { %v927_v44 = vpack.c.bf16 %v915_v42, %v914_v40 }
 0x66a   :  { %1156 = vrot.lane.b32.xlu0 %v927_v44, %s4189_s27  ;;  %1043 = vrot.lane.b32.xlu1 %v927_v44, %s4187_s25  ;;  %v933_v47 = vsel %vm209_vm2, %v927_v44, 0 }
 0x66b   :  { %3570 = vmatpush3.bf16.xpose.msra.mxu0 %v933_v47 }
 0x66c   :  { %3581 = vmatprep.subr.bf16.mxu0 %v4181_v1 }
 0x66e   :  { %1269 = vrot.lane.b32.xlu0 %v927_v44, %s4190_s28 }
 0x672   :  { %921 = vrot.lane.b32.xlu0 %v919_v49, %s4183_s21 }
 0x674   :  { %v848_v48 = vpop.f32.mrf.mxu0 }
 0x675   :  { %v849_v53 = vadd.f32 %v848_v48, %v798_v50 }
 0x676   :  { %v3559_v51 = vpop.f32.mrf.mxu0 }
 0x678   :  { %v851_v52 = vpop.f32.mrf.mxu0 }
 0x679   :  { %v852_v54 = vadd.f32 %v851_v52, %v798_v50 }
 0x67a   :  { %v3560_v55 = vpop.f32.mrf.mxu0 }
 0x67b   :  { %v926_v56 = vpack.c.bf16 %v852_v54, %v849_v53 }
 0x67d   :  { %1040 = vrot.lane.b32.xlu1 %v926_v56, %s4187_s25  ;;  %3572 = vmatmul.mubr.msk.bf16.vlgmr.msra.gmra.mxu0 %vm209_vm2, %v926_v56 }
 0x67e   :  { %3583 = vmatprep.mubr.msk.bf16.mxu0 %vm4182_vm0, %v4181_v1 }
 0x681   :  { %1154 = vrot.lane.b32.xlu1 %v926_v56, %s4189_s27 }
 0x685   :  { %1267 = vrot.lane.b32.xlu1 %v926_v56, %s4190_s28 }
 0x6dc   :  { %v1157_v57 = vpop.permute.xlu0 %1156  ;;  %v1044_v58 = vpop.permute.xlu1 %1043 }
 0x6dd   :  { %v1049_v8 = vsel %vm209_vm2, %v1044_v58, 0  ;;  %v1162_v0 = vsel %vm209_vm2, %v1157_v57, 0 }
 0x6de   :  { %3582 = vmatpush3.bf16.xpose.msra.mxu0 %v1049_v8 }
 0x6df   :  { %3593 = vmatprep.subr.bf16.mxu0 %v4181_v1 }
 0x6e0   :  { %v1270_v59 = vpop.permute.xlu0 %1269 }
 0x6e1   :  { %v1275_v5 = vsel %vm209_vm2, %v1270_v59, 0 }
 0x6e4   :  { %v922_v60 = vpop.permute.xlu0 %921 }
 0x6e5   :  { %v924_v61 = vadd.f32 %v922_v60, %v903_v38  ;;  %v925_v6 = vadd.f32 %v922_v60, %v906_v41 }
 0x6e7   :  { %v928_v62 = vpack.c.bf16 %v925_v6, %v924_v61 }
 0x6e9   :  { %1105 = vrot.lane.b32.xlu0 %v928_v62, %s4184_s0  ;;  %990 = vrot.lane.b32.xlu1 %v928_v62, %s4185_s22 }
 0x6ed   :  { %1331 = vrot.lane.b32.xlu0 %v928_v62, %s4188_s26  ;;  %1218 = vrot.lane.b32.xlu1 %v928_v62, %s4186_s23 }
 0x6ef   :  { %v1041_v63 = vpop.permute.xlu1 %1040 }
 0x6f0   :  { %3584 = vmatmul.mubr.msk.bf16.vlgmr.msra.gmra.mxu0 %vm209_vm2, %v1041_v63 }
 0x6f1   :  { %3594 = vmatpush3.bf16.xpose.msra.mxu0 %v1162_v0  ;;  %3595 = vmatprep.mubr.msk.bf16.mxu0 %vm4182_vm0, %v4181_v1 }
 0x6f2   :  { %3605 = vmatprep.subr.bf16.mxu0 %v4181_v1 }
 0x6f3   :  { %v1155_v4 = vpop.permute.xlu1 %1154 }
 0x6f7   :  { %v1268_v7 = vpop.permute.xlu1 %1267 }
 0x6f8   :  { %3596 = vmatmul.mubr.msk.bf16.vlgmr.msra.gmra.mxu0 %vm209_vm2, %v1155_v4 }
 0x6f9   :  { %3606 = vmatpush3.bf16.xpose.msra.mxu0 %v1275_v5  ;;  %3607 = vmatprep.mubr.msk.bf16.mxu0 %vm4182_vm0, %v4181_v1 }
 0x6fa   :  { %3617 = vmatprep.subr.bf16.mxu0 %v4181_v1 }
 0x700   :  { %3608 = vmatmul.mubr.msk.bf16.vlgmr.msra.gmra.mxu0 %vm209_vm2, %v1268_v7 }
 0x701   :  { %3621 = vmatprep.mubr.msk.bf16.mxu0 %vm4182_vm0, %v4181_v1 }
 0x73d   :  { %v969_v9 = vpop.f32.mrf.mxu0 }
 0x73e   :  { %v970_v17 = vadd.f32 %v969_v9, %v87_v15 }
 0x73f   :  { %v3573_v10 = vpop.f32.mrf.mxu0 }
 0x740   :  { %v976_v19 = vmul.f32 1.442695, %v970_v17 }
 0x741   :  { %v972_v11 = vpop.f32.mrf.mxu0 }
 0x742   :  { %v973_v16 = vadd.f32 %v972_v11, %v88_v13 }
 0x743   :  { %v3574_v14 = vpop.f32.mrf.mxu0 }
 0x744   :  { %v978_v18 = vmul.f32 1.442695, %v973_v16 }
 0x746   :  { %3938 = vpow2.f32 %v978_v18 }
 0x747   :  { %3940 = vpow2.f32 %v976_v19 }
 0x753   :  { %v4453_v20 = vpop.eup %3938 }
 0x754   :  { %v4455_v23 = vpop.eup %3940 }
 0x755   :  { %v988_v25 = vpack.c.bf16 %v4453_v20, %v4455_v23  ;;  %v980_v11 = vsel %vm261_vm3, %v4455_v23, 0.0 }
 0x75b   :  { %v991_v21 = vpop.permute.xlu1 %990  ;;  %v1106_v26 = vpop.permute.xlu0 %1105 }
 0x75c   :  { %3576 = vmatpush3.bf16.msra.mxu1 %v991_v21 }
 0x75d   :  { %3587 = vmatprep.subr.bf16.mxu1 %v4181_v1 }
 0x75f   :  { %3578 = vmatmul.mubr.msk.bf16.vlgmr.msra.gmra.mxu1 %vm261_vm3, %v988_v25  ;;  %v1219_v61 = vpop.permute.xlu1 %1218  ;;  %v1332_v5 = vpop.permute.xlu0 %1331 }
 0x760   :  { %3588 = vmatpush3.bf16.msra.mxu1 %v1106_v26  ;;  %3589 = vmatprep.mubr.msk.bf16.mxu1 %vm4182_vm0, %v4181_v1 }
 0x761   :  { %3599 = vmatprep.subr.bf16.mxu1 %v4181_v1 }
 0x7b0   :  { %v1085_v28 = vpop.f32.mrf.mxu0 }
 0x7b1   :  { %v1086_v29 = vadd.f32 %v1085_v28, %v87_v15 }
 0x7b2   :  { %v3585_v30 = vpop.f32.mrf.mxu0 }
 0x7b3   :  { %v1092_v31 = vmul.f32 1.442695, %v1086_v29 }
 0x7b4   :  { %v1088_v32 = vpop.f32.mrf.mxu0 }
 0x7b5   :  { %3942 = vpow2.f32 %v1092_v31  ;;  %v1089_v35 = vadd.f32 %v1088_v32, %v88_v13 }
 0x7b6   :  { %v3586_v37 = vpop.f32.mrf.mxu0 }
 0x7b7   :  { %v1094_v38 = vmul.f32 1.442695, %v1089_v35 }
 0x7b8   :  { %v1198_v39 = vpop.f32.mrf.mxu0 }
 0x7b9   :  { %3944 = vpow2.f32 %v1094_v38  ;;  %v1199_v40 = vadd.f32 %v1198_v39, %v87_v15 }
 0x7ba   :  { %v3597_v41 = vpop.f32.mrf.mxu0 }
 0x7bb   :  { %v1205_v42 = vmul.f32 1.442695, %v1199_v40  ;;  %v3884_v40 = vld [vmem:[#allocation7 + $0x18] sm:$0xff]  }
 0x7bc   :  { %v1201_v43 = vpop.f32.mrf.mxu0  ;;  %3618 = vmatpush3.bf16.msra.mxu0 %v3884_v40 }
 0x7bd   :  { %3946 = vpow2.f32 %v1205_v42  ;;  %v1202_v44 = vadd.f32 %v1201_v43, %v88_v13  ;;  %3619 = vmatprep.subr.bf16.mxu0 %v4181_v1 }
 0x7be   :  { %v3598_v47 = vpop.f32.mrf.mxu0 }
 0x7bf   :  { %v1207_v49 = vmul.f32 1.442695, %v1202_v44 }
 0x7c0   :  { %v1311_v48 = vpop.f32.mrf.mxu0 }
 0x7c1   :  { %3948 = vpow2.f32 %v1207_v49  ;;  %v1312_v50 = vadd.f32 %v1311_v48, %v87_v15  ;;  %v983_v15 = vsel %vm261_vm3, %v4453_v20, 0.0 }
 0x7c2   :  { %v3943_v51 = vpop.eup %3942  ;;  %v3609_v52 = vpop.f32.mrf.mxu0 }
 0x7c3   :  { %v1318_v53 = vmul.f32 1.442695, %v1312_v50  ;;  %v1096_v54 = vsel %vm261_vm3, %v3943_v51, 0.0 }
 0x7c4   :  { %1097 = vadd.xlane.f32.xlu1 %v1096_v54  ;;  %v1314_v55 = vpop.f32.mrf.mxu0 }
 0x7c5   :  { %3950 = vpow2.f32 %v1318_v53  ;;  %v1315_v56 = vadd.f32 %v1314_v55, %v88_v13 }
 0x7c6   :  { %v3945_v57 = vpop.eup %3944  ;;  %v3610_v58 = vpop.f32.mrf.mxu0 }
 0x7c7   :  { %v1320_v8 = vmul.f32 1.442695, %v1315_v56  ;;  %v1099_v59 = vsel %vm261_vm3, %v3945_v57, 0.0  ;;  %v1104_v60 = vpack.c.bf16 %v3945_v57, %v3943_v51  ;;  %v3885_v51 = vld [vmem:[#allocation7 + $0x10] sm:$0xff]  }
 0x7c8   :  { %1100 = vadd.xlane.f32.xlu0 %v1099_v59  ;;  %3620 = vmatpush3.bf16.msra.mxu0 %v3885_v51 }
 0x7c9   :  { %3952 = vpow2.f32 %v1320_v8  ;;  %3590 = vmatmul.mubr.msk.bf16.vlgmr.msra.gmra.mxu1 %vm261_vm3, %v1104_v60  ;;  %3633 = vmatprep.subr.bf16.mxu0 %v4181_v1 }
 0x7ca   :  { %v3947_v6 = vpop.eup %3946  ;;  %3600 = vmatpush3.bf16.msra.mxu1 %v1219_v61  ;;  %3601 = vmatprep.mubr.msk.bf16.mxu1 %vm4182_vm0, %v4181_v1 }
 0x7cb   :  { %v1209_v62 = vsel %vm261_vm3, %v3947_v6, 0.0  ;;  %3611 = vmatprep.subr.bf16.mxu1 %v4181_v1 }
 0x7cc   :  { %1210 = vadd.xlane.f32.xlu0 %v1209_v62 }
 0x7ce   :  { %v3949_v63 = vpop.eup %3948 }
 0x7cf   :  { %v1212_v0 = vsel %vm261_vm3, %v3949_v63, 0.0  ;;  %v1217_v4 = vpack.c.bf16 %v3949_v63, %v3947_v6 }
 0x7d0   :  { %1213 = vadd.xlane.f32.xlu1 %v1212_v0 }
 0x7d1   :  { %3602 = vmatmul.mubr.msk.bf16.vlgmr.msra.gmra.mxu1 %vm261_vm3, %v1217_v4 }
 0x7d2   :  { %v3951_v7 = vpop.eup %3950  ;;  %3612 = vmatpush3.bf16.msra.mxu1 %v1332_v5  ;;  %3613 = vmatprep.mubr.msk.bf16.mxu1 %vm4182_vm0, %v4181_v1 }
 0x7d3   :  { %v1322_v9 = vsel %vm261_vm3, %v3951_v7, 0.0  ;;  %3625 = vmatprep.subr.bf16.mxu1 %v4181_v1 }
 0x7d4   :  { %1323 = vadd.xlane.f32.xlu0 %v1322_v9 }
 0x7d6   :  { %v3953_v10 = vpop.eup %3952 }
 0x7d7   :  { %v1325_v13 = vsel %vm261_vm3, %v3953_v10, 0.0  ;;  %v1330_v14 = vpack.c.bf16 %v3953_v10, %v3951_v7 }
 0x7d8   :  { %981 = vadd.xlane.f32.xlu0 %v980_v11  ;;  %1326 = vadd.xlane.f32.xlu1 %v1325_v13 }
 0x7d9   :  { %3614 = vmatmul.mubr.msk.bf16.vlgmr.msra.gmra.mxu1 %vm261_vm3, %v1330_v14 }
 0x7da   :  { %3629 = vmatprep.mubr.msk.bf16.mxu1 %vm4182_vm0, %v4181_v1 }
 0x7dc   :  { %984 = vadd.xlane.f32.xlu1 %v983_v15 }
 0x81f   :  { %v4485_v16 = vpop.f32.mrf.mxu1 }
 0x821   :  { %v3579_v17 = vpop.f32.mrf.mxu1 }
 0x823   :  { %v4487_v18 = vpop.f32.mrf.mxu1 }
 0x825   :  { %v3580_v19 = vpop.f32.mrf.mxu1 }
 0x84d   :  { %v1098_v21 = vpop.xlane.xlu1 %1097 }
 0x84e   :  { %3954 = vrcp.f32 %v1098_v21 }
 0x851   :  { %v1101_v23 = vpop.xlane.xlu0 %1100 }
 0x852   :  { %3956 = vrcp.f32 %v1101_v23 }
 0x855   :  { %v1211_v25 = vpop.xlane.xlu0 %1210 }
 0x856   :  { %3958 = vrcp.f32 %v1211_v25 }
 0x859   :  { %v1214_v26 = vpop.xlane.xlu1 %1213 }
 0x85a   :  { %3960 = vrcp.f32 %v1214_v26 }
 0x85b   :  { %v3955_v30 = vpop.eup %3954 }
 0x85d   :  { %v1324_v31 = vpop.xlane.xlu0 %1323 }
 0x85e   :  { %3962 = vrcp.f32 %v1324_v31 }
 0x85f   :  { %v3957_v20 = vpop.eup %3956 }
 0x861   :  { %v1327_v32 = vpop.xlane.xlu1 %1326  ;;  %v982_v6 = vpop.xlane.xlu0 %981 }
 0x862   :  { %3964 = vrcp.f32 %v1327_v32 }
 0x863   :  { %v3959_v44 = vpop.eup %3958  ;;  %3966 = vrcp.f32 %v982_v6  ;;  %v1502_v6 = vrot.slane %v4392_v22, %v4411_v36 }
 0x865   :  { %v985_v62 = vpop.xlane.xlu1 %984 }
 0x866   :  { %3968 = vrcp.f32 %v985_v62 }
 0x867   :  { %v3961_v47 = vpop.eup %3960 }
 0x86b   :  { %v3963_v56 = vpop.eup %3962 }
 0x86f   :  { %v3965_v57 = vpop.eup %3964 }
 0x870   :  { %v3967_v0 = vpop.eup %3966 }
 0x871   :  { %v1037_v13 = vmul.f32 %v3967_v0, %v4485_v16  ;;  %v4506_v16 = vsub.s32 7, %v4259_v2 }
 0x873   :  { %v3969_v5 = vpop.eup %3968 }
 0x874   :  { %v1038_v14 = vmul.f32 %v3969_v5, %v4487_v18  ;;  %v4058_v18 = vld [vmem:[#allocation8] sm:$0xff] }
 0x875   :  { %v1414_v31 = vrot.slane %v4058_v18, %v4506_v16 }
 0x889   :  { %v1145_v28 = vpop.f32.mrf.mxu1 }
 0x88a   :  { %v1152_v37 = vmul.f32 %v3955_v30, %v1145_v28 }
 0x88b   :  { %v3591_v29 = vpop.f32.mrf.mxu1 }
 0x88d   :  { %v1148_v35 = vpop.f32.mrf.mxu1 }
 0x88e   :  { %v1153_v38 = vmul.f32 %v3957_v20, %v1148_v35 }
 0x88f   :  { %v3592_v39 = vpop.f32.mrf.mxu1 }
 0x890   :  { %v3832_v41 = vpack.i.bf16 %v1153_v38, %v1152_v37 }
 0x891   :  { %v1258_v42 = vpop.f32.mrf.mxu1 }
 0x892   :  { %3833 = vrot.lane.b32.xlu0 %v3832_v41, %s4178_s8  ;;  %v1265_v48 = vmul.f32 %v3959_v44, %v1258_v42 }
 0x893   :  { %v3603_v43 = vpop.f32.mrf.mxu1 }
 0x895   :  { %v1261_v49 = vpop.f32.mrf.mxu1 }
 0x896   :  { %v1266_v50 = vmul.f32 %v3961_v47, %v1261_v49 }
 0x897   :  { %v3604_v52 = vpop.f32.mrf.mxu1 }
 0x898   :  { %v3837_v53 = vpack.i.bf16 %v1266_v50, %v1265_v48 }
 0x899   :  { %v1371_v54 = vpop.f32.mrf.mxu1 }
 0x89a   :  { %3838 = vrot.lane.b32.xlu1 %v3837_v53, %s4194_s10  ;;  %v1378_v8 = vmul.f32 %v3963_v56, %v1371_v54  ;;  %v3886_v54 = vld [vmem:[#allocation7 + $0x28] sm:$0xff]  }
 0x89b   :  { %v3615_v55 = vpop.f32.mrf.mxu1  ;;  %3626 = vmatpush3.bf16.msra.mxu1 %v3886_v54  ;;  %v4539_v54 = vld [vmem:[#allocation8 + $0x10] sm:$0xff] }
 0x89c   :  { %3627 = vmatprep.subr.bf16.mxu1 %v4181_v1 }
 0x89d   :  { %v1374_v58 = vpop.f32.mrf.mxu1 }
 0x89e   :  { %v1379_v59 = vmul.f32 %v3965_v57, %v1374_v58 }
 0x89f   :  { %v3616_v60 = vpop.f32.mrf.mxu1 }
 0x8a0   :  { %v3842_v61 = vpack.i.bf16 %v1379_v59, %v1378_v8 }
 0x8a2   :  { %3843 = vrot.lane.b32.xlu1 %v3842_v61, %s4195_s3 }
 0x904   :  { %v3834_v63 = vpop.permute.xlu0 %3833 }
 0x905   :  { %v3836_v7 = vunpack.i.h.bf16 %v3834_v63  ;;  %v3835_v9 = vunpack.i.l.bf16 %v3834_v63 }
 0x907   :  { %v1404_v17 = vsel %vm209_vm2, %v1037_v13, %v3835_v9  ;;  %v1405_v19 = vsel %vm209_vm2, %v1038_v14, %v3836_v7  ;;  %v3889_v13 = vld [vmem:[#allocation7 + $0x30] sm:$0xff]   ;;  %v1515_v14 = vrot.slane %v4392_v22, %v4290_v12 }
 0x90c   :  { %v3839_v4 = vpop.permute.xlu1 %3838 }
 0x90d   :  { %v3841_v10 = vunpack.i.h.bf16 %v3839_v4  ;;  %v3840_v11 = vunpack.i.l.bf16 %v3839_v4  ;;  %v1508_v4 = vrot.slane %v4392_v22, %v4418_v46 }
 0x90f   :  { %v1407_v25 = vsel %vm261_vm3, %v1405_v19, %v3841_v10  ;;  %v1406_v26 = vsel %vm261_vm3, %v1404_v17, %v3840_v11  ;;  %v3888_v11 = vld [vmem:[#allocation7 + $0x38] sm:$0xff]  }
 0x914   :  { %v3844_v15 = vpop.permute.xlu1 %3843 }
 0x915   :  { %v3846_v21 = vunpack.i.h.bf16 %v3844_v15  ;;  %v3845_v23 = vunpack.i.l.bf16 %v3844_v15 }
 0x917   :  { %v1408_v28 = vsel %vm689_vm4, %v1406_v26, %v3845_v23  ;;  %v1409_v29 = vsel %vm689_vm4, %v1407_v25, %v3846_v21 }
 0x918   :  { %v1410_v30 = vpack.c.bf16 %v1409_v29, %v1408_v28 }
 0x91a   :  { %3622 = vmatmul.mubr.msk.bf16.vlgmr.msra.gmra.mxu0 %vm132_vm1, %v1410_v30  ;;  %v1578_v30 = vrot.slane %v4392_v22, %v4265_v3 }
 0x91b   :  { %3637 = vmatprep.mubr.msk.bf16.mxu0 %vm4182_vm0, %v4181_v1  ;;  %3634 = vmatpush3.bf16.msra.mxu0 %v3888_v11 }
 0x91c   :  { %3635 = vmatprep.subr.bf16.mxu0 %v4181_v1 }
 0x91f   :  { %3636 = vmatpush3.bf16.msra.mxu0 %v3889_v13 }
 0x920   :  { %3649 = vmatprep.subr.bf16.mxu0 %v4181_v1 }
 0x9da   :  { %v1464_v20 = vpop.f32.mrf.mxu0 }
 0x9db   :  { %v1465_v32 = vadd.f32 %v1464_v20, %v1414_v31 }
 0x9dc   :  { %v3623_v35 = vpop.f32.mrf.mxu0 }
 0x9dd   :  { %v1471_v37 = vadd.f32 %v1465_v32, %v4401_v33 }
 0x9de   :  { %v1467_v38 = vpop.f32.mrf.mxu0 }
 0x9df   :  { %v1468_v39 = vadd.f32 %v1467_v38, %v1414_v31  ;;  %v1473_v40 = vsel %vm132_vm1, %v1471_v37, 0.0 }
 0x9e0   :  { %1474 = vadd.xlane.f32.xlu0 %v1473_v40  ;;  %v3624_v41 = vpop.f32.mrf.mxu0 }
 0x9e1   :  { %v1472_v42 = vadd.f32 %v1468_v39, %v4403_v34  ;;  %v3887_v34 = vld [vmem:[#allocation7 + $0x20] sm:$0xff]  }
 0x9e2   :  { %3628 = vmatpush3.bf16.msra.mxu1 %v3887_v34  ;;  %v1774_v34 = vrot.slane %v4539_v54, %v4265_v3 }
 0x9e3   :  { %v1476_v43 = vsel %vm132_vm1, %v1472_v42, 0.0  ;;  %3641 = vmatprep.subr.bf16.mxu1 %v4181_v1 }
 0x9e4   :  { %1477 = vadd.xlane.f32.xlu1 %v1476_v43 }
 0xa69   :  { %v1475_v2 = vpop.xlane.xlu0 %1474 }
 0xa6a   :  { %v1479_v44 = vmul.f32 0.03125, %v1475_v2 }
 0xa6c   :  { %v1481_v47 = vsub.f32 %v1471_v37, %v1479_v44 }
 0xa6d   :  { %v1478_v49 = vpop.xlane.xlu1 %1477 }
 0xa6e   :  { %v1480_v48 = vmul.f32 0.03125, %v1478_v49  ;;  %v1483_v50 = vmul.f32 %v1481_v47, %v1481_v47 }
 0xa70   :  { %v1482_v51 = vsub.f32 %v1472_v42, %v1480_v48  ;;  %v1485_v33 = vsel %vm132_vm1, %v1483_v50, 0.0 }
 0xa71   :  { %1486 = vadd.xlane.f32.xlu0 %v1485_v33 }
 0xa72   :  { %v1484_v52 = vmul.f32 %v1482_v51, %v1482_v51 }
 0xa74   :  { %v1488_v53 = vsel %vm132_vm1, %v1484_v52, 0.0  ;;  %v3890_v52 = vld [vmem:[#allocation5 + $0x28] sm:$0xff]  }
 0xa75   :  { %1489 = vadd.xlane.f32.xlu0 %v1488_v53  ;;  %v3891_v53 = vld [vmem:[#allocation5 + $0x20] sm:$0xff]  }
 0xafa   :  { %v1487_v55 = vpop.xlane.xlu0 %1486 }
 0xafb   :  { %v1491_v56 = vmul.f32 0.03125, %v1487_v55 }
 0xafd   :  { %v1493_v57 = vadd.f32 1e-05, %v1491_v56 }
 0xafe   :  { %v1490_v58 = vpop.xlane.xlu0 %1489 }
 0xaff   :  { %3970 = vrsqrt.f32 %v1493_v57  ;;  %v1492_v8 = vmul.f32 0.03125, %v1490_v58 }
 0xb01   :  { %v1494_v59 = vadd.f32 1e-05, %v1492_v8 }
 0xb03   :  { %3972 = vrsqrt.f32 %v1494_v59 }
 0xb0c   :  { %v3971_v60 = vpop.eup %3970 }
 0xb0d   :  { %v1497_v61 = vmul.f32 %v3971_v60, %v1481_v47 }
 0xb0f   :  { %v1503_v0 = vmul.f32 %v1502_v6, %v1497_v61 }
 0xb10   :  { %v3973_v62 = vpop.eup %3972 }
 0xb11   :  { %v1498_v63 = vmul.f32 %v3973_v62, %v1482_v51  ;;  %v1509_v7 = vadd.f32 %v1508_v4, %v1503_v0 }
 0xb13   :  { %v1504_v5 = vmul.f32 %v1502_v6, %v1498_v63  ;;  %v1666_v6 = vrot.slane %v4392_v22, %v4370_v45 }
 0xb15   :  { %v1510_v9 = vadd.f32 %v1508_v4, %v1504_v5  ;;  %v1672_v4 = vrot.slane %v4392_v22, %v4506_v16  ;;  %v1768_v22 = vrot.slane %v4539_v54, %v4290_v12 }
 0xb17   :  { %v1511_v10 = vpack.c.bf16 %v1510_v9, %v1509_v7 }
 0xb19   :  { %3630 = vmatmul.mubr.msk.bf16.vlgmr.msra.gmra.mxu1 %vm132_vm1, %v1511_v10 }
 0xb1a   :  { %3645 = vmatprep.mubr.msk.bf16.mxu1 %vm4182_vm0, %v4181_v1  ;;  %3642 = vmatpush3.bf16.msra.mxu1 %v3890_v52 }
 0xb1b   :  { %3643 = vmatprep.subr.bf16.mxu1 %v4181_v1 }
 0xb1e   :  { %3644 = vmatpush3.bf16.msra.mxu1 %v3891_v53  ;;  %v4060_v53 = vld [vmem:[#allocation2 + $0x8] sm:$0xff] }
 0xb1f   :  { %3655 = vmatprep.subr.bf16.mxu1 %v4181_v1 }
 0xbd9   :  { %v1565_v15 = vpop.f32.mrf.mxu1 }
 0xbda   :  { %v1566_v19 = vadd.f32 %v1565_v15, %v1515_v14 }
 0xbdb   :  { %v3631_v17 = vpop.f32.mrf.mxu1 }
 0xbdc   :  { %v1572_v26 = vmax.f32 %v1566_v19, 0.0 }
 0xbdd   :  { %v1568_v21 = vpop.f32.mrf.mxu1 }
 0xbde   :  { %v1569_v23 = vadd.f32 %v1568_v21, %v1515_v14 }
 0xbdf   :  { %v3632_v25 = vpop.f32.mrf.mxu1 }
 0xbe0   :  { %v1573_v28 = vmax.f32 %v1569_v23, 0.0 }
 0xbe2   :  { %v1574_v29 = vpack.c.bf16 %v1573_v28, %v1572_v26 }
 0xbe4   :  { %3638 = vmatmul.mubr.msk.bf16.vlgmr.msra.gmra.mxu0 %vm132_vm1, %v1574_v29  ;;  %v1784_v29 = vrot.slane %v4539_v54, %v4299_v24 }
 0xbe5   :  { %3651 = vmatprep.mubr.msk.bf16.mxu0 %vm4182_vm0, %v4181_v1 }
 0xca4   :  { %v1628_v18 = vpop.f32.mrf.mxu0 }
 0xca5   :  { %v1629_v31 = vadd.f32 %v1628_v18, %v1578_v30 }
 0xca6   :  { %v3639_v20 = vpop.f32.mrf.mxu0 }
 0xca7   :  { %v1635_v32 = vadd.f32 %v1629_v31, %v1509_v7 }
 0xca8   :  { %v1631_v35 = vpop.f32.mrf.mxu0 }
 0xca9   :  { %v1632_v37 = vadd.f32 %v1631_v35, %v1578_v30  ;;  %v1637_v38 = vsel %vm132_vm1, %v1635_v32, 0.0 }
 0xcaa   :  { %1638 = vadd.xlane.f32.xlu1 %v1637_v38  ;;  %v3640_v39 = vpop.f32.mrf.mxu0 }
 0xcab   :  { %v1636_v40 = vadd.f32 %v1632_v37, %v1510_v9 }
 0xcad   :  { %v1640_v41 = vsel %vm132_vm1, %v1636_v40, 0.0 }
 0xcae   :  { %1641 = vadd.xlane.f32.xlu0 %v1640_v41 }
 0xd33   :  { %v1639_v42 = vpop.xlane.xlu1 %1638 }
 0xd34   :  { %v1643_v43 = vmul.f32 0.03125, %v1639_v42 }
 0xd36   :  { %v1645_v2 = vsub.f32 %v1635_v32, %v1643_v43 }
 0xd37   :  { %v1642_v44 = vpop.xlane.xlu0 %1641 }
 0xd38   :  { %v1644_v47 = vmul.f32 0.03125, %v1642_v44  ;;  %v1647_v49 = vmul.f32 %v1645_v2, %v1645_v2 }
 0xd3a   :  { %v1646_v48 = vsub.f32 %v1636_v40, %v1644_v47  ;;  %v1649_v50 = vsel %vm132_vm1, %v1647_v49, 0.0 }
 0xd3b   :  { %1650 = vadd.xlane.f32.xlu1 %v1649_v50 }
 0xd3c   :  { %v1648_v51 = vmul.f32 %v1646_v48, %v1646_v48 }
 0xd3e   :  { %v1652_v33 = vsel %vm132_vm1, %v1648_v51, 0.0 }
 0xd3f   :  { %1653 = vadd.xlane.f32.xlu0 %v1652_v33 }
 0xd4c   :  { %1776 = vrot.lane.b32.xlu1 %v1774_v34, %s4183_s21 }
 0xdc4   :  { %v1651_v55 = vpop.xlane.xlu1 %1650 }
 0xdc5   :  { %v1655_v56 = vmul.f32 0.03125, %v1651_v55 }
 0xdc7   :  { %v1657_v57 = vadd.f32 1e-05, %v1655_v56 }
 0xdc8   :  { %v1654_v58 = vpop.xlane.xlu0 %1653  ;;  %v1777_v13 = vpop.permute.xlu1 %1776 }
 0xdc9   :  { %3974 = vrsqrt.f32 %v1657_v57  ;;  %v1656_v8 = vmul.f32 0.03125, %v1654_v58 }
 0xdcb   :  { %v1658_v59 = vadd.f32 1e-05, %v1656_v8 }
 0xdcd   :  { %3976 = vrsqrt.f32 %v1658_v59 }
 0xdd6   :  { %v3975_v60 = vpop.eup %3974 }
 0xdd7   :  { %v1661_v61 = vmul.f32 %v3975_v60, %v1645_v2 }
 0xdd9   :  { %v1667_v0 = vmul.f32 %v1666_v6, %v1661_v61 }
 0xdda   :  { %v3977_v62 = vpop.eup %3976 }
 0xddb   :  { %v1662_v63 = vmul.f32 %v3977_v62, %v1646_v48  ;;  %v4548_v7 = vadd.f32 %v1672_v4, %v1667_v0  ;;  %v4059_v48 = vld [vmem:[#allocation2] sm:$0xff] }
 0xddd   :  { %v1668_v5 = vmul.f32 %v1666_v6, %v1662_v63 }
 0xddf   :  { %v4550_v9 = vadd.f32 %v1672_v4, %v1668_v5 }
 0xde1   :  { %v1708_v10 = vpack.c.bf16 %v4550_v9, %v4548_v7 }
 0xde3   :  { %3646 = vmatmul.mubr.msk.bf16.vlgmr.msra.gmra.mxu1 %vm132_vm1, %v1708_v10 }
 0xde4   :  { %3657 = vmatprep.mubr.msk.bf16.mxu1 %vm4182_vm0, %v4181_v1 }
 0xea3   :  { %v1758_v11 = vpop.f32.mrf.mxu1 }
 0xea4   :  { %v1779_v17 = vadd.f32 %v1777_v13, %v1758_v11  ;;  %v1769_v26 = vadd.f32 %v1768_v22, %v1758_v11 }
 0xea5   :  { %v3647_v14 = vpop.f32.mrf.mxu1 }
 0xea7   :  { %v1761_v15 = vpop.f32.mrf.mxu1 }
 0xea8   :  { %v1780_v19 = vadd.f32 %v1777_v13, %v1761_v15  ;;  %v1770_v23 = vadd.f32 %v1768_v22, %v1761_v15 }
 0xea9   :  { %v3648_v21 = vpop.f32.mrf.mxu1 }
 0xeaa   :  { %v1792_v25 = vpack.c.bf16 %v1780_v19, %v1779_v17  ;;  %v1791_v28 = vpack.c.bf16 %v1770_v23, %v1769_v26 }
 0xeac   :  { %1910 = vrot.lane.b32.xlu1 %v1792_v25, %s4184_s0  ;;  %1795 = vrot.lane.b32.xlu0 %v1792_v25, %s4185_s22 }
 0xeb0   :  { %2023 = vrot.lane.b32.xlu0 %v1792_v25, %s4186_s23  ;;  %1908 = vrot.lane.b32.xlu1 %v1791_v28, %s4187_s25 }
 0xeb4   :  { %2136 = vrot.lane.b32.xlu0 %v1792_v25, %s4188_s26  ;;  %2021 = vrot.lane.b32.xlu1 %v1791_v28, %s4189_s27 }
 0xeb8   :  { %1786 = vrot.lane.b32.xlu0 %v1784_v29, %s4174_s24  ;;  %2134 = vrot.lane.b32.xlu1 %v1791_v28, %s4190_s28 }
 0xf1e   :  { %v1796_v30 = vpop.permute.xlu0 %1795  ;;  %v1911_v20 = vpop.permute.xlu1 %1910 }
 0xf1f   :  { %v1801_v18 = vsel %vm209_vm2, %v1796_v30, 0  ;;  %v1916_v35 = vsel %vm209_vm2, %v1911_v20, 0 }
 0xf20   :  { %3650 = vmatpush3.bf16.xpose.msra.mxu0 %v1801_v18 }
 0xf21   :  { %3661 = vmatprep.subr.bf16.mxu0 %v4181_v1 }
 0xf22   :  { %v2024_v31 = vpop.permute.xlu0 %2023  ;;  %v1909_v41 = vpop.permute.xlu1 %1908 }
 0xf23   :  { %v2029_v42 = vsel %vm209_vm2, %v2024_v31, 0 }
 0xf26   :  { %v2137_v32 = vpop.permute.xlu0 %2136  ;;  %v2022_v43 = vpop.permute.xlu1 %2021 }
 0xf27   :  { %3652 = vmatmul.mubr.msk.bf16.vlgmr.msra.gmra.mxu0 %vm209_vm2, %v1791_v28  ;;  %v2142_v2 = vsel %vm209_vm2, %v2137_v32, 0 }
 0xf28   :  { %3662 = vmatpush3.bf16.xpose.msra.mxu0 %v1916_v35  ;;  %3663 = vmatprep.mubr.msk.bf16.mxu0 %vm4182_vm0, %v4181_v1 }
 0xf29   :  { %3673 = vmatprep.subr.bf16.mxu0 %v4181_v1 }
 0xf2a   :  { %v1787_v37 = vpop.permute.xlu0 %1786  ;;  %v2135_v44 = vpop.permute.xlu1 %2134 }
 0xf2b   :  { %v1789_v38 = vadd.f32 %v1787_v37, %v1758_v11  ;;  %v1790_v39 = vadd.f32 %v1787_v37, %v1761_v15 }
 0xf2d   :  { %v1793_v40 = vpack.c.bf16 %v1790_v39, %v1789_v38 }
 0xf2f   :  { %1972 = vrot.lane.b32.xlu0 %v1793_v40, %s4191_s29  ;;  %1858 = vrot.lane.b32.xlu1 %v1793_v40, %s4174_s24 }
 0xf30   :  { %3664 = vmatmul.mubr.msk.bf16.vlgmr.msra.gmra.mxu0 %vm209_vm2, %v1909_v41 }
 0xf31   :  { %3674 = vmatpush3.bf16.xpose.msra.mxu0 %v2029_v42  ;;  %3675 = vmatprep.mubr.msk.bf16.mxu0 %vm4182_vm0, %v4181_v1 }
 0xf32   :  { %3685 = vmatprep.subr.bf16.mxu0 %v4181_v1 }
 0xf33   :  { %2198 = vrot.lane.b32.xlu0 %v1793_v40, %s4192_s30  ;;  %2085 = vrot.lane.b32.xlu1 %v1793_v40, %s4193_s9 }
 0xf38   :  { %3676 = vmatmul.mubr.msk.bf16.vlgmr.msra.gmra.mxu0 %vm209_vm2, %v2022_v43 }
 0xf39   :  { %3686 = vmatpush3.bf16.xpose.msra.mxu0 %v2142_v2  ;;  %3687 = vmatprep.mubr.msk.bf16.mxu0 %vm4182_vm0, %v4181_v1 }
 0xf3a   :  { %3697 = vmatprep.subr.bf16.mxu0 %v4181_v1 }
 0xf40   :  { %3688 = vmatmul.mubr.msk.bf16.vlgmr.msra.gmra.mxu0 %vm209_vm2, %v2135_v44 }
 0xf41   :  { %3701 = vmatprep.mubr.msk.bf16.mxu0 %vm4182_vm0, %v4181_v1 }
 0xfa1   :  { %v1859_v47 = vpop.permute.xlu1 %1858  ;;  %v1973_v19 = vpop.permute.xlu0 %1972 }
 0xfa2   :  { %3656 = vmatpush3.bf16.msra.mxu1 %v1859_v47 }
 0xfa3   :  { %3667 = vmatprep.subr.bf16.mxu1 %v4181_v1 }
 0xfa5   :  { %v2086_v38 = vpop.permute.xlu1 %2085  ;;  %v2199_v2 = vpop.permute.xlu0 %2198 }
 0xfe7   :  { %v1837_v49 = vpop.f32.mrf.mxu0 }
 0xfe8   :  { %v1838_v50 = vadd.f32 %v4059_v48, %v1837_v49 }
 0xfe9   :  { %v3653_v51 = vpop.f32.mrf.mxu0 }
 0xfea   :  { %v1844_v33 = vmul.f32 1.442695, %v1838_v50 }
 0xfeb   :  { %v1840_v52 = vpop.f32.mrf.mxu0 }
 0xfec   :  { %v1841_v34 = vadd.f32 %v4060_v53, %v1840_v52  ;;  %3978 = vpow2.f32 %v1844_v33 }
 0xfed   :  { %v3654_v55 = vpop.f32.mrf.mxu0 }
 0xfee   :  { %v1846_v56 = vmul.f32 1.442695, %v1841_v34 }
 0xff0   :  { %3980 = vpow2.f32 %v1846_v56  ;;  %v1952_v57 = vpop.f32.mrf.mxu0 }
 0xff1   :  { %v1953_v58 = vadd.f32 %v4059_v48, %v1952_v57 }
 0xff2   :  { %v3665_v8 = vpop.f32.mrf.mxu0 }
 0xff3   :  { %v1959_v59 = vmul.f32 1.442695, %v1953_v58 }
 0xff4   :  { %v1955_v60 = vpop.f32.mrf.mxu0 }
 0xff5   :  { %3982 = vpow2.f32 %v1959_v59  ;;  %v1956_v61 = vadd.f32 %v4060_v53, %v1955_v60 }
 0xff6   :  { %v3666_v6 = vpop.f32.mrf.mxu0 }
 0xff7   :  { %v1961_v62 = vmul.f32 1.442695, %v1956_v61 }
 0xff8   :  { %v2065_v63 = vpop.f32.mrf.mxu0 }
 0xff9   :  { %3984 = vpow2.f32 %v1961_v62  ;;  %v2066_v0 = vadd.f32 %v4059_v48, %v2065_v63  ;;  %v3979_v10 = vpop.eup %3978 }
 0xffa   :  { %v3677_v4 = vpop.f32.mrf.mxu0 }
 0xffb   :  { %v2072_v5 = vmul.f32 1.442695, %v2066_v0 }
 0xffc   :  { %v2068_v11 = vpop.f32.mrf.mxu0 }
 0xffd   :  { %v3981_v13 = vpop.eup %3980  ;;  %3986 = vpow2.f32 %v2072_v5  ;;  %v2069_v14 = vadd.f32 %v4060_v53, %v2068_v11  ;;  %v3892_v11 = vld [vmem:[#allocation7 + $0x48] sm:$0xff]  }
 0xffe   :  { %v3678_v15 = vpop.f32.mrf.mxu0  ;;  %v1856_v22 = vpack.c.bf16 %v3981_v13, %v3979_v10  ;;  %v1851_v33 = vsel %vm261_vm3, %v3981_v13, 0.0  ;;  %3698 = vmatpush3.bf16.msra.mxu0 %v3892_v11 }
 0xfff   :  { %v2074_v17 = vmul.f32 1.442695, %v2069_v14  ;;  %3699 = vmatprep.subr.bf16.mxu0 %v4181_v1 }
0x1000   :  { %v2178_v21 = vpop.f32.mrf.mxu0  ;;  %3658 = vmatmul.mubr.msk.bf16.vlgmr.msra.gmra.mxu1 %vm261_vm3, %v1856_v22 }
0x1001   :  { %3988 = vpow2.f32 %v2074_v17  ;;  %v2179_v23 = vadd.f32 %v4059_v48, %v2178_v21  ;;  %3668 = vmatpush3.bf16.msra.mxu1 %v1973_v19  ;;  %3669 = vmatprep.mubr.msk.bf16.mxu1 %vm4182_vm0, %v4181_v1  ;;  %v1848_v48 = vsel %vm261_vm3, %v3979_v10, 0.0 }
0x1002   :  { %v3983_v25 = vpop.eup %3982  ;;  %v3689_v26 = vpop.f32.mrf.mxu0  ;;  %3679 = vmatprep.subr.bf16.mxu1 %v4181_v1 }
0x1003   :  { %v2185_v28 = vmul.f32 1.442695, %v2179_v23  ;;  %v1963_v29 = vsel %vm261_vm3, %v3983_v25, 0.0 }
0x1004   :  { %1964 = vadd.xlane.f32.xlu1 %v1963_v29  ;;  %v2181_v30 = vpop.f32.mrf.mxu0 }
0x1005   :  { %3990 = vpow2.f32 %v2185_v28  ;;  %v2182_v18 = vadd.f32 %v4060_v53, %v2181_v30 }
0x1006   :  { %v3985_v31 = vpop.eup %3984  ;;  %v3690_v20 = vpop.f32.mrf.mxu0 }
0x1007   :  { %v2187_v32 = vmul.f32 1.442695, %v2182_v18  ;;  %v1966_v35 = vsel %vm261_vm3, %v3985_v31, 0.0  ;;  %v1971_v37 = vpack.c.bf16 %v3985_v31, %v3983_v25  ;;  %v3893_v25 = vld [vmem:[#allocation7 + $0x40] sm:$0xff]  }
0x1008   :  { %1967 = vadd.xlane.f32.xlu0 %v1966_v35  ;;  %3700 = vmatpush3.bf16.msra.mxu0 %v3893_v25 }
0x1009   :  { %3992 = vpow2.f32 %v2187_v32  ;;  %3670 = vmatmul.mubr.msk.bf16.vlgmr.msra.gmra.mxu1 %vm261_vm3, %v1971_v37  ;;  %3713 = vmatprep.subr.bf16.mxu0 %v4181_v1 }
0x100a   :  { %v3987_v39 = vpop.eup %3986  ;;  %3680 = vmatpush3.bf16.msra.mxu1 %v2086_v38  ;;  %3681 = vmatprep.mubr.msk.bf16.mxu1 %vm4182_vm0, %v4181_v1 }
0x100b   :  { %v2076_v40 = vsel %vm261_vm3, %v3987_v39, 0.0  ;;  %3691 = vmatprep.subr.bf16.mxu1 %v4181_v1 }
0x100c   :  { %2077 = vadd.xlane.f32.xlu0 %v2076_v40 }
0x100e   :  { %v3989_v41 = vpop.eup %3988 }
0x100f   :  { %v2079_v42 = vsel %vm261_vm3, %v3989_v41, 0.0  ;;  %v2084_v43 = vpack.c.bf16 %v3989_v41, %v3987_v39 }
0x1010   :  { %2080 = vadd.xlane.f32.xlu1 %v2079_v42 }
0x1011   :  { %3682 = vmatmul.mubr.msk.bf16.vlgmr.msra.gmra.mxu1 %vm261_vm3, %v2084_v43 }
0x1012   :  { %v3991_v44 = vpop.eup %3990  ;;  %3692 = vmatpush3.bf16.msra.mxu1 %v2199_v2  ;;  %3693 = vmatprep.mubr.msk.bf16.mxu1 %vm4182_vm0, %v4181_v1 }
0x1013   :  { %v2189_v47 = vsel %vm261_vm3, %v3991_v44, 0.0  ;;  %3705 = vmatprep.subr.bf16.mxu1 %v4181_v1 }
0x1014   :  { %2190 = vadd.xlane.f32.xlu0 %v2189_v47 }
0x1016   :  { %v3993_v49 = vpop.eup %3992 }
0x1017   :  { %v2192_v50 = vsel %vm261_vm3, %v3993_v49, 0.0  ;;  %v2197_v51 = vpack.c.bf16 %v3993_v49, %v3991_v44 }
0x1018   :  { %1849 = vadd.xlane.f32.xlu0 %v1848_v48  ;;  %2193 = vadd.xlane.f32.xlu1 %v2192_v50 }
0x1019   :  { %3694 = vmatmul.mubr.msk.bf16.vlgmr.msra.gmra.mxu1 %vm261_vm3, %v2197_v51 }
0x101a   :  { %3709 = vmatprep.mubr.msk.bf16.mxu1 %vm4182_vm0, %v4181_v1 }
0x101c   :  { %1852 = vadd.xlane.f32.xlu1 %v1851_v33 }
0x108d   :  { %v1965_v52 = vpop.xlane.xlu1 %1964 }
0x108e   :  { %3994 = vrcp.f32 %v1965_v52 }
0x1091   :  { %v1968_v53 = vpop.xlane.xlu0 %1967 }
0x1092   :  { %3996 = vrcp.f32 %v1968_v53 }
0x1095   :  { %v2078_v56 = vpop.xlane.xlu0 %2077 }
0x1096   :  { %3998 = vrcp.f32 %v2078_v56 }
0x1099   :  { %v2081_v58 = vpop.xlane.xlu1 %2080 }
0x109a   :  { %4000 = vrcp.f32 %v2081_v58 }
0x109b   :  { %v3995_v61 = vpop.eup %3994 }
0x109d   :  { %v2191_v6 = vpop.xlane.xlu0 %2190 }
0x109e   :  { %4002 = vrcp.f32 %v2191_v6 }
0x109f   :  { %v3997_v62 = vpop.eup %3996 }
0x10a1   :  { %v2194_v63 = vpop.xlane.xlu1 %2193  ;;  %v1850_v39 = vpop.xlane.xlu0 %1849 }
0x10a2   :  { %4004 = vrcp.f32 %v2194_v63 }
0x10a3   :  { %v3999_v22 = vpop.eup %3998  ;;  %4006 = vrcp.f32 %v1850_v39  ;;  %v4651_v39 = vld [vmem:[#allocation8 + $0x18] sm:$0xff] }
0x10a5   :  { %v1853_v40 = vpop.xlane.xlu1 %1852 }
0x10a6   :  { %4008 = vrcp.f32 %v1853_v40 }
0x10a7   :  { %v4001_v17 = vpop.eup %4000 }
0x10ab   :  { %v4003_v18 = vpop.eup %4002 }
0x10af   :  { %v4005_v31 = vpop.eup %4004 }
0x10b0   :  { %v4007_v43 = vpop.eup %4006 }
0x10b3   :  { %v4009_v47 = vpop.eup %4008 }
0x10c0   :  { %v1898_v34 = vpop.f32.mrf.mxu1 }
0x10c1   :  { %v1905_v50 = vmul.f32 %v4007_v43, %v1898_v34  ;;  %v2281_v34 = vrot.slane %v4539_v54, %v4370_v45 }
0x10c2   :  { %v3659_v55 = vpop.f32.mrf.mxu1 }
0x10c4   :  { %v1901_v57 = vpop.f32.mrf.mxu1 }
0x10c5   :  { %v1906_v51 = vmul.f32 %v4009_v47, %v1901_v57  ;;  %v2375_v47 = vrot.slane %v4651_v39, %v4397_v27 }
0x10c6   :  { %v3660_v8 = vpop.f32.mrf.mxu1 }
0x10c9   :  { %v2012_v59 = vpop.f32.mrf.mxu1 }
0x10ca   :  { %v2019_v4 = vmul.f32 %v3995_v61, %v2012_v59 }
0x10cb   :  { %v3671_v60 = vpop.f32.mrf.mxu1 }
0x10cd   :  { %v2015_v0 = vpop.f32.mrf.mxu1 }
0x10ce   :  { %v2020_v5 = vmul.f32 %v3997_v62, %v2015_v0 }
0x10cf   :  { %v3672_v10 = vpop.f32.mrf.mxu1 }
0x10d0   :  { %v3847_v13 = vpack.i.bf16 %v2020_v5, %v2019_v4 }
0x10d1   :  { %v2125_v14 = vpop.f32.mrf.mxu1 }
0x10d2   :  { %3848 = vrot.lane.b32.xlu0 %v3847_v13, %s4178_s8  ;;  %v2132_v21 = vmul.f32 %v3999_v22, %v2125_v14  ;;  %v3894_v14 = vld [vmem:[#allocation5 + $0x38] sm:$0xff]  }
0x10d3   :  { %v3683_v15 = vpop.f32.mrf.mxu1  ;;  %3706 = vmatpush3.bf16.msra.mxu1 %v3894_v14 }
0x10d4   :  { %3707 = vmatprep.subr.bf16.mxu1 %v4181_v1  ;;  %v3895_v15 = vld [vmem:[#allocation5 + $0x30] sm:$0xff]  }
0x10d5   :  { %v2128_v19 = vpop.f32.mrf.mxu1 }
0x10d6   :  { %v2133_v23 = vmul.f32 %v4001_v17, %v2128_v19 }
0x10d7   :  { %v3684_v26 = vpop.f32.mrf.mxu1  ;;  %3708 = vmatpush3.bf16.msra.mxu1 %v3895_v15 }
0x10d8   :  { %v3852_v28 = vpack.i.bf16 %v2133_v23, %v2132_v21  ;;  %3721 = vmatprep.subr.bf16.mxu1 %v4181_v1 }
0x10d9   :  { %v2238_v29 = vpop.f32.mrf.mxu1 }
0x10da   :  { %3853 = vrot.lane.b32.xlu1 %v3852_v28, %s4194_s10  ;;  %v2245_v32 = vmul.f32 %v4003_v18, %v2238_v29 }
0x10db   :  { %v3695_v30 = vpop.f32.mrf.mxu1 }
0x10dd   :  { %v2241_v20 = vpop.f32.mrf.mxu1 }
0x10de   :  { %v2246_v35 = vmul.f32 %v4005_v31, %v2241_v20 }
0x10df   :  { %v3696_v37 = vpop.f32.mrf.mxu1 }
0x10e0   :  { %v3857_v38 = vpack.i.bf16 %v2246_v35, %v2245_v32 }
0x10e2   :  { %3858 = vrot.lane.b32.xlu1 %v3857_v38, %s4195_s3  ;;  %v4061_v38 = vld [vmem:[%s4797_s1] sm:$0xff]   ;;  %s4196_s1 = smov [#allocation10]  }
0x10e3   :  { %s3298_s14 = sshll.u32 %s4196_s1, 4  ;;  %s3299_s14 = int_to_ptr.vmem [resolvable:$true] %s3298_s14 }
0x10e4   :  { %s4145_s15 = scalar_lea.vmem %s3299_s14, 256  ;;  %p4150_p7 = scmp.lt.s32.totalorder %s3299_s14, %s3299_s14 }
0x10e5   :  { %p4146_p6 = scmp.ne.s32.totalorder %s3299_s14, %s4145_s15  ;;  %p4151_p8 = scmp.lt.s32.totalorder %s4145_s15, %s4145_s15 }
0x10e7   :  { %p4152_p9 = por %p4151_p8, %p4150_p7 }
0x10e9   :  { %p4153_p10 = pnand %p4152_p9, %p4146_p6 }
0x1144   :  { %v3849_v41 = vpop.permute.xlu0 %3848 }
0x1145   :  { %v3851_v2 = vunpack.i.h.bf16 %v3849_v41  ;;  %v3850_v44 = vunpack.i.l.bf16 %v3849_v41  ;;  %v2369_v41 = vrot.slane %v4651_v39, %v4299_v24  ;;  %v2489_v24 = vrot.slane %v4539_v54, %v4411_v36 }
0x1147   :  { %v2271_v52 = vsel %vm209_vm2, %v1905_v50, %v3850_v44  ;;  %v2272_v53 = vsel %vm209_vm2, %v1906_v51, %v3851_v2 }
0x114c   :  { %v3854_v42 = vpop.permute.xlu1 %3853 }
0x114d   :  { %v3856_v49 = vunpack.i.h.bf16 %v3854_v42  ;;  %v3855_v48 = vunpack.i.l.bf16 %v3854_v42 }
0x114f   :  { %v2274_v58 = vsel %vm261_vm3, %v2272_v53, %v3856_v49  ;;  %v2273_v8 = vsel %vm261_vm3, %v2271_v52, %v3855_v48 }
0x1154   :  { %v3859_v33 = vpop.permute.xlu1 %3858 }
0x1155   :  { %v3861_v55 = vunpack.i.h.bf16 %v3859_v33  ;;  %v3860_v56 = vunpack.i.l.bf16 %v3859_v33 }
0x1157   :  { %v2275_v59 = vsel %vm689_vm4, %v2273_v8, %v3860_v56  ;;  %v2276_v60 = vsel %vm689_vm4, %v2274_v58, %v3861_v55 }
0x1158   :  { %v2277_v61 = vpack.c.bf16 %v2276_v60, %v2275_v59  ;;  %v2495_v60 = vrot.slane %v4539_v54, %v4418_v46 }
0x115a   :  { %3702 = vmatmul.mubr.msk.bf16.vlgmr.msra.gmra.mxu0 %vm132_vm1, %v2277_v61 }
0x115b   :  { %3717 = vmatprep.mubr.msk.bf16.mxu0 %vm4182_vm0, %v4181_v1 }
0x121a   :  { %v2331_v57 = vpop.f32.mrf.mxu0 }
0x121b   :  { %v2332_v6 = vadd.f32 %v2331_v57, %v2281_v34 }
0x121c   :  { %v3703_v62 = vpop.f32.mrf.mxu0 }
0x121d   :  { %v2338_v63 = vadd.f32 %v2332_v6, %v4548_v7 }
0x121e   :  { %v2334_v0 = vpop.f32.mrf.mxu0 }
0x121f   :  { %v2335_v4 = vadd.f32 %v2334_v0, %v2281_v34  ;;  %v2340_v5 = vsel %vm132_vm1, %v2338_v63, 0.0  ;;  %v2382_v34 = vrot.slane %v4539_v54, %v4397_v27 }
0x1220   :  { %2341 = vadd.xlane.f32.xlu0 %v2340_v5  ;;  %v3704_v10 = vpop.f32.mrf.mxu0 }
0x1221   :  { %v2339_v11 = vadd.f32 %v2335_v4, %v4550_v9 }
0x1223   :  { %v2343_v13 = vsel %vm132_vm1, %v2339_v11, 0.0 }
0x1224   :  { %2344 = vadd.xlane.f32.xlu1 %v2343_v13 }
0x1235   :  { %2441 = vrot.lane.b32.xlu1 %v3894_v14, %s4185_s22 }
0x12a9   :  { %v2342_v7 = vpop.xlane.xlu0 %2341 }
0x12aa   :  { %v2346_v22 = vmul.f32 0.03125, %v2342_v7 }
0x12ac   :  { %v2348_v17 = vsub.f32 %v2338_v63, %v2346_v22 }
0x12ad   :  { %v2345_v19 = vpop.xlane.xlu1 %2344 }
0x12ae   :  { %v2347_v21 = vmul.f32 0.03125, %v2345_v19  ;;  %v2350_v23 = vmul.f32 %v2348_v17, %v2348_v17 }
0x12b0   :  { %v2349_v9 = vsub.f32 %v2339_v11, %v2347_v21  ;;  %v2352_v25 = vsel %vm132_vm1, %v2350_v23, 0.0 }
0x12b1   :  { %2353 = vadd.xlane.f32.xlu0 %v2352_v25  ;;  %v2442_v29 = vpop.permute.xlu1 %2441 }
0x12b2   :  { %v2351_v26 = vmul.f32 %v2349_v9, %v2349_v9  ;;  %3714 = vmatpush3.bf16.msra.mxu0 %v2442_v29 }
0x12b3   :  { %3715 = vmatprep.subr.bf16.mxu0 %v4181_v1 }
0x12b4   :  { %v2355_v28 = vsel %vm132_vm1, %v2351_v26, 0.0 }
0x12b5   :  { %2356 = vadd.xlane.f32.xlu0 %v2355_v28  ;;  %v4062_v28 = vld [vmem:[#allocation2 + $0x18] sm:$0xff] }
0x12cb   :  { %2439 = vrot.lane.b32.xlu0 %v3895_v15, %s4185_s22 }
0x133a   :  { %v2354_v30 = vpop.xlane.xlu0 %2353 }
0x133b   :  { %v2358_v18 = vmul.f32 0.03125, %v2354_v30  ;;  %v4063_v30 = vld [vmem:[#allocation2 + $0x10] sm:$0xff] }
0x133d   :  { %v2360_v31 = vadd.f32 1e-05, %v2358_v18 }
0x133e   :  { %v2357_v20 = vpop.xlane.xlu0 %2356 }
0x133f   :  { %4010 = vrsqrt.f32 %v2360_v31  ;;  %v2359_v32 = vmul.f32 0.03125, %v2357_v20 }
0x1341   :  { %v2361_v35 = vadd.f32 1e-05, %v2359_v32 }
0x1342   :  { %v2440_v37 = vpop.permute.xlu0 %2439 }
0x1343   :  { %4012 = vrsqrt.f32 %v2361_v35  ;;  %3716 = vmatpush3.bf16.msra.mxu0 %v2440_v37 }
0x1344   :  { %3727 = vmatprep.subr.bf16.mxu0 %v4181_v1 }
0x1346   :  { %3718 = vmatmul.mubr.msk.bf16.vlgmr.msra.gmra.mxu0 %vm132_vm1, %v4061_v38 }
0x1347   :  { %3729 = vmatprep.mubr.msk.bf16.mxu0 %vm4182_vm0, %v4181_v1 }
0x134c   :  { %v4011_v40 = vpop.eup %4010 }
0x134d   :  { %v2364_v42 = vmul.f32 %v4011_v40, %v2348_v17 }
0x134f   :  { %v2370_v44 = vmul.f32 %v2369_v41, %v2364_v42 }
0x1350   :  { %v4013_v43 = vpop.eup %4012 }
0x1351   :  { %v2365_v2 = vmul.f32 %v4013_v43, %v2349_v9  ;;  %v4657_v48 = vadd.f32 %v2375_v47, %v2370_v44 }
0x1353   :  { %v2371_v49 = vmul.f32 %v2369_v41, %v2365_v2 }
0x1355   :  { %v4659_v50 = vadd.f32 %v2375_v47, %v2371_v49 }
0x1357   :  { %v2378_v51 = vpack.c.bf16 %v4659_v50, %v4657_v48 }
0x1359   :  { %3710 = vmatmul.mubr.msk.bf16.vlgmr.msra.gmra.mxu1 %vm132_vm1, %v2378_v51 }
0x135a   :  { %3723 = vmatprep.mubr.msk.bf16.mxu1 %vm4182_vm0, %v4181_v1 }
0x1406   :  { %v2479_v33 = vpop.f32.mrf.mxu0 }
0x1407   :  { %v2490_v53 = vadd.f32 %v2489_v24, %v2479_v33 }
0x1408   :  { %v3719_v52 = vpop.f32.mrf.mxu0 }
0x140a   :  { %v2482_v55 = vpop.f32.mrf.mxu0 }
0x140b   :  { %v2491_v56 = vadd.f32 %v2489_v24, %v2482_v55 }
0x140c   :  { %v3720_v58 = vpop.f32.mrf.mxu0 }
0x140d   :  { %v2503_v8 = vpack.c.bf16 %v2491_v56, %v2490_v53 }
0x140f   :  { %2732 = vrot.lane.b32.xlu0 %v2503_v8, %s4189_s27  ;;  %2619 = vrot.lane.b32.xlu1 %v2503_v8, %s4187_s25  ;;  %v2509_v59 = vsel %vm209_vm2, %v2503_v8, 0 }
0x1410   :  { %3722 = vmatpush3.bf16.xpose.msra.mxu1 %v2509_v59 }
0x1411   :  { %3733 = vmatprep.subr.bf16.mxu1 %v4181_v1 }
0x1413   :  { %2845 = vrot.lane.b32.xlu0 %v2503_v8, %s4190_s28 }
0x1417   :  { %2497 = vrot.lane.b32.xlu0 %v2495_v60, %s4183_s21 }
0x1419   :  { %v2432_v61 = vpop.f32.mrf.mxu1 }
0x141a   :  { %v2433_v62 = vadd.f32 %v2432_v61, %v2382_v34 }
0x141b   :  { %v3711_v57 = vpop.f32.mrf.mxu1 }
0x141d   :  { %v2435_v6 = vpop.f32.mrf.mxu1 }
0x141e   :  { %v2436_v63 = vadd.f32 %v2435_v6, %v2382_v34 }
0x141f   :  { %v3712_v0 = vpop.f32.mrf.mxu1 }
0x1420   :  { %v2502_v4 = vpack.c.bf16 %v2436_v63, %v2433_v62 }
0x1422   :  { %2616 = vrot.lane.b32.xlu1 %v2502_v4, %s4187_s25  ;;  %3724 = vmatmul.mubr.msk.bf16.vlgmr.msra.gmra.mxu1 %vm209_vm2, %v2502_v4 }
0x1423   :  { %3735 = vmatprep.mubr.msk.bf16.mxu1 %vm4182_vm0, %v4181_v1 }
0x1426   :  { %2730 = vrot.lane.b32.xlu1 %v2502_v4, %s4189_s27 }
0x142a   :  { %2843 = vrot.lane.b32.xlu1 %v2502_v4, %s4190_s28 }
0x1481   :  { %v2733_v5 = vpop.permute.xlu0 %2732  ;;  %v2620_v10 = vpop.permute.xlu1 %2619 }
0x1482   :  { %v2625_v27 = vsel %vm209_vm2, %v2620_v10, 0  ;;  %v2738_v22 = vsel %vm209_vm2, %v2733_v5, 0 }
0x1483   :  { %3734 = vmatpush3.bf16.xpose.msra.mxu1 %v2625_v27 }
0x1484   :  { %3745 = vmatprep.subr.bf16.mxu1 %v4181_v1 }
0x1485   :  { %v2846_v54 = vpop.permute.xlu0 %2845 }
0x1486   :  { %v2851_v19 = vsel %vm209_vm2, %v2846_v54, 0 }
0x1489   :  { %v2498_v11 = vpop.permute.xlu0 %2497 }
0x148a   :  { %v2500_v13 = vadd.f32 %v2498_v11, %v2479_v33  ;;  %v2501_v14 = vadd.f32 %v2498_v11, %v2482_v55 }
0x148c   :  { %v2504_v15 = vpack.c.bf16 %v2501_v14, %v2500_v13 }
0x148e   :  { %2681 = vrot.lane.b32.xlu0 %v2504_v15, %s4184_s0  ;;  %2566 = vrot.lane.b32.xlu1 %v2504_v15, %s4185_s22 }
0x1492   :  { %2907 = vrot.lane.b32.xlu0 %v2504_v15, %s4188_s26  ;;  %2794 = vrot.lane.b32.xlu1 %v2504_v15, %s4186_s23 }
0x1494   :  { %v2617_v7 = vpop.permute.xlu1 %2616 }
0x1495   :  { %3736 = vmatmul.mubr.msk.bf16.vlgmr.msra.gmra.mxu1 %vm209_vm2, %v2617_v7 }
0x1496   :  { %3746 = vmatpush3.bf16.xpose.msra.mxu1 %v2738_v22  ;;  %3747 = vmatprep.mubr.msk.bf16.mxu1 %vm4182_vm0, %v4181_v1 }
0x1497   :  { %3757 = vmatprep.subr.bf16.mxu1 %v4181_v1 }
0x1498   :  { %v2731_v17 = vpop.permute.xlu1 %2730 }
0x149c   :  { %v2844_v21 = vpop.permute.xlu1 %2843 }
0x149d   :  { %3748 = vmatmul.mubr.msk.bf16.vlgmr.msra.gmra.mxu1 %vm209_vm2, %v2731_v17 }
0x149e   :  { %3758 = vmatpush3.bf16.xpose.msra.mxu1 %v2851_v19  ;;  %3759 = vmatprep.mubr.msk.bf16.mxu1 %vm4182_vm0, %v4181_v1 }
0x149f   :  { %3769 = vmatprep.subr.bf16.mxu1 %v4181_v1 }
0x14a5   :  { %3760 = vmatmul.mubr.msk.bf16.vlgmr.msra.gmra.mxu1 %vm209_vm2, %v2844_v21 }
0x14a6   :  { %3773 = vmatprep.mubr.msk.bf16.mxu1 %vm4182_vm0, %v4181_v1 }
0x14e2   :  { %v2545_v23 = vpop.f32.mrf.mxu1 }
0x14e3   :  { %v2546_v18 = vadd.f32 %v4063_v30, %v2545_v23 }
0x14e4   :  { %v3725_v9 = vpop.f32.mrf.mxu1 }
0x14e5   :  { %v2552_v20 = vmul.f32 1.442695, %v2546_v18 }
0x14e6   :  { %v2548_v25 = vpop.f32.mrf.mxu1 }
0x14e7   :  { %v2549_v29 = vadd.f32 %v4062_v28, %v2548_v25 }
0x14e8   :  { %v3726_v26 = vpop.f32.mrf.mxu1 }
0x14e9   :  { %v2554_v31 = vmul.f32 1.442695, %v2549_v29 }
0x14eb   :  { %4014 = vpow2.f32 %v2554_v31 }
0x14ec   :  { %4016 = vpow2.f32 %v2552_v20 }
0x14f8   :  { %v4703_v32 = vpop.eup %4014 }
0x14f9   :  { %v4705_v37 = vpop.eup %4016  ;;  %v2559_v26 = vsel %vm261_vm3, %v4703_v32, 0.0 }
0x14fa   :  { %v2564_v38 = vpack.c.bf16 %v4703_v32, %v4705_v37  ;;  %v2556_v23 = vsel %vm261_vm3, %v4705_v37, 0.0 }
0x1500   :  { %v2567_v35 = vpop.permute.xlu1 %2566  ;;  %v2682_v40 = vpop.permute.xlu0 %2681 }
0x1501   :  { %3728 = vmatpush3.bf16.msra.mxu0 %v2567_v35 }
0x1502   :  { %3739 = vmatprep.subr.bf16.mxu0 %v4181_v1 }
0x1504   :  { %3730 = vmatmul.mubr.msk.bf16.vlgmr.msra.gmra.mxu0 %vm261_vm3, %v2564_v38  ;;  %v2795_v54 = vpop.permute.xlu1 %2794  ;;  %v2908_v22 = vpop.permute.xlu0 %2907 }
0x1505   :  { %3740 = vmatpush3.bf16.msra.mxu0 %v2682_v40  ;;  %3741 = vmatprep.mubr.msk.bf16.mxu0 %vm4182_vm0, %v4181_v1 }
0x1506   :  { %3751 = vmatprep.subr.bf16.mxu0 %v4181_v1 }
0x1555   :  { %v2661_v41 = vpop.f32.mrf.mxu1 }
0x1556   :  { %v2662_v42 = vadd.f32 %v4063_v30, %v2661_v41 }
0x1557   :  { %v3737_v43 = vpop.f32.mrf.mxu1 }
0x1558   :  { %v2668_v2 = vmul.f32 1.442695, %v2662_v42 }
0x1559   :  { %v2664_v44 = vpop.f32.mrf.mxu1 }
0x155a   :  { %4018 = vpow2.f32 %v2668_v2  ;;  %v2665_v47 = vadd.f32 %v4062_v28, %v2664_v44 }
0x155b   :  { %v3738_v49 = vpop.f32.mrf.mxu1 }
0x155c   :  { %v2670_v51 = vmul.f32 1.442695, %v2665_v47 }
0x155d   :  { %v2774_v24 = vpop.f32.mrf.mxu1 }
0x155e   :  { %4020 = vpow2.f32 %v2670_v51  ;;  %v2775_v33 = vadd.f32 %v4063_v30, %v2774_v24  ;;  %v3896_v51 = vld [vmem:[#allocation7 + $0x58] sm:$0xff]  }
0x155f   :  { %v3749_v52 = vpop.f32.mrf.mxu1  ;;  %3770 = vmatpush3.bf16.msra.mxu1 %v3896_v51 }
0x1560   :  { %v2781_v53 = vmul.f32 1.442695, %v2775_v33  ;;  %3771 = vmatprep.subr.bf16.mxu1 %v4181_v1 }
0x1561   :  { %v2777_v55 = vpop.f32.mrf.mxu1 }
0x1562   :  { %4022 = vpow2.f32 %v2781_v53  ;;  %v2778_v56 = vadd.f32 %v4062_v28, %v2777_v55 }
0x1563   :  { %v3750_v58 = vpop.f32.mrf.mxu1 }
0x1564   :  { %v2783_v8 = vmul.f32 1.442695, %v2778_v56 }
0x1565   :  { %v2887_v59 = vpop.f32.mrf.mxu1 }
0x1566   :  { %4024 = vpow2.f32 %v2783_v8  ;;  %v2888_v60 = vadd.f32 %v4063_v30, %v2887_v59  ;;  %v3897_v59 = vld [vmem:[#allocation7 + $0x50] sm:$0xff]  }
0x1567   :  { %v4019_v61 = vpop.eup %4018  ;;  %v3761_v34 = vpop.f32.mrf.mxu1  ;;  %3772 = vmatpush3.bf16.msra.mxu1 %v3897_v59 }
0x1568   :  { %v2894_v57 = vmul.f32 1.442695, %v2888_v60  ;;  %v2672_v6 = vsel %vm261_vm3, %v4019_v61, 0.0  ;;  %3785 = vmatprep.subr.bf16.mxu1 %v4181_v1 }
0x1569   :  { %2673 = vadd.xlane.f32.xlu1 %v2672_v6  ;;  %v2890_v62 = vpop.f32.mrf.mxu1 }
0x156a   :  { %4026 = vpow2.f32 %v2894_v57  ;;  %v2891_v63 = vadd.f32 %v4062_v28, %v2890_v62 }
0x156b   :  { %v4021_v0 = vpop.eup %4020  ;;  %v3762_v4 = vpop.f32.mrf.mxu1 }
0x156c   :  { %v2896_v5 = vmul.f32 1.442695, %v2891_v63  ;;  %v2675_v10 = vsel %vm261_vm3, %v4021_v0, 0.0  ;;  %v2680_v27 = vpack.c.bf16 %v4021_v0, %v4019_v61 }
0x156d   :  { %2676 = vadd.xlane.f32.xlu0 %v2675_v10 }
0x156e   :  { %4028 = vpow2.f32 %v2896_v5  ;;  %3742 = vmatmul.mubr.msk.bf16.vlgmr.msra.gmra.mxu0 %vm261_vm3, %v2680_v27 }
0x156f   :  { %v4023_v11 = vpop.eup %4022  ;;  %3752 = vmatpush3.bf16.msra.mxu0 %v2795_v54  ;;  %3753 = vmatprep.mubr.msk.bf16.mxu0 %vm4182_vm0, %v4181_v1 }
0x1570   :  { %v2785_v13 = vsel %vm261_vm3, %v4023_v11, 0.0  ;;  %3763 = vmatprep.subr.bf16.mxu0 %v4181_v1 }
0x1571   :  { %2786 = vadd.xlane.f32.xlu0 %v2785_v13 }
0x1573   :  { %v4025_v14 = vpop.eup %4024 }
0x1574   :  { %v2788_v15 = vsel %vm261_vm3, %v4025_v14, 0.0  ;;  %v2793_v7 = vpack.c.bf16 %v4025_v14, %v4023_v11 }
0x1575   :  { %2789 = vadd.xlane.f32.xlu1 %v2788_v15 }
0x1576   :  { %3754 = vmatmul.mubr.msk.bf16.vlgmr.msra.gmra.mxu0 %vm261_vm3, %v2793_v7 }
0x1577   :  { %v4027_v17 = vpop.eup %4026  ;;  %3764 = vmatpush3.bf16.msra.mxu0 %v2908_v22  ;;  %3765 = vmatprep.mubr.msk.bf16.mxu0 %vm4182_vm0, %v4181_v1 }
0x1578   :  { %v2898_v19 = vsel %vm261_vm3, %v4027_v17, 0.0  ;;  %3777 = vmatprep.subr.bf16.mxu0 %v4181_v1 }
0x1579   :  { %2899 = vadd.xlane.f32.xlu0 %v2898_v19 }
0x157b   :  { %v4029_v21 = vpop.eup %4028 }
0x157c   :  { %v2901_v9 = vsel %vm261_vm3, %v4029_v21, 0.0  ;;  %v2906_v25 = vpack.c.bf16 %v4029_v21, %v4027_v17 }
0x157d   :  { %2557 = vadd.xlane.f32.xlu0 %v2556_v23  ;;  %2902 = vadd.xlane.f32.xlu1 %v2901_v9 }
0x157e   :  { %3766 = vmatmul.mubr.msk.bf16.vlgmr.msra.gmra.mxu0 %vm261_vm3, %v2906_v25 }
0x157f   :  { %3781 = vmatprep.mubr.msk.bf16.mxu0 %vm4182_vm0, %v4181_v1 }
0x1581   :  { %2560 = vadd.xlane.f32.xlu1 %v2559_v26 }
0x15c4   :  { %v4735_v28 = vpop.f32.mrf.mxu0 }
0x15c6   :  { %v3731_v29 = vpop.f32.mrf.mxu0 }
0x15c8   :  { %v4737_v30 = vpop.f32.mrf.mxu0 }
0x15ca   :  { %v3732_v18 = vpop.f32.mrf.mxu0 }
0x15f2   :  { %v2674_v31 = vpop.xlane.xlu1 %2673 }
0x15f3   :  { %4030 = vrcp.f32 %v2674_v31 }
0x15f6   :  { %v2677_v20 = vpop.xlane.xlu0 %2676 }
0x15f7   :  { %4032 = vrcp.f32 %v2677_v20 }
0x15fa   :  { %v2787_v35 = vpop.xlane.xlu0 %2786 }
0x15fb   :  { %4034 = vrcp.f32 %v2787_v35 }
0x15fe   :  { %v2790_v37 = vpop.xlane.xlu1 %2789 }
0x15ff   :  { %4036 = vrcp.f32 %v2790_v37 }
0x1600   :  { %v4031_v41 = vpop.eup %4030 }
0x1602   :  { %v2900_v42 = vpop.xlane.xlu0 %2899 }
0x1603   :  { %4038 = vrcp.f32 %v2900_v42 }
0x1604   :  { %v4033_v32 = vpop.eup %4032 }
0x1606   :  { %v2903_v43 = vpop.xlane.xlu1 %2902  ;;  %v2558_v27 = vpop.xlane.xlu0 %2557 }
0x1607   :  { %4040 = vrcp.f32 %v2903_v43 }
0x1608   :  { %v4035_v53 = vpop.eup %4034  ;;  %4042 = vrcp.f32 %v2558_v27 }
0x160a   :  { %v2561_v54 = vpop.xlane.xlu1 %2560 }
0x160b   :  { %4044 = vrcp.f32 %v2561_v54 }
0x160c   :  { %v4037_v55 = vpop.eup %4036 }
0x1610   :  { %v4039_v6 = vpop.eup %4038 }
0x1614   :  { %v4041_v62 = vpop.eup %4040 }
0x1615   :  { %v4043_v13 = vpop.eup %4042 }
0x1616   :  { %v2613_v21 = vmul.f32 %v4043_v13, %v4735_v28  ;;  %v4064_v28 = vld [vmem:[#allocation8 + $0x10] sm:$0xff] }
0x1618   :  { %v4045_v15 = vpop.eup %4044 }
0x1619   :  { %v2614_v23 = vmul.f32 %v4045_v15, %v4737_v30  ;;  %v2990_v30 = vrot.slane %v4064_v28, %v4506_v16 }
0x162e   :  { %v2721_v38 = vpop.f32.mrf.mxu0 }
0x162f   :  { %v2728_v44 = vmul.f32 %v4031_v41, %v2721_v38 }
0x1630   :  { %v3743_v40 = vpop.f32.mrf.mxu0 }
0x1632   :  { %v2724_v2 = vpop.f32.mrf.mxu0 }
0x1633   :  { %v2729_v47 = vmul.f32 %v4033_v32, %v2724_v2 }
0x1634   :  { %v3744_v49 = vpop.f32.mrf.mxu0 }
0x1635   :  { %v3862_v24 = vpack.i.bf16 %v2729_v47, %v2728_v44 }
0x1636   :  { %v2834_v33 = vpop.f32.mrf.mxu0 }
0x1637   :  { %3863 = vrot.lane.b32.xlu0 %v3862_v24, %s4178_s8  ;;  %v2841_v58 = vmul.f32 %v4035_v53, %v2834_v33 }
0x1638   :  { %v3755_v52 = vpop.f32.mrf.mxu0 }
0x163a   :  { %v2837_v56 = vpop.f32.mrf.mxu0 }
0x163b   :  { %v2842_v8 = vmul.f32 %v4037_v55, %v2837_v56 }
0x163c   :  { %v3756_v60 = vpop.f32.mrf.mxu0 }
0x163d   :  { %v3867_v61 = vpack.i.bf16 %v2842_v8, %v2841_v58  ;;  %v3898_v60 = vld [vmem:[#allocation7 + $0x68] sm:$0xff]  }
0x163e   :  { %v2947_v34 = vpop.f32.mrf.mxu0  ;;  %3778 = vmatpush3.bf16.msra.mxu0 %v3898_v60 }
0x163f   :  { %3868 = vrot.lane.b32.xlu1 %v3867_v61, %s4194_s10  ;;  %v2954_v0 = vmul.f32 %v4039_v6, %v2947_v34  ;;  %3779 = vmatprep.subr.bf16.mxu0 %v4181_v1 }
0x1640   :  { %v3767_v57 = vpop.f32.mrf.mxu0 }
0x1642   :  { %v2950_v63 = vpop.f32.mrf.mxu0 }
0x1643   :  { %v2955_v4 = vmul.f32 %v4041_v62, %v2950_v63 }
0x1644   :  { %v3768_v5 = vpop.f32.mrf.mxu0 }
0x1645   :  { %v3872_v10 = vpack.i.bf16 %v2955_v4, %v2954_v0  ;;  %v3078_v5 = vrot.slane %v4651_v39, %v4411_v36  ;;  %v3091_v36 = vrot.slane %v4651_v39, %v4290_v12 }
0x1647   :  { %3873 = vrot.lane.b32.xlu1 %v3872_v10, %s4195_s3 }
0x16a9   :  { %v3864_v11 = vpop.permute.xlu0 %3863 }
0x16aa   :  { %v3866_v7 = vunpack.i.h.bf16 %v3864_v11  ;;  %v3865_v22 = vunpack.i.l.bf16 %v3864_v11  ;;  %v3084_v11 = vrot.slane %v4651_v39, %v4418_v46 }
0x16ac   :  { %v2981_v25 = vsel %vm209_vm2, %v2614_v23, %v3866_v7  ;;  %v2980_v26 = vsel %vm209_vm2, %v2613_v21, %v3865_v22  ;;  %v3900_v22 = vld [vmem:[#allocation7 + $0x78] sm:$0xff]  }
0x16b1   :  { %v3869_v14 = vpop.permute.xlu1 %3868 }
0x16b2   :  { %v3871_v17 = vunpack.i.h.bf16 %v3869_v14  ;;  %v3870_v19 = vunpack.i.l.bf16 %v3869_v14 }
0x16b4   :  { %v2983_v31 = vsel %vm261_vm3, %v2981_v25, %v3871_v17  ;;  %v2982_v20 = vsel %vm261_vm3, %v2980_v26, %v3870_v19  ;;  %v3901_v17 = vld [vmem:[#allocation7 + $0x70] sm:$0xff]  }
0x16b9   :  { %v3874_v9 = vpop.permute.xlu1 %3873 }
0x16ba   :  { %v3876_v29 = vunpack.i.h.bf16 %v3874_v9  ;;  %v3875_v18 = vunpack.i.l.bf16 %v3874_v9 }
0x16bc   :  { %v2985_v35 = vsel %vm689_vm4, %v2983_v31, %v3876_v29  ;;  %v2984_v37 = vsel %vm689_vm4, %v2982_v20, %v3875_v18  ;;  %v3154_v31 = vrot.slane %v4651_v39, %v4265_v3 }
0x16bd   :  { %v2986_v38 = vpack.c.bf16 %v2985_v35, %v2984_v37 }
0x16bf   :  { %3774 = vmatmul.mubr.msk.bf16.vlgmr.msra.gmra.mxu1 %vm132_vm1, %v2986_v38 }
0x16c0   :  { %3789 = vmatprep.mubr.msk.bf16.mxu1 %vm4182_vm0, %v4181_v1  ;;  %3786 = vmatpush3.bf16.msra.mxu1 %v3900_v22 }
0x16c1   :  { %3787 = vmatprep.subr.bf16.mxu1 %v4181_v1 }
0x16c4   :  { %3788 = vmatpush3.bf16.msra.mxu1 %v3901_v17 }
0x177f   :  { %v3040_v40 = vpop.f32.mrf.mxu1 }
0x1780   :  { %v3041_v41 = vadd.f32 %v3040_v40, %v2990_v30 }
0x1781   :  { %v3775_v42 = vpop.f32.mrf.mxu1 }
0x1782   :  { %v3047_v32 = vadd.f32 %v3041_v41, %v4657_v48 }
0x1783   :  { %v3043_v43 = vpop.f32.mrf.mxu1 }
0x1784   :  { %v3044_v2 = vadd.f32 %v3043_v43, %v2990_v30  ;;  %v3049_v44 = vsel %vm132_vm1, %v3047_v32, 0.0 }
0x1785   :  { %3050 = vadd.xlane.f32.xlu0 %v3049_v44  ;;  %v3776_v47 = vpop.f32.mrf.mxu1 }
0x1786   :  { %v3048_v49 = vadd.f32 %v3044_v2, %v4659_v50  ;;  %v3899_v50 = vld [vmem:[#allocation7 + $0x60] sm:$0xff]  }
0x1787   :  { %3780 = vmatpush3.bf16.msra.mxu0 %v3899_v50 }
0x1788   :  { %v3052_v51 = vsel %vm132_vm1, %v3048_v49, 0.0 }
0x1789   :  { %3053 = vadd.xlane.f32.xlu1 %v3052_v51 }
0x180e   :  { %v3051_v24 = vpop.xlane.xlu0 %3050 }
0x180f   :  { %v3055_v33 = vmul.f32 0.03125, %v3051_v24 }
0x1811   :  { %v3057_v52 = vsub.f32 %v3047_v32, %v3055_v33 }
0x1812   :  { %v3054_v53 = vpop.xlane.xlu1 %3053 }
0x1813   :  { %v3056_v55 = vmul.f32 0.03125, %v3054_v53  ;;  %v3059_v56 = vmul.f32 %v3057_v52, %v3057_v52 }
0x1815   :  { %v3058_v58 = vsub.f32 %v3048_v49, %v3056_v55  ;;  %v3061_v48 = vsel %vm132_vm1, %v3059_v56, 0.0 }
0x1816   :  { %3062 = vadd.xlane.f32.xlu0 %v3061_v48 }
0x1817   :  { %v3060_v8 = vmul.f32 %v3058_v58, %v3058_v58 }
0x1819   :  { %v3064_v59 = vsel %vm132_vm1, %v3060_v8, 0.0 }
0x181a   :  { %3065 = vadd.xlane.f32.xlu0 %v3064_v59  ;;  %v3242_v59 = vrot.slane %v4651_v39, %v4370_v45 }
0x189f   :  { %v3063_v61 = vpop.xlane.xlu0 %3062 }
0x18a0   :  { %v3067_v34 = vmul.f32 0.03125, %v3063_v61  ;;  %v3248_v61 = vrot.slane %v4651_v39, %v4506_v16 }
0x18a2   :  { %v3069_v57 = vadd.f32 1e-05, %v3067_v34 }
0x18a3   :  { %v3066_v6 = vpop.xlane.xlu0 %3065 }
0x18a4   :  { %4046 = vrsqrt.f32 %v3069_v57  ;;  %v3068_v62 = vmul.f32 0.03125, %v3066_v6 }
0x18a6   :  { %v3070_v63 = vadd.f32 1e-05, %v3068_v62 }
0x18a8   :  { %4048 = vrsqrt.f32 %v3070_v63 }
0x18b1   :  { %v4047_v0 = vpop.eup %4046 }
0x18b2   :  { %v3073_v4 = vmul.f32 %v4047_v0, %v3057_v52 }
0x18b4   :  { %v3079_v54 = vmul.f32 %v3078_v5, %v3073_v4 }
0x18b5   :  { %v4049_v10 = vpop.eup %4048 }
0x18b6   :  { %v3074_v27 = vmul.f32 %v4049_v10, %v3058_v58  ;;  %v3085_v14 = vadd.f32 %v3084_v11, %v3079_v54 }
0x18b8   :  { %v3080_v13 = vmul.f32 %v3078_v5, %v3074_v27 }
0x18ba   :  { %v3086_v15 = vadd.f32 %v3084_v11, %v3080_v13 }
0x18bc   :  { %v3087_v7 = vpack.c.bf16 %v3086_v15, %v3085_v14 }
0x18be   :  { %3782 = vmatmul.mubr.msk.bf16.vlgmr.msra.gmra.mxu0 %vm132_vm1, %v3087_v7 }
0x197e   :  { %v3141_v19 = vpop.f32.mrf.mxu0 }
0x197f   :  { %v3142_v23 = vadd.f32 %v3141_v19, %v3091_v36 }
0x1980   :  { %v3783_v21 = vpop.f32.mrf.mxu0 }
0x1981   :  { %v3148_v26 = vmax.f32 %v3142_v23, 0.0  ;;  %v3252_v23 = vld [vmem:[#allocation8 + $0x20] sm:$0xff] }
0x1982   :  { %v3144_v9 = vpop.f32.mrf.mxu0 }
0x1983   :  { %v3145_v46 = vadd.f32 %v3144_v9, %v3091_v36  ;;  %v3282_v9 = vrot.slane %v3252_v23, %v4290_v12 }
0x1984   :  { %v3784_v25 = vpop.f32.mrf.mxu0 }
0x1985   :  { %v3149_v29 = vmax.f32 %v3145_v46, 0.0 }
0x1987   :  { %v3150_v18 = vpack.c.bf16 %v3149_v29, %v3148_v26  ;;  %v3288_v26 = vrot.slane %v3252_v23, %v4265_v3 }
0x1989   :  { %3790 = vmatmul.mubr.msk.bf16.vlgmr.msra.gmra.mxu1 %vm132_vm1, %v3150_v18 }
0x1a49   :  { %v3204_v1 = vpop.f32.mrf.mxu1 }
0x1a4a   :  { %v3205_v20 = vadd.f32 %v3204_v1, %v3154_v31 }
0x1a4b   :  { %v3791_v35 = vpop.f32.mrf.mxu1 }
0x1a4c   :  { %v3211_v37 = vadd.f32 %v3205_v20, %v3085_v14 }
0x1a4d   :  { %v3207_v38 = vpop.f32.mrf.mxu1 }
0x1a4e   :  { %v3208_v28 = vadd.f32 %v3207_v38, %v3154_v31  ;;  %v3213_v30 = vsel %vm132_vm1, %v3211_v37, 0.0 }
0x1a4f   :  { %3214 = vadd.xlane.f32.xlu1 %v3213_v30  ;;  %v3792_v40 = vpop.f32.mrf.mxu1 }
0x1a50   :  { %v3212_v41 = vadd.f32 %v3208_v28, %v3086_v15 }
0x1a52   :  { %v3216_v42 = vsel %vm132_vm1, %v3212_v41, 0.0 }
0x1a53   :  { %3217 = vadd.xlane.f32.xlu0 %v3216_v42 }
0x1ad8   :  { %v3215_v32 = vpop.xlane.xlu1 %3214 }
0x1ad9   :  { %v3219_v43 = vmul.f32 0.03125, %v3215_v32 }
0x1adb   :  { %v3221_v2 = vsub.f32 %v3211_v37, %v3219_v43 }
0x1adc   :  { %v3218_v44 = vpop.xlane.xlu0 %3217 }
0x1add   :  { %v3220_v47 = vmul.f32 0.03125, %v3218_v44  ;;  %v3223_v49 = vmul.f32 %v3221_v2, %v3221_v2 }
0x1adf   :  { %v3222_v51 = vsub.f32 %v3212_v41, %v3220_v47  ;;  %v3225_v24 = vsel %vm132_vm1, %v3223_v49, 0.0 }
0x1ae0   :  { %3226 = vadd.xlane.f32.xlu1 %v3225_v24 }
0x1ae1   :  { %v3224_v33 = vmul.f32 %v3222_v51, %v3222_v51 }
0x1ae3   :  { %v3228_v52 = vsel %vm132_vm1, %v3224_v33, 0.0 }
0x1ae4   :  { %3229 = vadd.xlane.f32.xlu0 %v3228_v52 }
0x1b69   :  { %v3227_v53 = vpop.xlane.xlu1 %3226 }
0x1b6a   :  { %v3231_v55 = vmul.f32 0.03125, %v3227_v53 }
0x1b6c   :  { %v3233_v56 = vadd.f32 1e-05, %v3231_v55 }
0x1b6d   :  { %v3230_v58 = vpop.xlane.xlu0 %3229 }
0x1b6e   :  { %4050 = vrsqrt.f32 %v3233_v56  ;;  %v3232_v48 = vmul.f32 0.03125, %v3230_v58 }
0x1b70   :  { %v3234_v8 = vadd.f32 1e-05, %v3232_v48 }
0x1b72   :  { %4052 = vrsqrt.f32 %v3234_v8 }
0x1b7b   :  { %v4051_v60 = vpop.eup %4050 }
0x1b7c   :  { %v3237_v50 = vmul.f32 %v4051_v60, %v3221_v2 }
0x1b7e   :  { %v3243_v34 = vmul.f32 %v3242_v59, %v3237_v50 }
0x1b7f   :  { %v4053_v57 = vpop.eup %4052 }
0x1b80   :  { %v3249_v6 = vadd.f32 %v3248_v61, %v3243_v34  ;;  %v3238_v62 = vmul.f32 %v4053_v57, %v3222_v51 }
0x1b82   :  { %v3253_v63 = vsel %vm132_vm1, %v3249_v6, 0.0  ;;  %v3244_v0 = vmul.f32 %v3242_v59, %v3238_v62 }
0x1b83   :  { %3254 = vadd.xlane.f32.xlu1 %v3253_v63 }
0x1b84   :  { %v3250_v4 = vadd.f32 %v3248_v61, %v3244_v0 }
0x1b86   :  { %v3256_v5 = vsel %vm132_vm1, %v3250_v4, 0.0 }
0x1b87   :  { %3257 = vadd.xlane.f32.xlu0 %v3256_v5 }
0x1c0c   :  { %v3255_v10 = vpop.xlane.xlu1 %3254 }
0x1c0d   :  { %v3259_v27 = vmul.f32 0.03125, %v3255_v10 }
0x1c0f   :  { %v3261_v45 = vsub.f32 %v3249_v6, %v3259_v27 }
0x1c10   :  { %v3258_v54 = vpop.xlane.xlu0 %3257 }
0x1c11   :  { %v3260_v11 = vmul.f32 0.03125, %v3258_v54  ;;  %v3263_v13 = vmul.f32 %v3261_v45, %v3261_v45 }
0x1c13   :  { %v3262_v14 = vsub.f32 %v3250_v4, %v3260_v11  ;;  %v3265_v16 = vsel %vm132_vm1, %v3263_v13, 0.0 }
0x1c14   :  { %3266 = vadd.xlane.f32.xlu1 %v3265_v16 }
0x1c15   :  { %v3264_v39 = vmul.f32 %v3262_v14, %v3262_v14 }
0x1c17   :  { %v3268_v15 = vsel %vm132_vm1, %v3264_v39, 0.0 }
0x1c18   :  { %3269 = vadd.xlane.f32.xlu0 %v3268_v15 }
0x1c9d   :  { %v3267_v7 = vpop.xlane.xlu1 %3266 }
0x1c9e   :  { %v3271_v22 = vmul.f32 0.03125, %v3267_v7 }
0x1ca0   :  { %v3273_v17 = vadd.f32 1e-05, %v3271_v22 }
0x1ca1   :  { %v3270_v36 = vpop.xlane.xlu0 %3269 }
0x1ca2   :  { %4054 = vrsqrt.f32 %v3273_v17  ;;  %v3272_v19 = vmul.f32 0.03125, %v3270_v36 }
0x1ca4   :  { %v3274_v21 = vadd.f32 1e-05, %v3272_v19 }
0x1ca6   :  { %4056 = vrsqrt.f32 %v3274_v21 }
0x1caf   :  { %v4055_v46 = vpop.eup %4054 }
0x1cb0   :  { %v3277_v25 = vmul.f32 %v4055_v46, %v3261_v45 }
0x1cb2   :  { %v3283_v29 = vmul.f32 %v3282_v9, %v3277_v25 }
0x1cb3   :  { %v4057_v18 = vpop.eup %4056 }
0x1cb4   :  { %v3278_v31 = vmul.f32 %v4057_v18, %v3262_v14  ;;  %v3289_v1 = vadd.f32 %v3288_v26, %v3283_v29 }
0x1cb6   :  { %v3284_v20 = vmul.f32 %v3282_v9, %v3278_v31  ;;  %3291 = vst.msk [vmem:[#allocation10] sm:$0xff] %vm132_vm1, %v3289_v1 }
0x1cb8   :  { %v3290_v35 = vadd.f32 %v3288_v26, %v3284_v20 }
0x1cba   :  { %3292 = vst.msk [vmem:[#allocation10 + $0x8] sm:$0xff] %vm132_vm1, %v3290_v35 }
0x1cbb   :  { %4156 = shalt.err (!%p4153_p10)
}
0x1cbc   :  { %3304 = dma.vmem_to_hbm [thread:$0]  %s3299_s14, 256, %s4802_s6, [#allocation4], %s4177_s7, %s4177_s7, %s4178_s8  }
0x1cbd   :  { %4171 = dma.done.wait [#allocation4], 256  }
0x1cbe   :  { %4172 = vsyncadd [#allocation4], 4294967040 }
0x1cbf   :  { %3308 = vsyncpa [#allocation3], 1 }
0x1cc0   :  { %3309 = vsyncpa [#allocation6], 1 }
0x1cc1   :  { %3310 = vsyncpa [#allocation9], 1 }
0x1cc2   :  { %3311 = vsyncpa [#allocation4], 1 }

</bundles_post_ra>
